<compile_context>
chip_gen: v7x
topology: tpu7x:2x2x1
jax: 0.10.0
libtpu: 0.0.40
codegen_flags: <defaults>
</compile_context>

<pallas_src>
import jax
import jax.numpy as jnp
from jax.experimental import pallas as pl
from jax.experimental.pallas import tpu as pltpu


OUT_PAD = 128  # lane-dense padded width of the final (10-wide) layer


def head_kernel(x_ref, w1_ref, b1_ref, w2_ref, b2_ref, w3_ref, b3_ref,
                w4_ref, b4_ref, o_ref):
    # Cast the activation tile to bf16 in-kernel (cheap VPU op, MXU-native dtype).
    x = x_ref[...].astype(jnp.bfloat16)
    # Layer 1: Linear(F -> 1024) + ReLU   (Dropout = identity in eval mode)
    h = jnp.dot(x, w1_ref[...], preferred_element_type=jnp.float32) + b1_ref[...]
    h = jnp.maximum(h, 0.0)
    # Layer 2: Linear(1024 -> 1024) + ReLU (Dropout = identity in eval mode)
    h = jnp.dot(h.astype(jnp.bfloat16), w2_ref[...],
                preferred_element_type=jnp.float32) + b2_ref[...]
    h = jnp.maximum(h, 0.0)
    # Layer 3: Linear(1024 -> 256) + ReLU
    h = jnp.dot(h.astype(jnp.bfloat16), w3_ref[...],
                preferred_element_type=jnp.float32) + b3_ref[...]
    h = jnp.maximum(h, 0.0)
    # Layer 4: Linear(256 -> OUT_PAD)  (padded from 10; sliced in the wrapper)
    o_ref[...] = (jnp.dot(h.astype(jnp.bfloat16), w4_ref[...],
                          preferred_element_type=jnp.float32)
                  + b4_ref[...]).astype(o_ref.dtype)


def prepare_params(params):
    """One-time parameter prep (call once, outside the hot path).

    Casts weights to bf16, biases to f32 (shape (1, N)), and zero-pads the final
    layer from `out_dim` to OUT_PAD lanes. Returns (prepped_params, out_dim).
    """
    prepped = []
    out_dim = None
    n = len(params)
    for i, (w, b) in enumerate(params):
        w = jnp.asarray(w)
        b = jnp.asarray(b).reshape(1, -1)          # accept (N,) or (1, N) biases
        assert w.ndim == 2 and b.shape[1] == w.shape[1], "bad param shapes"
        if i == n - 1:
            out_dim = w.shape[1]
            w = jnp.zeros((w.shape[0], OUT_PAD), w.dtype).at[:, :out_dim].set(w)
            b = jnp.zeros((1, OUT_PAD), b.dtype).at[:, :out_dim].set(b)
        prepped.append((w.astype(jnp.bfloat16), b.astype(jnp.float32)))
    return prepped, out_dim


def _round_up(v, m):
    return ((v + m - 1) // m) * m


def _choose_tiling(batch):
    """Pick (padded batch, batch tile). Tiles are multiples of 16 (bf16 sublane pack);
    medium/large batches get >= 2 grid steps so both v7x TensorCores are fed; big
    batches use 256/512-row tiles to fill the v6e/v7x MXU and amortize step overhead."""
    if batch <= 64:
        b_pad = _round_up(max(batch, 16), 16)
        return b_pad, b_pad                              # single grid step
    if batch <= 512:
        tm = _round_up(_round_up(batch, 16) // 2, 16)
        return 2 * tm, tm                                # exactly 2 grid steps
    b_pad = _round_up(batch, 256)
    if b_pad % 512 == 0 and b_pad // 512 >= 2:
        return b_pad, 512
    return b_pad, 256


def head_block(x_nchw, prepped_params, out_dim):
    """x_nchw: (B, C, H, W) float32. prepped_params from prepare_params().
    Returns (B, out_dim) float32."""
    B = x_nchw.shape[0]
    x = x_nchw.reshape(B, -1)                 # glue: Flatten(), same ordering as PyTorch NCHW
    F = x.shape[1]
    (w1, b1), (w2, b2), (w3, b3), (w4, b4) = prepped_params

    b_pad, tm = _choose_tiling(B)
    if b_pad != B:
        x = jnp.pad(x, ((0, b_pad - B), (0, 0)))
    grid = (b_pad // tm,)

    def const_spec(arr):
        # Weight/bias blocks: whole array, same block every grid step -> VMEM-resident.
        return pl.BlockSpec(arr.shape, lambda i: (0, 0))

    in_specs = [
        pl.BlockSpec((tm, F), lambda i: (i, 0)),   # x: batch-tiled, f32 (cast in-kernel)
        const_spec(w1), const_spec(b1),
        const_spec(w2), const_spec(b2),
        const_spec(w3), const_spec(b3),
        const_spec(w4), const_spec(b4),
    ]
    out_specs = pl.BlockSpec((tm, OUT_PAD), lambda i: (i, 0))

    flops = 2 * b_pad * (F * 1024 + 1024 * 1024 + 1024 * 256 + 256 * OUT_PAD)
    bytes_accessed = (x.size * 4
                      + (w1.size + w2.size + w3.size + w4.size) * 2
                      + (b1.size + b2.size + b3.size + b4.size) * 4
                      + b_pad * OUT_PAD * 2)

    out = pl.pallas_call(
        head_kernel,
        out_shape=jax.ShapeDtypeStruct((b_pad, OUT_PAD), jnp.bfloat16),
        grid=grid,
        in_specs=in_specs,
        out_specs=out_specs,
        compiler_params=pltpu.CompilerParams(
            dimension_semantics=("parallel",),
            vmem_limit_bytes=32 * 1024 * 1024),
        cost_estimate=pl.CostEstimate(flops=flops, transcendentals=0,
                                      bytes_accessed=bytes_accessed),
    )(x, w1, b1, w2, b2, w3, b3, w4, b4)

    return out[:B, :out_dim].astype(jnp.float32)


def init_params(key, in_features):
    """Deterministic synthetic parameters; weights stored (in, out), biases (1, out)."""
    dims = [in_features, 1024, 1024, 256, 10]
    params = []
    for i in range(4):
        key, kw, kb = jax.random.split(key, 3)
        fan_in, fan_out = dims[i], dims[i + 1]
        bound = 1.0 / jnp.sqrt(fan_in)
        w = jax.random.uniform(kw, (fan_in, fan_out), jnp.float32, -bound, bound)
        b = jax.random.uniform(kb, (1, fan_out), jnp.float32, -bound, bound)
        params.append((w, b))
    return params


def head_block_ref(x_nchw, params):
    """Pure-JAX reference mimicking the kernel's bf16-input / f32-accumulate numerics."""
    h = x_nchw.reshape(x_nchw.shape[0], -1)
    for i, (w, b) in enumerate(params):
        h = jnp.dot(h.astype(jnp.bfloat16), w.astype(jnp.bfloat16),
                    preferred_element_type=jnp.float32) + b.reshape(1, -1).astype(jnp.float32)
        if i < 3:
            h = jnp.maximum(h, 0.0)
    # Kernel stores the final layer as bf16 (wrapper casts back to f32).
    return h.astype(jnp.bfloat16).astype(jnp.float32)


if __name__ == "__main__":
    # Small shapes consistent with the module: in_channels=4, size=16 -> F = 4*16*16 = 1024.
    B, C, H, W = 2, 4, 16, 16
    key = jax.random.PRNGKey(0)
    kx, kp = jax.random.split(key)
    x = jax.random.normal(kx, (B, C, H, W), jnp.float32)
    params = init_params(kp, C * H * W)

    # One-time param prep (hoisted out of the per-call path per perf review).
    prepped, out_dim = prepare_params(params)
    prepped = jax.block_until_ready(prepped)

    out = head_block(x, prepped, out_dim)
    out = jax.block_until_ready(out)

    ref = head_block_ref(x, params)
    assert out.shape == (B, 10), out.shape
    assert jnp.allclose(out, ref, atol=2e-2, rtol=2e-2), "mismatch vs JAX reference"

    print("KERNEL_OK")
</pallas_src>

<mosaic_0001>
module attributes {stable_mosaic.version = 11 : i64} {
  func.func @head_kernel(%arg0: i32, %arg1: memref<16x1024xf32, #tpu.memory_space<vmem>>, %arg2: memref<1024x1024xbf16, #tpu.memory_space<vmem>>, %arg3: memref<1x1024xf32, #tpu.memory_space<vmem>>, %arg4: memref<1024x1024xbf16, #tpu.memory_space<vmem>>, %arg5: memref<1x1024xf32, #tpu.memory_space<vmem>>, %arg6: memref<1024x256xbf16, #tpu.memory_space<vmem>>, %arg7: memref<1x256xf32, #tpu.memory_space<vmem>>, %arg8: memref<256x128xbf16, #tpu.memory_space<vmem>>, %arg9: memref<1x128xf32, #tpu.memory_space<vmem>>, %arg10: memref<16x128xbf16, #tpu.memory_space<vmem>>) attributes {dimension_semantics = [#tpu.dimension_semantics<parallel>], iteration_bounds = array<i64: 1>, scalar_prefetch = 0 : i64, scratch_operands = 0 : i64, tpu.core_type = #tpu.core_type<tc>, window_params = [{transform_indices = @transform_0, window_bounds = array<i64: 16, 1024>}, {pipeline_mode = #tpu.pipeline_mode<synchronous>, transform_indices = @transform_1, window_bounds = array<i64: 1024, 1024>}, {pipeline_mode = #tpu.pipeline_mode<synchronous>, transform_indices = @transform_2, window_bounds = array<i64: 1, 1024>}, {pipeline_mode = #tpu.pipeline_mode<synchronous>, transform_indices = @transform_3, window_bounds = array<i64: 1024, 1024>}, {pipeline_mode = #tpu.pipeline_mode<synchronous>, transform_indices = @transform_4, window_bounds = array<i64: 1, 1024>}, {pipeline_mode = #tpu.pipeline_mode<synchronous>, transform_indices = @transform_5, window_bounds = array<i64: 1024, 256>}, {pipeline_mode = #tpu.pipeline_mode<synchronous>, transform_indices = @transform_6, window_bounds = array<i64: 1, 256>}, {pipeline_mode = #tpu.pipeline_mode<synchronous>, transform_indices = @transform_7, window_bounds = array<i64: 256, 128>}, {pipeline_mode = #tpu.pipeline_mode<synchronous>, transform_indices = @transform_8, window_bounds = array<i64: 1, 128>}, {transform_indices = @transform_9, window_bounds = array<i64: 16, 128>}]} {
    %c0 = arith.constant 0 : index
    %c0_0 = arith.constant 0 : index
    %0 = vector.load %arg1[%c0, %c0_0] : memref<16x1024xf32, #tpu.memory_space<vmem>>, vector<16x1024xf32>
    %1 = arith.truncf %0 : vector<16x1024xf32> to vector<16x1024xbf16>
    %c0_1 = arith.constant 0 : index
    %c0_2 = arith.constant 0 : index
    %2 = vector.load %arg2[%c0_1, %c0_2] : memref<1024x1024xbf16, #tpu.memory_space<vmem>>, vector<1024x1024xbf16>
    %cst = arith.constant dense<0.000000e+00> : vector<16x1024xf32>
    %3 = tpu.matmul %1, %2, %cst {dimension_numbers = #tpu.dot_dimension_numbers<[1], [0], [0], [1], [0, 0, 1, 1], [], []>} : vector<16x1024xbf16>, vector<1024x1024xbf16>, vector<16x1024xf32> -> vector<16x1024xf32>
    %c0_3 = arith.constant 0 : index
    %c0_4 = arith.constant 0 : index
    %4 = vector.load %arg3[%c0_3, %c0_4] : memref<1x1024xf32, #tpu.memory_space<vmem>>, vector<1x1024xf32>
    %5 = vector.broadcast %4 : vector<1x1024xf32> to vector<16x1024xf32>
    %6 = arith.addf %3, %5 : vector<16x1024xf32>
    %cst_5 = arith.constant 0.000000e+00 : f32
    %7 = vector.broadcast %cst_5 : f32 to vector<16x1024xf32>
    %8 = arith.maximumf %6, %7 : vector<16x1024xf32>
    %9 = arith.truncf %8 : vector<16x1024xf32> to vector<16x1024xbf16>
    %c0_6 = arith.constant 0 : index
    %c0_7 = arith.constant 0 : index
    %10 = vector.load %arg4[%c0_6, %c0_7] : memref<1024x1024xbf16, #tpu.memory_space<vmem>>, vector<1024x1024xbf16>
    %cst_8 = arith.constant dense<0.000000e+00> : vector<16x1024xf32>
    %11 = tpu.matmul %9, %10, %cst_8 {dimension_numbers = #tpu.dot_dimension_numbers<[1], [0], [0], [1], [0, 0, 1, 1], [], []>} : vector<16x1024xbf16>, vector<1024x1024xbf16>, vector<16x1024xf32> -> vector<16x1024xf32>
    %c0_9 = arith.constant 0 : index
    %c0_10 = arith.constant 0 : index
    %12 = vector.load %arg5[%c0_9, %c0_10] : memref<1x1024xf32, #tpu.memory_space<vmem>>, vector<1x1024xf32>
    %13 = vector.broadcast %12 : vector<1x1024xf32> to vector<16x1024xf32>
    %14 = arith.addf %11, %13 : vector<16x1024xf32>
    %cst_11 = arith.constant 0.000000e+00 : f32
    %15 = vector.broadcast %cst_11 : f32 to vector<16x1024xf32>
    %16 = arith.maximumf %14, %15 : vector<16x1024xf32>
    %17 = arith.truncf %16 : vector<16x1024xf32> to vector<16x1024xbf16>
    %c0_12 = arith.constant 0 : index
    %c0_13 = arith.constant 0 : index
    %18 = vector.load %arg6[%c0_12, %c0_13] : memref<1024x256xbf16, #tpu.memory_space<vmem>>, vector<1024x256xbf16>
    %cst_14 = arith.constant dense<0.000000e+00> : vector<16x256xf32>
    %19 = tpu.matmul %17, %18, %cst_14 {dimension_numbers = #tpu.dot_dimension_numbers<[1], [0], [0], [1], [0, 0, 1, 1], [], []>} : vector<16x1024xbf16>, vector<1024x256xbf16>, vector<16x256xf32> -> vector<16x256xf32>
    %c0_15 = arith.constant 0 : index
    %c0_16 = arith.constant 0 : index
    %20 = vector.load %arg7[%c0_15, %c0_16] : memref<1x256xf32, #tpu.memory_space<vmem>>, vector<1x256xf32>
    %21 = vector.broadcast %20 : vector<1x256xf32> to vector<16x256xf32>
    %22 = arith.addf %19, %21 : vector<16x256xf32>
    %cst_17 = arith.constant 0.000000e+00 : f32
    %23 = vector.broadcast %cst_17 : f32 to vector<16x256xf32>
    %24 = arith.maximumf %22, %23 : vector<16x256xf32>
    %25 = arith.truncf %24 : vector<16x256xf32> to vector<16x256xbf16>
    %c0_18 = arith.constant 0 : index
    %c0_19 = arith.constant 0 : index
    %26 = vector.load %arg8[%c0_18, %c0_19] : memref<256x128xbf16, #tpu.memory_space<vmem>>, vector<256x128xbf16>
    %cst_20 = arith.constant dense<0.000000e+00> : vector<16x128xf32>
    %27 = tpu.matmul %25, %26, %cst_20 {dimension_numbers = #tpu.dot_dimension_numbers<[1], [0], [0], [1], [0, 0, 1, 1], [], []>} : vector<16x256xbf16>, vector<256x128xbf16>, vector<16x128xf32> -> vector<16x128xf32>
    %c0_21 = arith.constant 0 : index
    %c0_22 = arith.constant 0 : index
    %28 = vector.load %arg9[%c0_21, %c0_22] : memref<1x128xf32, #tpu.memory_space<vmem>>, vector<1x128xf32>
    %29 = vector.broadcast %28 : vector<1x128xf32> to vector<16x128xf32>
    %30 = arith.addf %27, %29 : vector<16x128xf32>
    %31 = arith.truncf %30 : vector<16x128xf32> to vector<16x128xbf16>
    %c0_23 = arith.constant 0 : index
    %c0_24 = arith.constant 0 : index
    %32 = vector.load %arg10[%c0_23, %c0_24] : memref<16x128xbf16, #tpu.memory_space<vmem>>, vector<16x128xbf16>
    tpu.vector_store %arg10[%c0_23, %c0_24], %31 {strides = array<i32>} : memref<16x128xbf16, #tpu.memory_space<vmem>>, vector<16x128xbf16>,
    return
  }
  func.func @transform_0(%arg0: i32) -> (i32, i32) {
    %c0_i32 = arith.constant 0 : i32
    %c0_i32_0 = arith.constant 0 : i32
    return %arg0, %c0_i32 : i32, i32
  }
  func.func @transform_1(%arg0: i32) -> (i32, i32) {
    %c0_i32 = arith.constant 0 : i32
    %c0_i32_0 = arith.constant 0 : i32
    %c0_i32_1 = arith.constant 0 : i32
    return %c0_i32, %c0_i32_0 : i32, i32
  }
  func.func @transform_2(%arg0: i32) -> (i32, i32) {
    %c0_i32 = arith.constant 0 : i32
    %c0_i32_0 = arith.constant 0 : i32
    %c0_i32_1 = arith.constant 0 : i32
    return %c0_i32, %c0_i32_0 : i32, i32
  }
  func.func @transform_3(%arg0: i32) -> (i32, i32) {
    %c0_i32 = arith.constant 0 : i32
    %c0_i32_0 = arith.constant 0 : i32
    %c0_i32_1 = arith.constant 0 : i32
    return %c0_i32, %c0_i32_0 : i32, i32
  }
  func.func @transform_4(%arg0: i32) -> (i32, i32) {
    %c0_i32 = arith.constant 0 : i32
    %c0_i32_0 = arith.constant 0 : i32
    %c0_i32_1 = arith.constant 0 : i32
    return %c0_i32, %c0_i32_0 : i32, i32
  }
  func.func @transform_5(%arg0: i32) -> (i32, i32) {
    %c0_i32 = arith.constant 0 : i32
    %c0_i32_0 = arith.constant 0 : i32
    %c0_i32_1 = arith.constant 0 : i32
    return %c0_i32, %c0_i32_0 : i32, i32
  }
  func.func @transform_6(%arg0: i32) -> (i32, i32) {
    %c0_i32 = arith.constant 0 : i32
    %c0_i32_0 = arith.constant 0 : i32
    %c0_i32_1 = arith.constant 0 : i32
    return %c0_i32, %c0_i32_0 : i32, i32
  }
  func.func @transform_7(%arg0: i32) -> (i32, i32) {
    %c0_i32 = arith.constant 0 : i32
    %c0_i32_0 = arith.constant 0 : i32
    %c0_i32_1 = arith.constant 0 : i32
    return %c0_i32, %c0_i32_0 : i32, i32
  }
  func.func @transform_8(%arg0: i32) -> (i32, i32) {
    %c0_i32 = arith.constant 0 : i32
    %c0_i32_0 = arith.constant 0 : i32
    %c0_i32_1 = arith.constant 0 : i32
    return %c0_i32, %c0_i32_0 : i32, i32
  }
  func.func @transform_9(%arg0: i32) -> (i32, i32) {
    %c0_i32 = arith.constant 0 : i32
    %c0_i32_0 = arith.constant 0 : i32
    return %arg0, %c0_i32 : i32, i32
  }
}

</mosaic_0001>

<bundles_post_ra>
// kernel: tpu_custom_call.1
= control target key start
LH: loop header
LB: loop body
LE: loop exit
PB: predicated region body
PF: predicated region fallthrough
CT: control target
= control target key end

     0   :  { %14 = vsyncpa [#allocation3], 0  ;;  %s11170_s0 = inlined_call_operand.hbm [shape: f32[16,1024], index: 0, kind: input, shape index: {}]   ;;  %s11171_s1 = inlined_call_operand.hbm [shape: bf16[1024,1024], index: 1, kind: input, shape index: {}]   ;;  %s11172_s2 = inlined_call_operand.hbm [shape: f32[1,1024], index: 2, kind: input, shape index: {}]   ;;  %s11173_s3 = inlined_call_operand.hbm [shape: bf16[1024,1024], index: 3, kind: input, shape index: {}]   ;;  %s11174_s4 = inlined_call_operand.hbm [shape: f32[1,1024], index: 4, kind: input, shape index: {}]   ;;  %s11175_s5 = inlined_call_operand.hbm [shape: bf16[1024,256], index: 5, kind: input, shape index: {}]   ;;  %s11176_s6 = inlined_call_operand.hbm [shape: f32[1,256], index: 6, kind: input, shape index: {}]   ;;  %s11177_s7 = inlined_call_operand.hbm [shape: bf16[256,128], index: 7, kind: input, shape index: {}]   ;;  %s11178_s8 = inlined_call_operand.hbm [shape: f32[1,128], index: 8, kind: input, shape index: {}]   ;;  %s11179_s9 = inlined_call_operand.hbm [shape: bf16[16,128], index: 9, kind: output, shape index: {}]  }
   0x1   :  { %15 = vsyncpa [#allocation6], 0 }
   0x2   :  { %16 = vsyncpa [#allocation9], 0 }
   0x3   :  { %17 = vsyncpa [#allocation12], 0 }
   0x4   :  { %18 = vsyncpa [#allocation15], 0 }
   0x5   :  { %19 = vsyncpa [#allocation4], 0  ;;  %s10792_s30 = smov [#allocation5]   ;;  %s10560_s13 = scalar_lea.hbm %s11171_s1, 65536 }
   0x6   :  { %s37_s10 = sshll.u32 %s10792_s30, 4  ;;  %p10561_p0 = scmp.ne.s32.totalorder %s11171_s1, %s10560_s13  ;;  %s38_s10 = int_to_ptr.vmem [resolvable:$true] %s37_s10 }
   0x7   :  { %p10564_p1 = scmp.lt.u32.totalorder %s10560_s13, %s11171_s1 }
   0x9   :  { %p10566_p2 = pnand %p10564_p1, %p10561_p0 }
   0xb   :  { %10569 = shalt.err (!%p10566_p2)
}
   0xc   :  { %s10570_s18 = scalar_lea.vmem %s38_s10, 65536  ;;  %p10575_p4 = scmp.lt.s32.totalorder %s38_s10, %s38_s10 }
   0xd   :  { %p10571_p3 = scmp.ne.s32.totalorder %s38_s10, %s10570_s18  ;;  %p10576_p5 = scmp.lt.s32.totalorder %s10570_s18, %s10570_s18 }
   0xf   :  { %p10577_p6 = por %p10576_p5, %p10575_p4 }
  0x11   :  { %p10578_p7 = pnand %p10577_p6, %p10571_p3 }
  0x13   :  { %10581 = shalt.err (!%p10578_p7)
}
  0x14   :  { %s10793_s19 = smov 512   ;;  %s10794_s20 = smov 32  }
  0x15   :  { %43 = dma.hbm_to_vmem [thread:$0]  %s11171_s1, 65536, %s38_s10, [#allocation6], %s10793_s19, %s10793_s19, %s10794_s20  }
  0x16   :  { %s10795_s23 = smov [#allocation8]   ;;  %s10796_s25 = smov [#allocation11]  }
  0x17   :  { %s59_s24 = sshll.u32 %s10795_s23, 4  ;;  %s81_s26 = sshll.u32 %s10796_s25, 4  ;;  %s60_s24 = int_to_ptr.vmem [resolvable:$true] %s59_s24  ;;  %s82_s26 = int_to_ptr.vmem [resolvable:$true] %s81_s26 }
  0x18   :  { %s10582_s29 = scalar_lea.hbm %s11173_s3, 65536 }
  0x19   :  { %p10583_p8 = scmp.ne.s32.totalorder %s11173_s3, %s10582_s29  ;;  %p10586_p9 = scmp.lt.u32.totalorder %s10582_s29, %s11173_s3 }
  0x1b   :  { %p10588_p10 = pnand %p10586_p9, %p10583_p8 }
  0x1d   :  { %10591 = shalt.err (!%p10588_p10)
}
  0x1e   :  { %s10592_s1 = scalar_lea.vmem %s60_s24, 65536  ;;  %p10597_p12 = scmp.lt.s32.totalorder %s60_s24, %s60_s24 }
  0x1f   :  { %p10593_p11 = scmp.ne.s32.totalorder %s60_s24, %s10592_s1  ;;  %p10598_p13 = scmp.lt.s32.totalorder %s10592_s1, %s10592_s1 }
  0x21   :  { %p10599_p0 = por %p10598_p13, %p10597_p12 }
  0x23   :  { %p10600_p1 = pnand %p10599_p0, %p10593_p11 }
  0x25   :  { %10603 = shalt.err (!%p10600_p1)
}
  0x26   :  { %65 = dma.hbm_to_vmem [thread:$0]  %s11173_s3, 65536, %s60_s24, [#allocation9], %s10793_s19, %s10793_s19, %s10794_s20  }
  0x27   :  { %s10604_s17 = scalar_lea.hbm %s11175_s5, 16384 }
  0x28   :  { %p10605_p2 = scmp.ne.s32.totalorder %s11175_s5, %s10604_s17  ;;  %p10608_p3 = scmp.lt.u32.totalorder %s10604_s17, %s11175_s5 }
  0x2a   :  { %p10610_p4 = pnand %p10608_p3, %p10605_p2 }
  0x2c   :  { %10613 = shalt.err (!%p10610_p4)
}
  0x2d   :  { %s10614_s25 = scalar_lea.vmem %s82_s26, 16384  ;;  %p10619_p6 = scmp.lt.s32.totalorder %s82_s26, %s82_s26 }
  0x2e   :  { %p10615_p5 = scmp.ne.s32.totalorder %s82_s26, %s10614_s25  ;;  %p10620_p7 = scmp.lt.s32.totalorder %s10614_s25, %s10614_s25 }
  0x30   :  { %p10621_p8 = por %p10620_p7, %p10619_p6 }
  0x32   :  { %p10622_p9 = pnand %p10621_p8, %p10615_p5 }
  0x34   :  { %10625 = shalt.err (!%p10622_p9)
}
  0x35   :  { %s10797_s3 = smov 128   ;;  %s10798_s19 = smov 8  }
  0x36   :  { %87 = dma.hbm_to_vmem [thread:$0]  %s11175_s5, 16384, %s82_s26, [#allocation12], %s10797_s3, %s10797_s3, %s10798_s19  }
  0x37   :  { %s10799_s27 = smov [#allocation14]   ;;  %s10800_s29 = smov [#allocation2]  }
  0x38   :  { %s103_s28 = sshll.u32 %s10799_s27, 4  ;;  %s25_s30 = sshll.u32 %s10800_s29, 4  ;;  %s104_s28 = int_to_ptr.vmem [resolvable:$true] %s103_s28  ;;  %s26_s30 = int_to_ptr.vmem [resolvable:$true] %s25_s30 }
  0x39   :  { %s10626_s13 = scalar_lea.hbm %s11177_s7, 2048 }
  0x3a   :  { %p10627_p10 = scmp.ne.s32.totalorder %s11177_s7, %s10626_s13  ;;  %p10630_p11 = scmp.lt.u32.totalorder %s10626_s13, %s11177_s7 }
  0x3c   :  { %p10632_p12 = pnand %p10630_p11, %p10627_p10 }
  0x3e   :  { %10635 = shalt.err (!%p10632_p12)
}
  0x3f   :  { %s10636_s5 = scalar_lea.vmem %s104_s28, 2048  ;;  %p10641_p0 = scmp.lt.s32.totalorder %s104_s28, %s104_s28 }
  0x40   :  { %p10637_p13 = scmp.ne.s32.totalorder %s104_s28, %s10636_s5  ;;  %p10642_p1 = scmp.lt.s32.totalorder %s10636_s5, %s10636_s5 }
  0x42   :  { %p10643_p2 = por %p10642_p1, %p10641_p0 }
  0x44   :  { %p10644_p3 = pnand %p10643_p2, %p10637_p13 }
  0x46   :  { %10647 = shalt.err (!%p10644_p3)
}
  0x47   :  { %s10801_s26 = smov 64   ;;  %s10802_s16 = smov 4  }
  0x48   :  { %109 = dma.hbm_to_vmem [thread:$0]  %s11177_s7, 2048, %s104_s28, [#allocation15], %s10801_s26, %s10801_s26, %s10802_s16  }
  0x49   :  { %s10648_s23 = scalar_lea.hbm %s11170_s0, 2048 }
  0x4a   :  { %p10649_p4 = scmp.ne.s32.totalorder %s11170_s0, %s10648_s23  ;;  %p10652_p5 = scmp.lt.u32.totalorder %s10648_s23, %s11170_s0 }
  0x4c   :  { %p10654_p6 = pnand %p10652_p5, %p10649_p4 }
  0x4e   :  { %10657 = shalt.err (!%p10654_p6)
}
  0x4f   :  { %s10658_s24 = scalar_lea.vmem %s26_s30, 2048  ;;  %p10663_p8 = scmp.lt.s32.totalorder %s26_s30, %s26_s30 }
  0x50   :  { %p10659_p7 = scmp.ne.s32.totalorder %s26_s30, %s10658_s24  ;;  %p10664_p9 = scmp.lt.s32.totalorder %s10658_s24, %s10658_s24 }
  0x52   :  { %p10665_p10 = por %p10664_p9, %p10663_p8 }
  0x54   :  { %p10666_p11 = pnand %p10665_p10, %p10659_p7 }
  0x56   :  { %10669 = shalt.err (!%p10666_p11)
}
  0x57   :  { %s10803_s7 = smov 1024   ;;  %s10804_s29 = smov [#allocation7]  }
  0x58   :  { %31 = dma.hbm_to_vmem [thread:$0]  %s11170_s0, 2048, %s26_s30, [#allocation3], %s10803_s7, %s10803_s7, %s10801_s26  }
  0x59   :  { %s50_s11 = sshll.u32 %s10804_s29, 4  ;;  %s10805_s12 = smov [#allocation10]   ;;  %s51_s11 = int_to_ptr.vmem [resolvable:$true] %s50_s11 }
  0x5a   :  { %s72_s13 = sshll.u32 %s10805_s12, 4  ;;  %s10670_s14 = scalar_lea.hbm %s11172_s2, 128  ;;  %s73_s13 = int_to_ptr.vmem [resolvable:$true] %s72_s13 }
  0x5b   :  { %p10671_p12 = scmp.ne.s32.totalorder %s11172_s2, %s10670_s14  ;;  %p10674_p13 = scmp.lt.u32.totalorder %s10670_s14, %s11172_s2 }
  0x5d   :  { %p10676_p0 = pnand %p10674_p13, %p10671_p12 }
  0x5f   :  { %10679 = shalt.err (!%p10676_p0)
}
  0x60   :  { %s10680_s0 = scalar_lea.vmem %s51_s11, 128  ;;  %p10685_p2 = scmp.lt.s32.totalorder %s51_s11, %s51_s11 }
  0x61   :  { %p10681_p1 = scmp.ne.s32.totalorder %s51_s11, %s10680_s0  ;;  %p10686_p3 = scmp.lt.s32.totalorder %s10680_s0, %s10680_s0 }
  0x63   :  { %p10687_p4 = por %p10686_p3, %p10685_p2 }
  0x65   :  { %p10688_p5 = pnand %p10687_p4, %p10681_p1 }
  0x67   :  { %10691 = shalt.err (!%p10688_p5)
}
  0x68   :  { %53 = dma.hbm_to_vmem [thread:$0]  %s11172_s2, 128, %s51_s11, [#allocation6]  }
  0x69   :  { %s10692_s25 = scalar_lea.hbm %s11174_s4, 128 }
  0x6a   :  { %p10693_p6 = scmp.ne.s32.totalorder %s11174_s4, %s10692_s25  ;;  %p10696_p7 = scmp.lt.u32.totalorder %s10692_s25, %s11174_s4 }
  0x6c   :  { %p10698_p8 = pnand %p10696_p7, %p10693_p6 }
  0x6e   :  { %10701 = shalt.err (!%p10698_p8)
}
  0x6f   :  { %s10702_s7 = scalar_lea.vmem %s73_s13, 128  ;;  %p10707_p10 = scmp.lt.s32.totalorder %s73_s13, %s73_s13 }
  0x70   :  { %p10703_p9 = scmp.ne.s32.totalorder %s73_s13, %s10702_s7  ;;  %p10708_p11 = scmp.lt.s32.totalorder %s10702_s7, %s10702_s7 }
  0x72   :  { %p10709_p12 = por %p10708_p11, %p10707_p10 }
  0x74   :  { %p10710_p13 = pnand %p10709_p12, %p10703_p9 }
  0x76   :  { %10713 = shalt.err (!%p10710_p13)
}
  0x77   :  { %75 = dma.hbm_to_vmem [thread:$0]  %s11174_s4, 128, %s73_s13, [#allocation9]  }
  0x78   :  { %s10806_s28 = smov [#allocation13]   ;;  %s10807_s11 = smov [#allocation16]  }
  0x79   :  { %s94_s29 = sshll.u32 %s10806_s28, 4  ;;  %s116_s12 = sshll.u32 %s10807_s11, 4  ;;  %s95_s29 = int_to_ptr.vmem [resolvable:$true] %s94_s29  ;;  %s117_s12 = int_to_ptr.vmem [resolvable:$true] %s116_s12 }
  0x7a   :  { %s10714_s14 = scalar_lea.hbm %s11176_s6, 32 }
  0x7b   :  { %p10715_p0 = scmp.ne.s32.totalorder %s11176_s6, %s10714_s14  ;;  %p10718_p1 = scmp.lt.u32.totalorder %s10714_s14, %s11176_s6 }
  0x7d   :  { %p10720_p2 = pnand %p10718_p1, %p10715_p0 }
  0x7f   :  { %10723 = shalt.err (!%p10720_p2)
}
  0x80   :  { %s10724_s4 = scalar_lea.vmem %s95_s29, 32  ;;  %p10729_p4 = scmp.lt.s32.totalorder %s95_s29, %s95_s29 }
  0x81   :  { %p10725_p3 = scmp.ne.s32.totalorder %s95_s29, %s10724_s4  ;;  %p10730_p5 = scmp.lt.s32.totalorder %s10724_s4, %s10724_s4 }
  0x83   :  { %p10731_p6 = por %p10730_p5, %p10729_p4 }
  0x85   :  { %p10732_p7 = pnand %p10731_p6, %p10725_p3 }
  0x87   :  { %10735 = shalt.err (!%p10732_p7)
}
  0x88   :  { %97 = dma.hbm_to_vmem [thread:$0]  %s11176_s6, 32, %s95_s29, [#allocation12]  }
  0x89   :  { %s10736_s22 = scalar_lea.hbm %s11178_s8, 16 }
  0x8a   :  { %p10737_p8 = scmp.ne.s32.totalorder %s11178_s8, %s10736_s22  ;;  %p10740_p9 = scmp.lt.u32.totalorder %s10736_s22, %s11178_s8 }
  0x8c   :  { %p10742_p10 = pnand %p10740_p9, %p10737_p8 }
  0x8e   :  { %10745 = shalt.err (!%p10742_p10)
}
  0x8f   :  { %s10746_s20 = scalar_lea.vmem %s117_s12, 16  ;;  %s10750_s24 = scalar_lea.vmem %s117_s12, 32 }
  0x90   :  { %p10747_p11 = scmp.ne.s32.totalorder %s117_s12, %s10746_s20  ;;  %p10751_p12 = scmp.lt.s32.totalorder %s117_s12, %s117_s12 }
  0x91   :  { %p10752_p13 = scmp.lt.s32.totalorder %s10750_s24, %s10746_s20 }
  0x93   :  { %p10753_p0 = por %p10752_p13, %p10751_p12 }
  0x95   :  { %p10754_p1 = pnand %p10753_p0, %p10747_p11 }
  0x97   :  { %10757 = shalt.err (!%p10754_p1)
}
  0x98   :  { %119 = dma.hbm_to_vmem [thread:$0]  %s11178_s8, 16, %s117_s12, [#allocation15]  }
  0x99   :  { %10780 = dma.done.wait [#allocation3], 2048  }
  0x9a   :  { %10781 = vsyncadd [#allocation3], 4294965248 }
  0x9b   :  { %10782 = dma.done.wait [#allocation6], 65664  }
  0x9c   :  { %10783 = vsyncadd [#allocation6], 4294901632 }
  0x9d   :  { %10784 = dma.done.wait [#allocation9], 65664  }
  0x9e   :  { %10785 = vsyncadd [#allocation9], 4294901632 }
  0x9f   :  { %10786 = dma.done.wait [#allocation12], 16416  }
  0xa0   :  { %10787 = vsyncadd [#allocation12], 4294950880 }
  0xa1   :  { %10788 = dma.done.wait [#allocation15], 2064  }
  0xa2   :  { %10789 = vsyncadd [#allocation15], 4294965232  ;;  %v172_v0 = vld [vmem:[#allocation5] sm:$0xff]  ;;  %v149_v53 = vld [vmem:[#allocation2 + $0x8] sm:$0xff]  ;;  %s10808_s8 = smov [#allocation17]  }
  0xa3   :  { %v176_v1 = vld [vmem:[#allocation5 + $0x20] sm:$0xff]  ;;  %v157_v54 = vld [vmem:[#allocation2 + $0x48] sm:$0xff]  ;;  %s8973_s2 = sshll.u32 %s10808_s8, 4  ;;  %s8974_s2 = int_to_ptr.vmem [resolvable:$true] %s8973_s2 }
  0xa4   :  { %v428_v2 = vld [vmem:[#allocation5 + $0x800] sm:$0xff]  ;;  %v8990_v3 = vcombine.high %v172_v0, %v176_v1  ;;  %v8989_v5 = vcombine.low %v172_v0, %v176_v1  ;;  %v10971_v58 = vpack.c.bf16 %v157_v54, %v149_v53  ;;  %v153_v59 = vld [vmem:[#allocation2 + $0x28] sm:$0xff]  ;;  %s10758_s27 = scalar_lea.vmem %s8974_s2, 128  ;;  %p10763_p3 = scmp.lt.s32.totalorder %s8974_s2, %s8974_s2 }
  0xa5   :  { %v432_v4 = vld [vmem:[#allocation5 + $0x820] sm:$0xff]  ;;  %v161_v62 = vld [vmem:[#allocation2 + $0x68] sm:$0xff]  ;;  %p10759_p2 = scmp.ne.s32.totalorder %s8974_s2, %s10758_s27  ;;  %p10764_p4 = scmp.lt.s32.totalorder %s10758_s27, %s10758_s27 }
  0xa6   :  { %v180_v6 = vld [vmem:[#allocation5 + $0x40] sm:$0xff]  ;;  %v9246_v8 = vcombine.high %v428_v2, %v432_v4  ;;  %v9245_v9 = vcombine.low %v428_v2, %v432_v4  ;;  %3286 = vmatprep.subr.bf16.mxu1 %v8990_v3  ;;  %3318 = vmatprep.mubr.bf16.mxu1 %v10971_v58  ;;  %v10974_v0 = vpack.c.bf16 %v161_v62, %v153_v59 }
  0xa7   :  { %v184_v7 = vld [vmem:[#allocation5 + $0x60] sm:$0xff]  ;;  %3287 = vmatpush1.bf16.msra.mxu1 %v8989_v5  ;;  %p10765_p5 = por %p10764_p4, %p10763_p3 }
  0xa8   :  { %v8998_v10 = vcombine.high %v180_v6, %v184_v7  ;;  %v436_v11 = vld [vmem:[#allocation5 + $0x840] sm:$0xff]  ;;  %3372 = vmatprep.subr.bf16.mxu0 %v9246_v8  ;;  %v8997_v18 = vcombine.low %v180_v6, %v184_v7  ;;  %3404 = vmatprep.mubr.bf16.mxu0 %v10974_v0 }
  0xa9   :  { %v440_v12 = vld [vmem:[#allocation5 + $0x860] sm:$0xff]  ;;  %3373 = vmatpush1.bf16.msra.mxu0 %v9245_v9  ;;  %p10766_p6 = pnand %p10765_p5, %p10759_p2 }
  0xaa   :  { %v188_v13 = vld [vmem:[#allocation5 + $0x80] sm:$0xff]  ;;  %v9254_v14 = vcombine.high %v436_v11, %v440_v12  ;;  %3288 = vmatprep.subr.bf16.mxu1 %v8998_v10  ;;  %v9253_v19 = vcombine.low %v436_v11, %v440_v12 }
  0xab   :  { %v192_v15 = vld [vmem:[#allocation5 + $0xa0] sm:$0xff]  ;;  %3289 = vmatpush1.bf16.msra.mxu1 %v8997_v18 }
  0xac   :  { %v444_v16 = vld [vmem:[#allocation5 + $0x880] sm:$0xff]  ;;  %v9006_v20 = vcombine.high %v188_v13, %v192_v15  ;;  %3374 = vmatprep.subr.bf16.mxu0 %v9254_v14  ;;  %v9005_v26 = vcombine.low %v188_v13, %v192_v15 }
  0xad   :  { %v448_v17 = vld [vmem:[#allocation5 + $0x8a0] sm:$0xff]  ;;  %3375 = vmatpush1.bf16.msra.mxu0 %v9253_v19 }
  0xae   :  { %v9262_v21 = vcombine.high %v444_v16, %v448_v17  ;;  %v196_v22 = vld [vmem:[#allocation5 + $0xc0] sm:$0xff]  ;;  %3290 = vmatprep.subr.bf16.mxu1 %v9006_v20  ;;  %v9261_v27 = vcombine.low %v444_v16, %v448_v17 }
  0xaf   :  { %v200_v23 = vld [vmem:[#allocation5 + $0xe0] sm:$0xff]  ;;  %3291 = vmatpush1.bf16.msra.mxu1 %v9005_v26 }
  0xb0   :  { %v452_v24 = vld [vmem:[#allocation5 + $0x8c0] sm:$0xff]  ;;  %v9014_v28 = vcombine.high %v196_v22, %v200_v23  ;;  %3376 = vmatprep.subr.bf16.mxu0 %v9262_v21  ;;  %v9013_v34 = vcombine.low %v196_v22, %v200_v23 }
  0xb1   :  { %v456_v25 = vld [vmem:[#allocation5 + $0x8e0] sm:$0xff]  ;;  %3377 = vmatpush1.bf16.msra.mxu0 %v9261_v27 }
  0xb2   :  { %v9270_v29 = vcombine.high %v452_v24, %v456_v25  ;;  %v204_v30 = vld [vmem:[#allocation5 + $0x100] sm:$0xff]  ;;  %3292 = vmatprep.subr.bf16.mxu1 %v9014_v28  ;;  %v9269_v35 = vcombine.low %v452_v24, %v456_v25 }
  0xb3   :  { %v208_v31 = vld [vmem:[#allocation5 + $0x120] sm:$0xff]  ;;  %3293 = vmatpush1.bf16.msra.mxu1 %v9013_v34 }
  0xb4   :  { %v460_v32 = vld [vmem:[#allocation5 + $0x900] sm:$0xff]  ;;  %v9022_v36 = vcombine.high %v204_v30, %v208_v31  ;;  %3378 = vmatprep.subr.bf16.mxu0 %v9270_v29  ;;  %v9021_v42 = vcombine.low %v204_v30, %v208_v31 }
  0xb5   :  { %v464_v33 = vld [vmem:[#allocation5 + $0x920] sm:$0xff]  ;;  %3379 = vmatpush1.bf16.msra.mxu0 %v9269_v35 }
  0xb6   :  { %v9278_v37 = vcombine.high %v460_v32, %v464_v33  ;;  %v212_v38 = vld [vmem:[#allocation5 + $0x140] sm:$0xff]  ;;  %3294 = vmatprep.subr.bf16.mxu1 %v9022_v36  ;;  %v9277_v43 = vcombine.low %v460_v32, %v464_v33 }
  0xb7   :  { %v216_v39 = vld [vmem:[#allocation5 + $0x160] sm:$0xff]  ;;  %3295 = vmatpush1.bf16.msra.mxu1 %v9021_v42 }
  0xb8   :  { %v468_v40 = vld [vmem:[#allocation5 + $0x940] sm:$0xff]  ;;  %v9030_v44 = vcombine.high %v212_v38, %v216_v39  ;;  %3380 = vmatprep.subr.bf16.mxu0 %v9278_v37  ;;  %v9029_v50 = vcombine.low %v212_v38, %v216_v39 }
  0xb9   :  { %v472_v41 = vld [vmem:[#allocation5 + $0x960] sm:$0xff]  ;;  %3381 = vmatpush1.bf16.msra.mxu0 %v9277_v43 }
  0xba   :  { %v9286_v45 = vcombine.high %v468_v40, %v472_v41  ;;  %v220_v46 = vld [vmem:[#allocation5 + $0x180] sm:$0xff]  ;;  %3296 = vmatprep.subr.bf16.mxu1 %v9030_v44  ;;  %v9285_v51 = vcombine.low %v468_v40, %v472_v41 }
  0xbb   :  { %v224_v47 = vld [vmem:[#allocation5 + $0x1a0] sm:$0xff]  ;;  %3297 = vmatpush1.bf16.msra.mxu1 %v9029_v50 }
  0xbc   :  { %v476_v48 = vld [vmem:[#allocation5 + $0x980] sm:$0xff]  ;;  %v9038_v52 = vcombine.high %v220_v46, %v224_v47  ;;  %3382 = vmatprep.subr.bf16.mxu0 %v9286_v45  ;;  %v9037_v63 = vcombine.low %v220_v46, %v224_v47 }
  0xbd   :  { %v480_v49 = vld [vmem:[#allocation5 + $0x9a0] sm:$0xff]  ;;  %3383 = vmatpush1.bf16.msra.mxu0 %v9285_v51 }
  0xbe   :  { %v9294_v55 = vcombine.high %v476_v48, %v480_v49  ;;  %v228_v56 = vld [vmem:[#allocation5 + $0x1c0] sm:$0xff]  ;;  %3298 = vmatprep.subr.bf16.mxu1 %v9038_v52  ;;  %v9293_v1 = vcombine.low %v476_v48, %v480_v49 }
  0xbf   :  { %v232_v57 = vld [vmem:[#allocation5 + $0x1e0] sm:$0xff]  ;;  %3299 = vmatpush1.bf16.msra.mxu1 %v9037_v63 }
  0xc0   :  { %v484_v60 = vld [vmem:[#allocation5 + $0x9c0] sm:$0xff]  ;;  %v9046_v2 = vcombine.high %v228_v56, %v232_v57  ;;  %3384 = vmatprep.subr.bf16.mxu0 %v9294_v55  ;;  %v9045_v8 = vcombine.low %v228_v56, %v232_v57 }
  0xc1   :  { %v488_v61 = vld [vmem:[#allocation5 + $0x9e0] sm:$0xff]  ;;  %3385 = vmatpush1.bf16.msra.mxu0 %v9293_v1 }
  0xc2   :  { %v9302_v3 = vcombine.high %v484_v60, %v488_v61  ;;  %v236_v4 = vld [vmem:[#allocation5 + $0x200] sm:$0xff]  ;;  %3300 = vmatprep.subr.bf16.mxu1 %v9046_v2  ;;  %v9301_v9 = vcombine.low %v484_v60, %v488_v61 }
  0xc3   :  { %v240_v5 = vld [vmem:[#allocation5 + $0x220] sm:$0xff]  ;;  %3301 = vmatpush1.bf16.msra.mxu1 %v9045_v8 }
  0xc4   :  { %v492_v6 = vld [vmem:[#allocation5 + $0xa00] sm:$0xff]  ;;  %v9054_v10 = vcombine.high %v236_v4, %v240_v5  ;;  %3386 = vmatprep.subr.bf16.mxu0 %v9302_v3  ;;  %v9053_v16 = vcombine.low %v236_v4, %v240_v5 }
  0xc5   :  { %v496_v7 = vld [vmem:[#allocation5 + $0xa20] sm:$0xff]  ;;  %3387 = vmatpush1.bf16.msra.mxu0 %v9301_v9 }
  0xc6   :  { %v9310_v11 = vcombine.high %v492_v6, %v496_v7  ;;  %v244_v12 = vld [vmem:[#allocation5 + $0x240] sm:$0xff]  ;;  %3302 = vmatprep.subr.bf16.mxu1 %v9054_v10  ;;  %v9309_v17 = vcombine.low %v492_v6, %v496_v7 }
  0xc7   :  { %v248_v13 = vld [vmem:[#allocation5 + $0x260] sm:$0xff]  ;;  %3303 = vmatpush1.bf16.msra.mxu1 %v9053_v16 }
  0xc8   :  { %v500_v14 = vld [vmem:[#allocation5 + $0xa40] sm:$0xff]  ;;  %v9062_v18 = vcombine.high %v244_v12, %v248_v13  ;;  %3388 = vmatprep.subr.bf16.mxu0 %v9310_v11  ;;  %v9061_v24 = vcombine.low %v244_v12, %v248_v13 }
  0xc9   :  { %v504_v15 = vld [vmem:[#allocation5 + $0xa60] sm:$0xff]  ;;  %3389 = vmatpush1.bf16.msra.mxu0 %v9309_v17 }
  0xca   :  { %v9318_v19 = vcombine.high %v500_v14, %v504_v15  ;;  %v252_v20 = vld [vmem:[#allocation5 + $0x280] sm:$0xff]  ;;  %3304 = vmatprep.subr.bf16.mxu1 %v9062_v18  ;;  %v9317_v25 = vcombine.low %v500_v14, %v504_v15 }
  0xcb   :  { %v256_v21 = vld [vmem:[#allocation5 + $0x2a0] sm:$0xff]  ;;  %3305 = vmatpush1.bf16.msra.mxu1 %v9061_v24  ;;  %v159_v24 = vld [vmem:[#allocation2 + $0x58] sm:$0xff] }
  0xcc   :  { %v508_v22 = vld [vmem:[#allocation5 + $0xa80] sm:$0xff]  ;;  %v9070_v26 = vcombine.high %v252_v20, %v256_v21  ;;  %3390 = vmatprep.subr.bf16.mxu0 %v9318_v19  ;;  %v9069_v32 = vcombine.low %v252_v20, %v256_v21 }
  0xcd   :  { %v512_v23 = vld [vmem:[#allocation5 + $0xaa0] sm:$0xff]  ;;  %3391 = vmatpush1.bf16.msra.mxu0 %v9317_v25 }
  0xce   :  { %v9326_v27 = vcombine.high %v508_v22, %v512_v23  ;;  %v260_v28 = vld [vmem:[#allocation5 + $0x2c0] sm:$0xff]  ;;  %3306 = vmatprep.subr.bf16.mxu1 %v9070_v26  ;;  %v9325_v33 = vcombine.low %v508_v22, %v512_v23  ;;  %v151_v23 = vld [vmem:[#allocation2 + $0x18] sm:$0xff] }
  0xcf   :  { %v264_v29 = vld [vmem:[#allocation5 + $0x2e0] sm:$0xff]  ;;  %3307 = vmatpush1.bf16.msra.mxu1 %v9069_v32 }
  0xd0   :  { %v516_v30 = vld [vmem:[#allocation5 + $0xac0] sm:$0xff]  ;;  %v9078_v34 = vcombine.high %v260_v28, %v264_v29  ;;  %3392 = vmatprep.subr.bf16.mxu0 %v9326_v27  ;;  %v9077_v40 = vcombine.low %v260_v28, %v264_v29  ;;  %v155_v27 = vld [vmem:[#allocation2 + $0x38] sm:$0xff] }
  0xd1   :  { %v520_v31 = vld [vmem:[#allocation5 + $0xae0] sm:$0xff]  ;;  %3393 = vmatpush1.bf16.msra.mxu0 %v9325_v33  ;;  %v163_v28 = vld [vmem:[#allocation2 + $0x78] sm:$0xff] }
  0xd2   :  { %v9334_v35 = vcombine.high %v516_v30, %v520_v31  ;;  %v268_v36 = vld [vmem:[#allocation5 + $0x300] sm:$0xff]  ;;  %3308 = vmatprep.subr.bf16.mxu1 %v9078_v34  ;;  %v9333_v41 = vcombine.low %v516_v30, %v520_v31  ;;  %v10981_v34 = vpack.c.bf16 %v159_v24, %v151_v23 }
  0xd3   :  { %v272_v37 = vld [vmem:[#allocation5 + $0x320] sm:$0xff]  ;;  %3309 = vmatpush1.bf16.msra.mxu1 %v9077_v40 }
  0xd4   :  { %v524_v38 = vld [vmem:[#allocation5 + $0xb00] sm:$0xff]  ;;  %v9086_v42 = vcombine.high %v268_v36, %v272_v37  ;;  %3394 = vmatprep.subr.bf16.mxu0 %v9334_v35  ;;  %v9085_v48 = vcombine.low %v268_v36, %v272_v37  ;;  %v10984_v37 = vpack.c.bf16 %v163_v28, %v155_v27 }
  0xd5   :  { %v528_v39 = vld [vmem:[#allocation5 + $0xb20] sm:$0xff]  ;;  %3395 = vmatpush1.bf16.msra.mxu0 %v9333_v41 }
  0xd6   :  { %v9342_v43 = vcombine.high %v524_v38, %v528_v39  ;;  %v276_v44 = vld [vmem:[#allocation5 + $0x340] sm:$0xff]  ;;  %3310 = vmatprep.subr.bf16.mxu1 %v9086_v42  ;;  %v9341_v49 = vcombine.low %v524_v38, %v528_v39 }
  0xd7   :  { %v280_v45 = vld [vmem:[#allocation5 + $0x360] sm:$0xff]  ;;  %3311 = vmatpush1.bf16.msra.mxu1 %v9085_v48 }
  0xd8   :  { %v532_v46 = vld [vmem:[#allocation5 + $0xb40] sm:$0xff]  ;;  %v9094_v50 = vcombine.high %v276_v44, %v280_v45  ;;  %3396 = vmatprep.subr.bf16.mxu0 %v9342_v43  ;;  %v9093_v56 = vcombine.low %v276_v44, %v280_v45 }
  0xd9   :  { %v536_v47 = vld [vmem:[#allocation5 + $0xb60] sm:$0xff]  ;;  %3397 = vmatpush1.bf16.msra.mxu0 %v9341_v49 }
  0xda   :  { %v9350_v51 = vcombine.high %v532_v46, %v536_v47  ;;  %v284_v52 = vld [vmem:[#allocation5 + $0x380] sm:$0xff]  ;;  %3312 = vmatprep.subr.bf16.mxu1 %v9094_v50  ;;  %v9349_v57 = vcombine.low %v532_v46, %v536_v47 }
  0xdb   :  { %v288_v53 = vld [vmem:[#allocation5 + $0x3a0] sm:$0xff]  ;;  %3313 = vmatpush1.bf16.msra.mxu1 %v9093_v56 }
  0xdc   :  { %v540_v54 = vld [vmem:[#allocation5 + $0xb80] sm:$0xff]  ;;  %v9102_v59 = vcombine.high %v284_v52, %v288_v53  ;;  %3398 = vmatprep.subr.bf16.mxu0 %v9350_v51  ;;  %v9101_v2 = vcombine.low %v284_v52, %v288_v53 }
  0xdd   :  { %v544_v55 = vld [vmem:[#allocation5 + $0xba0] sm:$0xff]  ;;  %3399 = vmatpush1.bf16.msra.mxu0 %v9349_v57 }
  0xde   :  { %v9358_v60 = vcombine.high %v540_v54, %v544_v55  ;;  %v292_v61 = vld [vmem:[#allocation5 + $0x3c0] sm:$0xff]  ;;  %3314 = vmatprep.subr.bf16.mxu1 %v9102_v59  ;;  %v9357_v3 = vcombine.low %v540_v54, %v544_v55 }
  0xdf   :  { %v296_v62 = vld [vmem:[#allocation5 + $0x3e0] sm:$0xff]  ;;  %3315 = vmatpush1.bf16.msra.mxu1 %v9101_v2 }
  0xe0   :  { %v548_v63 = vld [vmem:[#allocation5 + $0xbc0] sm:$0xff]  ;;  %v9110_v4 = vcombine.high %v292_v61, %v296_v62  ;;  %3400 = vmatprep.subr.bf16.mxu0 %v9358_v60  ;;  %v9109_v10 = vcombine.low %v292_v61, %v296_v62 }
  0xe1   :  { %v552_v1 = vld [vmem:[#allocation5 + $0xbe0] sm:$0xff]  ;;  %3401 = vmatpush1.bf16.msra.mxu0 %v9357_v3 }
  0xe2   :  { %v9366_v5 = vcombine.high %v548_v63, %v552_v1  ;;  %v300_v6 = vld [vmem:[#allocation5 + $0x400] sm:$0xff]  ;;  %3316 = vmatprep.subr.bf16.mxu1 %v9110_v4  ;;  %v9365_v13 = vcombine.low %v548_v63, %v552_v1 }
  0xe3   :  { %v304_v7 = vld [vmem:[#allocation5 + $0x420] sm:$0xff]  ;;  %3317 = vmatpush1.bf16.msra.mxu1 %v9109_v10 }
  0xe4   :  { %v556_v8 = vld [vmem:[#allocation5 + $0xc00] sm:$0xff]  ;;  %v9118_v14 = vcombine.high %v300_v6, %v304_v7  ;;  %3402 = vmatprep.subr.bf16.mxu0 %v9366_v5  ;;  %v9117_v25 = vcombine.low %v300_v6, %v304_v7 }
  0xe5   :  { %v560_v9 = vld [vmem:[#allocation5 + $0xc20] sm:$0xff]  ;;  %3403 = vmatpush1.bf16.msra.mxu0 %v9365_v13 }
  0xe6   :  { %v148_v11 = vld [vmem:[#allocation2] sm:$0xff]  ;;  %v9374_v17 = vcombine.high %v556_v8, %v560_v9  ;;  %3329 = vmatprep.subr.bf16.mxu1 %v9118_v14  ;;  %v9373_v29 = vcombine.low %v556_v8, %v560_v9 }
  0xe7   :  { %v156_v12 = vld [vmem:[#allocation2 + $0x40] sm:$0xff] }
  0xe8   :  { %v152_v15 = vld [vmem:[#allocation2 + $0x20] sm:$0xff]  ;;  %v10977_v21 = vpack.c.bf16 %v156_v12, %v148_v11  ;;  %3415 = vmatprep.subr.bf16.mxu0 %v9374_v17 }
  0xe9   :  { %v160_v16 = vld [vmem:[#allocation2 + $0x60] sm:$0xff] }
  0xea   :  { %v308_v18 = vld [vmem:[#allocation5 + $0x440] sm:$0xff]  ;;  %v10979_v26 = vpack.c.bf16 %v160_v16, %v152_v15  ;;  %3319 = vmatmul.mubr.bf16.vlgmr.msra.gmra.mrb[0].mxu1 %v10977_v21 }
  0xeb   :  { %v312_v19 = vld [vmem:[#allocation5 + $0x460] sm:$0xff]  ;;  %3330 = vmatpush1.bf16.msra.mxu1 %v9117_v25  ;;  %3361 = vmatprep.mubr.bf16.mxu1 %v10981_v34 }
  0xec   :  { %v564_v20 = vld [vmem:[#allocation5 + $0xc40] sm:$0xff]  ;;  %v9126_v30 = vcombine.high %v308_v18, %v312_v19  ;;  %3405 = vmatmul.mubr.bf16.vlgmr.msra.gmra.mrb[0].mxu0 %v10979_v26  ;;  %v9125_v38 = vcombine.low %v308_v18, %v312_v19 }
  0xed   :  { %v568_v22 = vld [vmem:[#allocation5 + $0xc60] sm:$0xff]  ;;  %3416 = vmatpush1.bf16.msra.mxu0 %v9373_v29  ;;  %3447 = vmatprep.mubr.bf16.mxu0 %v10984_v37 }
  0xee   :  { %v9382_v31 = vcombine.high %v564_v20, %v568_v22  ;;  %v316_v32 = vld [vmem:[#allocation5 + $0x480] sm:$0xff]  ;;  %3331 = vmatprep.subr.bf16.mxu1 %v9126_v30  ;;  %v9381_v39 = vcombine.low %v564_v20, %v568_v22 }
  0xef   :  { %v320_v33 = vld [vmem:[#allocation5 + $0x4a0] sm:$0xff]  ;;  %3332 = vmatpush1.bf16.msra.mxu1 %v9125_v38 }
  0xf0   :  { %v572_v35 = vld [vmem:[#allocation5 + $0xc80] sm:$0xff]  ;;  %v9134_v40 = vcombine.high %v316_v32, %v320_v33  ;;  %3417 = vmatprep.subr.bf16.mxu0 %v9382_v31  ;;  %v9133_v46 = vcombine.low %v316_v32, %v320_v33 }
  0xf1   :  { %v576_v36 = vld [vmem:[#allocation5 + $0xca0] sm:$0xff]  ;;  %3418 = vmatpush1.bf16.msra.mxu0 %v9381_v39 }
  0xf2   :  { %v9390_v41 = vcombine.high %v572_v35, %v576_v36  ;;  %v324_v42 = vld [vmem:[#allocation5 + $0x4c0] sm:$0xff]  ;;  %3333 = vmatprep.subr.bf16.mxu1 %v9134_v40  ;;  %v9389_v47 = vcombine.low %v572_v35, %v576_v36 }
  0xf3   :  { %v328_v43 = vld [vmem:[#allocation5 + $0x4e0] sm:$0xff]  ;;  %3334 = vmatpush1.bf16.msra.mxu1 %v9133_v46 }
  0xf4   :  { %v580_v44 = vld [vmem:[#allocation5 + $0xcc0] sm:$0xff]  ;;  %v9142_v48 = vcombine.high %v324_v42, %v328_v43  ;;  %3419 = vmatprep.subr.bf16.mxu0 %v9390_v41  ;;  %v9141_v54 = vcombine.low %v324_v42, %v328_v43 }
  0xf5   :  { %v584_v45 = vld [vmem:[#allocation5 + $0xce0] sm:$0xff]  ;;  %3420 = vmatpush1.bf16.msra.mxu0 %v9389_v47 }
  0xf6   :  { %v332_v49 = vld [vmem:[#allocation5 + $0x500] sm:$0xff]  ;;  %v9398_v52 = vcombine.high %v580_v44, %v584_v45  ;;  %3335 = vmatprep.subr.bf16.mxu1 %v9142_v48  ;;  %v9397_v55 = vcombine.low %v580_v44, %v584_v45 }
  0xf7   :  { %v336_v50 = vld [vmem:[#allocation5 + $0x520] sm:$0xff]  ;;  %3336 = vmatpush1.bf16.msra.mxu1 %v9141_v54 }
  0xf8   :  { %v588_v51 = vld [vmem:[#allocation5 + $0xd00] sm:$0xff]  ;;  %v9150_v56 = vcombine.high %v332_v49, %v336_v50  ;;  %3421 = vmatprep.subr.bf16.mxu0 %v9398_v52  ;;  %v9149_v63 = vcombine.low %v332_v49, %v336_v50 }
  0xf9   :  { %v592_v53 = vld [vmem:[#allocation5 + $0xd20] sm:$0xff]  ;;  %3422 = vmatpush1.bf16.msra.mxu0 %v9397_v55 }
  0xfa   :  { %v340_v57 = vld [vmem:[#allocation5 + $0x540] sm:$0xff]  ;;  %v9406_v61 = vcombine.high %v588_v51, %v592_v53  ;;  %3337 = vmatprep.subr.bf16.mxu1 %v9150_v56  ;;  %v9405_v1 = vcombine.low %v588_v51, %v592_v53 }
  0xfb   :  { %v344_v59 = vld [vmem:[#allocation5 + $0x560] sm:$0xff]  ;;  %3338 = vmatpush1.bf16.msra.mxu1 %v9149_v63 }
  0xfc   :  { %v596_v60 = vld [vmem:[#allocation5 + $0xd40] sm:$0xff]  ;;  %v9158_v2 = vcombine.high %v340_v57, %v344_v59  ;;  %3423 = vmatprep.subr.bf16.mxu0 %v9406_v61  ;;  %v9157_v8 = vcombine.low %v340_v57, %v344_v59 }
  0xfd   :  { %v600_v62 = vld [vmem:[#allocation5 + $0xd60] sm:$0xff]  ;;  %3424 = vmatpush1.bf16.msra.mxu0 %v9405_v1 }
  0xfe   :  { %v348_v3 = vld [vmem:[#allocation5 + $0x580] sm:$0xff]  ;;  %v9414_v6 = vcombine.high %v596_v60, %v600_v62  ;;  %3339 = vmatprep.subr.bf16.mxu1 %v9158_v2  ;;  %v9413_v9 = vcombine.low %v596_v60, %v600_v62 }
  0xff   :  { %v352_v4 = vld [vmem:[#allocation5 + $0x5a0] sm:$0xff]  ;;  %3340 = vmatpush1.bf16.msra.mxu1 %v9157_v8 }
 0x100   :  { %v604_v5 = vld [vmem:[#allocation5 + $0xd80] sm:$0xff]  ;;  %v9166_v10 = vcombine.high %v348_v3, %v352_v4  ;;  %3425 = vmatprep.subr.bf16.mxu0 %v9414_v6  ;;  %v9165_v16 = vcombine.low %v348_v3, %v352_v4 }
 0x101   :  { %v608_v7 = vld [vmem:[#allocation5 + $0xda0] sm:$0xff]  ;;  %3426 = vmatpush1.bf16.msra.mxu0 %v9413_v9 }
 0x102   :  { %v356_v11 = vld [vmem:[#allocation5 + $0x5c0] sm:$0xff]  ;;  %v9422_v14 = vcombine.high %v604_v5, %v608_v7  ;;  %3341 = vmatprep.subr.bf16.mxu1 %v9166_v10  ;;  %v9421_v17 = vcombine.low %v604_v5, %v608_v7 }
 0x103   :  { %v360_v12 = vld [vmem:[#allocation5 + $0x5e0] sm:$0xff]  ;;  %3342 = vmatpush1.bf16.msra.mxu1 %v9165_v16 }
 0x104   :  { %v612_v13 = vld [vmem:[#allocation5 + $0xdc0] sm:$0xff]  ;;  %v9174_v18 = vcombine.high %v356_v11, %v360_v12  ;;  %3427 = vmatprep.subr.bf16.mxu0 %v9422_v14  ;;  %v9173_v25 = vcombine.low %v356_v11, %v360_v12 }
 0x105   :  { %v616_v15 = vld [vmem:[#allocation5 + $0xde0] sm:$0xff]  ;;  %3428 = vmatpush1.bf16.msra.mxu0 %v9421_v17 }
 0x106   :  { %v364_v19 = vld [vmem:[#allocation5 + $0x600] sm:$0xff]  ;;  %v9430_v23 = vcombine.high %v612_v13, %v616_v15  ;;  %3343 = vmatprep.subr.bf16.mxu1 %v9174_v18  ;;  %v9429_v27 = vcombine.low %v612_v13, %v616_v15 }
 0x107   :  { %v368_v20 = vld [vmem:[#allocation5 + $0x620] sm:$0xff]  ;;  %3344 = vmatpush1.bf16.msra.mxu1 %v9173_v25 }
 0x108   :  { %v620_v22 = vld [vmem:[#allocation5 + $0xe00] sm:$0xff]  ;;  %v9182_v28 = vcombine.high %v364_v19, %v368_v20  ;;  %3429 = vmatprep.subr.bf16.mxu0 %v9430_v23  ;;  %v9181_v35 = vcombine.low %v364_v19, %v368_v20 }
 0x109   :  { %v624_v24 = vld [vmem:[#allocation5 + $0xe20] sm:$0xff]  ;;  %3430 = vmatpush1.bf16.msra.mxu0 %v9429_v27  ;;  %v173_v27 = vld [vmem:[#allocation5 + $0x8] sm:$0xff] }
 0x10a   :  { %v372_v29 = vld [vmem:[#allocation5 + $0x640] sm:$0xff]  ;;  %v9438_v32 = vcombine.high %v620_v22, %v624_v24  ;;  %3345 = vmatprep.subr.bf16.mxu1 %v9182_v28  ;;  %v9437_v36 = vcombine.low %v620_v22, %v624_v24  ;;  %v177_v28 = vld [vmem:[#allocation5 + $0x28] sm:$0xff] }
 0x10b   :  { %v376_v30 = vld [vmem:[#allocation5 + $0x660] sm:$0xff]  ;;  %3346 = vmatpush1.bf16.msra.mxu1 %v9181_v35  ;;  %v154_v35 = vld [vmem:[#allocation2 + $0x30] sm:$0xff] }
 0x10c   :  { %v628_v31 = vld [vmem:[#allocation5 + $0xe40] sm:$0xff]  ;;  %v9190_v38 = vcombine.high %v372_v29, %v376_v30  ;;  %3431 = vmatprep.subr.bf16.mxu0 %v9438_v32  ;;  %v9189_v44 = vcombine.low %v372_v29, %v376_v30  ;;  %v174_v29 = vld [vmem:[#allocation5 + $0x10] sm:$0xff] }
 0x10d   :  { %v632_v33 = vld [vmem:[#allocation5 + $0xe60] sm:$0xff]  ;;  %3432 = vmatpush1.bf16.msra.mxu0 %v9437_v36  ;;  %v158_v32 = vld [vmem:[#allocation2 + $0x50] sm:$0xff] }
 0x10e   :  { %v380_v39 = vld [vmem:[#allocation5 + $0x680] sm:$0xff]  ;;  %v9446_v42 = vcombine.high %v628_v31, %v632_v33  ;;  %3347 = vmatprep.subr.bf16.mxu1 %v9190_v38  ;;  %v9445_v45 = vcombine.low %v628_v31, %v632_v33  ;;  %v150_v31 = vld [vmem:[#allocation2 + $0x10] sm:$0xff] }
 0x10f   :  { %v384_v40 = vld [vmem:[#allocation5 + $0x6a0] sm:$0xff]  ;;  %3348 = vmatpush1.bf16.msra.mxu1 %v9189_v44  ;;  %v178_v33 = vld [vmem:[#allocation5 + $0x30] sm:$0xff] }
 0x110   :  { %v636_v41 = vld [vmem:[#allocation5 + $0xe80] sm:$0xff]  ;;  %v9198_v46 = vcombine.high %v380_v39, %v384_v40  ;;  %3433 = vmatprep.subr.bf16.mxu0 %v9446_v42  ;;  %v9197_v52 = vcombine.low %v380_v39, %v384_v40  ;;  %v162_v36 = vld [vmem:[#allocation2 + $0x70] sm:$0xff]  ;;  %v8992_v40 = vcombine.high %v173_v27, %v177_v28  ;;  %v185_v42 = vld [vmem:[#allocation5 + $0x68] sm:$0xff]  ;;  %v8994_v44 = vcombine.high %v174_v29, %v178_v33 }
 0x111   :  { %v640_v43 = vld [vmem:[#allocation5 + $0xea0] sm:$0xff]  ;;  %3434 = vmatpush1.bf16.msra.mxu0 %v9445_v45  ;;  %v186_v45 = vld [vmem:[#allocation5 + $0x70] sm:$0xff] }
 0x112   :  { %v388_v47 = vld [vmem:[#allocation5 + $0x6c0] sm:$0xff]  ;;  %v9454_v50 = vcombine.high %v636_v41, %v640_v43  ;;  %3349 = vmatprep.subr.bf16.mxu1 %v9198_v46  ;;  %v9453_v53 = vcombine.low %v636_v41, %v640_v43  ;;  %v181_v41 = vld [vmem:[#allocation5 + $0x48] sm:$0xff]  ;;  %v182_v43 = vld [vmem:[#allocation5 + $0x50] sm:$0xff]  ;;  %v10989_v46 = vpack.c.bf16 %v158_v32, %v150_v31 }
 0x113   :  { %v392_v48 = vld [vmem:[#allocation5 + $0x6e0] sm:$0xff]  ;;  %3350 = vmatpush1.bf16.msra.mxu1 %v9197_v52  ;;  %v193_v52 = vld [vmem:[#allocation5 + $0xa8] sm:$0xff] }
 0x114   :  { %v644_v49 = vld [vmem:[#allocation5 + $0xec0] sm:$0xff]  ;;  %v9206_v54 = vcombine.high %v388_v47, %v392_v48  ;;  %3435 = vmatprep.subr.bf16.mxu0 %v9454_v50  ;;  %v9205_v61 = vcombine.low %v388_v47, %v392_v48  ;;  %v8991_v47 = vcombine.low %v173_v27, %v177_v28  ;;  %v10991_v48 = vpack.c.bf16 %v162_v36, %v154_v35  ;;  %v226_v27 = vld [vmem:[#allocation5 + $0x1b0] sm:$0xff]  ;;  %v229_v31 = vld [vmem:[#allocation5 + $0x1c8] sm:$0xff] }
 0x115   :  { %v648_v51 = vld [vmem:[#allocation5 + $0xee0] sm:$0xff]  ;;  %3436 = vmatpush1.bf16.msra.mxu0 %v9453_v53  ;;  %v9000_v50 = vcombine.high %v181_v41, %v185_v42  ;;  %v190_v53 = vld [vmem:[#allocation5 + $0x90] sm:$0xff]  ;;  %v233_v32 = vld [vmem:[#allocation5 + $0x1e8] sm:$0xff] }
 0x116   :  { %v396_v55 = vld [vmem:[#allocation5 + $0x700] sm:$0xff]  ;;  %v9462_v59 = vcombine.high %v644_v49, %v648_v51  ;;  %3351 = vmatprep.subr.bf16.mxu1 %v9206_v54  ;;  %v9461_v62 = vcombine.low %v644_v49, %v648_v51  ;;  %v8993_v49 = vcombine.low %v174_v29, %v178_v33  ;;  %v189_v51 = vld [vmem:[#allocation5 + $0x88] sm:$0xff]  ;;  %v9002_v54 = vcombine.high %v182_v43, %v186_v45  ;;  %v230_v33 = vld [vmem:[#allocation5 + $0x1d0] sm:$0xff] }
 0x117   :  { %v400_v56 = vld [vmem:[#allocation5 + $0x720] sm:$0xff]  ;;  %3352 = vmatpush1.bf16.msra.mxu1 %v9205_v61  ;;  %v201_v61 = vld [vmem:[#allocation5 + $0xe8] sm:$0xff]  ;;  %v234_v36 = vld [vmem:[#allocation5 + $0x1f0] sm:$0xff] }
 0x118   :  { %v652_v57 = vld [vmem:[#allocation5 + $0xf00] sm:$0xff]  ;;  %v9214_v63 = vcombine.high %v396_v55, %v400_v56  ;;  %3437 = vmatprep.subr.bf16.mxu0 %v9462_v59  ;;  %v9213_v6 = vcombine.low %v396_v55, %v400_v56  ;;  %v194_v55 = vld [vmem:[#allocation5 + $0xb0] sm:$0xff]  ;;  %v8999_v56 = vcombine.low %v181_v41, %v185_v42  ;;  %v9008_v59 = vcombine.high %v189_v51, %v193_v52  ;;  %v237_v42 = vld [vmem:[#allocation5 + $0x208] sm:$0xff] }
 0x119   :  { %v656_v60 = vld [vmem:[#allocation5 + $0xf20] sm:$0xff]  ;;  %3438 = vmatpush1.bf16.msra.mxu0 %v9461_v62  ;;  %v198_v62 = vld [vmem:[#allocation5 + $0xd0] sm:$0xff]  ;;  %v9050_v41 = vcombine.high %v230_v33, %v234_v36 }
 0x11a   :  { %v404_v1 = vld [vmem:[#allocation5 + $0x740] sm:$0xff]  ;;  %v9470_v4 = vcombine.high %v652_v57, %v656_v60  ;;  %3353 = vmatprep.subr.bf16.mxu1 %v9214_v63  ;;  %v9469_v7 = vcombine.low %v652_v57, %v656_v60  ;;  %v9001_v57 = vcombine.low %v182_v43, %v186_v45  ;;  %v197_v60 = vld [vmem:[#allocation5 + $0xc8] sm:$0xff]  ;;  %v9010_v63 = vcombine.high %v190_v53, %v194_v55  ;;  %v242_v45 = vld [vmem:[#allocation5 + $0x230] sm:$0xff] }
 0x11b   :  { %v408_v2 = vld [vmem:[#allocation5 + $0x760] sm:$0xff]  ;;  %3354 = vmatpush1.bf16.msra.mxu1 %v9213_v6  ;;  %v209_v6 = vld [vmem:[#allocation5 + $0x128] sm:$0xff] }
 0x11c   :  { %v660_v3 = vld [vmem:[#allocation5 + $0xf40] sm:$0xff]  ;;  %v9222_v8 = vcombine.high %v404_v1, %v408_v2  ;;  %3439 = vmatprep.subr.bf16.mxu0 %v9470_v4  ;;  %v9221_v14 = vcombine.low %v404_v1, %v408_v2  ;;  %v202_v1 = vld [vmem:[#allocation5 + $0xf0] sm:$0xff]  ;;  %v9007_v2 = vcombine.low %v189_v51, %v193_v52  ;;  %v9016_v4 = vcombine.high %v197_v60, %v201_v61  ;;  %v241_v43 = vld [vmem:[#allocation5 + $0x228] sm:$0xff] }
 0x11d   :  { %v664_v5 = vld [vmem:[#allocation5 + $0xf60] sm:$0xff]  ;;  %3440 = vmatpush1.bf16.msra.mxu0 %v9469_v7  ;;  %v206_v7 = vld [vmem:[#allocation5 + $0x110] sm:$0xff]  ;;  %v245_v52 = vld [vmem:[#allocation5 + $0x248] sm:$0xff] }
 0x11e   :  { %v412_v9 = vld [vmem:[#allocation5 + $0x780] sm:$0xff]  ;;  %v9478_v12 = vcombine.high %v660_v3, %v664_v5  ;;  %3355 = vmatprep.subr.bf16.mxu1 %v9222_v8  ;;  %v9477_v15 = vcombine.low %v660_v3, %v664_v5  ;;  %v9009_v3 = vcombine.low %v190_v53, %v194_v55  ;;  %v205_v5 = vld [vmem:[#allocation5 + $0x108] sm:$0xff]  ;;  %v9018_v8 = vcombine.high %v198_v62, %v202_v1  ;;  %v250_v55 = vld [vmem:[#allocation5 + $0x270] sm:$0xff] }
 0x11f   :  { %v416_v10 = vld [vmem:[#allocation5 + $0x7a0] sm:$0xff]  ;;  %3356 = vmatpush1.bf16.msra.mxu1 %v9221_v14  ;;  %v217_v14 = vld [vmem:[#allocation5 + $0x168] sm:$0xff] }
 0x120   :  { %v668_v11 = vld [vmem:[#allocation5 + $0xf80] sm:$0xff]  ;;  %v9230_v16 = vcombine.high %v412_v9, %v416_v10  ;;  %3441 = vmatprep.subr.bf16.mxu0 %v9478_v12  ;;  %v9229_v23 = vcombine.low %v412_v9, %v416_v10  ;;  %v210_v9 = vld [vmem:[#allocation5 + $0x130] sm:$0xff]  ;;  %v9015_v10 = vcombine.low %v197_v60, %v201_v61  ;;  %v9024_v12 = vcombine.high %v205_v5, %v209_v6  ;;  %v249_v53 = vld [vmem:[#allocation5 + $0x268] sm:$0xff] }
 0x121   :  { %v672_v13 = vld [vmem:[#allocation5 + $0xfa0] sm:$0xff]  ;;  %3442 = vmatpush1.bf16.msra.mxu0 %v9477_v15  ;;  %v214_v15 = vld [vmem:[#allocation5 + $0x150] sm:$0xff]  ;;  %v253_v61 = vld [vmem:[#allocation5 + $0x288] sm:$0xff] }
 0x122   :  { %v420_v17 = vld [vmem:[#allocation5 + $0x7c0] sm:$0xff]  ;;  %v9486_v20 = vcombine.high %v668_v11, %v672_v13  ;;  %3357 = vmatprep.subr.bf16.mxu1 %v9230_v16  ;;  %v9485_v24 = vcombine.low %v668_v11, %v672_v13  ;;  %v9017_v11 = vcombine.low %v198_v62, %v202_v1  ;;  %v213_v13 = vld [vmem:[#allocation5 + $0x148] sm:$0xff]  ;;  %v9026_v16 = vcombine.high %v206_v7, %v210_v9  ;;  %v258_v1 = vld [vmem:[#allocation5 + $0x2b0] sm:$0xff] }
 0x123   :  { %v424_v18 = vld [vmem:[#allocation5 + $0x7e0] sm:$0xff]  ;;  %3358 = vmatpush1.bf16.msra.mxu1 %v9229_v23  ;;  %v225_v23 = vld [vmem:[#allocation5 + $0x1a8] sm:$0xff]  ;;  %v9031_v28 = vcombine.low %v213_v13, %v217_v14 }
 0x124   :  { %v676_v19 = vld [vmem:[#allocation5 + $0xfc0] sm:$0xff]  ;;  %v9238_v25 = vcombine.high %v420_v17, %v424_v18  ;;  %3443 = vmatprep.subr.bf16.mxu0 %v9486_v20  ;;  %v9237_v38 = vcombine.low %v420_v17, %v424_v18  ;;  %v218_v17 = vld [vmem:[#allocation5 + $0x170] sm:$0xff]  ;;  %v9023_v18 = vcombine.low %v205_v5, %v209_v6  ;;  %v9032_v20 = vcombine.high %v213_v13, %v217_v14  ;;  %v257_v62 = vld [vmem:[#allocation5 + $0x2a8] sm:$0xff] }
 0x125   :  { %v680_v22 = vld [vmem:[#allocation5 + $0xfe0] sm:$0xff]  ;;  %3444 = vmatpush1.bf16.msra.mxu0 %v9485_v24  ;;  %v222_v24 = vld [vmem:[#allocation5 + $0x190] sm:$0xff]  ;;  %v9033_v29 = vcombine.low %v214_v15, %v218_v17  ;;  %v261_v6 = vld [vmem:[#allocation5 + $0x2c8] sm:$0xff] }
 0x126   :  { %v9494_v30 = vcombine.high %v676_v19, %v680_v22  ;;  %3359 = vmatprep.subr.bf16.mxu1 %v9238_v25  ;;  %v9493_v39 = vcombine.low %v676_v19, %v680_v22  ;;  %v9025_v19 = vcombine.low %v206_v7, %v210_v9  ;;  %v221_v22 = vld [vmem:[#allocation5 + $0x188] sm:$0xff]  ;;  %v9034_v25 = vcombine.high %v214_v15, %v218_v17  ;;  %v266_v9 = vld [vmem:[#allocation5 + $0x2f0] sm:$0xff] }
 0x127   :  { %3360 = vmatpush1.bf16.msra.mxu1 %v9237_v38  ;;  %v9042_v35 = vcombine.high %v222_v24, %v226_v27  ;;  %v9039_v38 = vcombine.low %v221_v22, %v225_v23  ;;  %v265_v7 = vld [vmem:[#allocation5 + $0x2e8] sm:$0xff]  ;;  %v274_v17 = vld [vmem:[#allocation5 + $0x330] sm:$0xff] }
 0x128   :  { %3445 = vmatprep.subr.bf16.mxu0 %v9494_v30  ;;  %3458 = vmatprep.subr.bf16.mxu1 %v8992_v40  ;;  %v9040_v30 = vcombine.high %v221_v22, %v225_v23  ;;  %v9048_v40 = vcombine.high %v229_v31, %v233_v32  ;;  %v269_v14 = vld [vmem:[#allocation5 + $0x308] sm:$0xff] }
 0x129   :  { %3446 = vmatpush1.bf16.msra.mxu0 %v9493_v39  ;;  %v9041_v39 = vcombine.low %v222_v24, %v226_v27  ;;  %v273_v15 = vld [vmem:[#allocation5 + $0x328] sm:$0xff]  ;;  %v282_v27 = vld [vmem:[#allocation5 + $0x370] sm:$0xff] }
 0x12a   :  { %3630 = vmatprep.subr.bf16.mxu0 %v8994_v44  ;;  %3362 = vmatmul.mubr.bf16.vlgmr.msra.gmra.mrb[0].mxu1 %v10989_v46  ;;  %v238_v44 = vld [vmem:[#allocation5 + $0x210] sm:$0xff]  ;;  %v277_v23 = vld [vmem:[#allocation5 + $0x348] sm:$0xff] }
 0x12b   :  { %3459 = vmatpush1.bf16.msra.mxu1 %v8991_v47  ;;  %3490 = vmatprep.mubr.bf16.mxu1 %v10971_v58  ;;  %v9047_v47 = vcombine.low %v229_v31, %v233_v32  ;;  %v9058_v51 = vcombine.high %v238_v44, %v242_v45  ;;  %v281_v24 = vld [vmem:[#allocation5 + $0x368] sm:$0xff] }
 0x12c   :  { %3448 = vmatmul.mubr.bf16.vlgmr.msra.gmra.mrb[0].mxu0 %v10991_v48  ;;  %3460 = vmatprep.subr.bf16.mxu1 %v9000_v50  ;;  %v9056_v50 = vcombine.high %v237_v42, %v241_v43  ;;  %v285_v32 = vld [vmem:[#allocation5 + $0x388] sm:$0xff] }
 0x12d   :  { %3631 = vmatpush1.bf16.msra.mxu0 %v8993_v49  ;;  %3662 = vmatprep.mubr.bf16.mxu0 %v10971_v58  ;;  %v9049_v49 = vcombine.low %v230_v33, %v234_v36  ;;  %v289_v33 = vld [vmem:[#allocation5 + $0x3a8] sm:$0xff]  ;;  %v290_v36 = vld [vmem:[#allocation5 + $0x3b0] sm:$0xff] }
 0x12e   :  { %3632 = vmatprep.subr.bf16.mxu0 %v9002_v54  ;;  %v246_v54 = vld [vmem:[#allocation5 + $0x250] sm:$0xff] }
 0x12f   :  { %3461 = vmatpush1.bf16.msra.mxu1 %v8999_v56  ;;  %v9055_v56 = vcombine.low %v237_v42, %v241_v43  ;;  %v9066_v60 = vcombine.high %v246_v54, %v250_v55  ;;  %v293_v42 = vld [vmem:[#allocation5 + $0x3c8] sm:$0xff] }
 0x130   :  { %3462 = vmatprep.subr.bf16.mxu1 %v9008_v59  ;;  %v9064_v59 = vcombine.high %v245_v52, %v249_v53  ;;  %v297_v43 = vld [vmem:[#allocation5 + $0x3e8] sm:$0xff] }
 0x131   :  { %3633 = vmatpush1.bf16.msra.mxu0 %v9001_v57  ;;  %v9057_v57 = vcombine.low %v238_v44, %v242_v45  ;;  %v294_v44 = vld [vmem:[#allocation5 + $0x3d0] sm:$0xff] }
 0x132   :  { %3634 = vmatprep.subr.bf16.mxu0 %v9010_v63  ;;  %v254_v63 = vld [vmem:[#allocation5 + $0x290] sm:$0xff] }
 0x133   :  { %3463 = vmatpush1.bf16.msra.mxu1 %v9007_v2  ;;  %v9063_v2 = vcombine.low %v245_v52, %v249_v53  ;;  %v9074_v5 = vcombine.high %v254_v63, %v258_v1  ;;  %v298_v45 = vld [vmem:[#allocation5 + $0x3f0] sm:$0xff]  ;;  %v301_v52 = vld [vmem:[#allocation5 + $0x408] sm:$0xff] }
 0x134   :  { %3464 = vmatprep.subr.bf16.mxu1 %v9016_v4  ;;  %v9072_v4 = vcombine.high %v253_v61, %v257_v62  ;;  %v305_v53 = vld [vmem:[#allocation5 + $0x428] sm:$0xff] }
 0x135   :  { %3635 = vmatpush1.bf16.msra.mxu0 %v9009_v3  ;;  %v9065_v3 = vcombine.low %v246_v54, %v250_v55  ;;  %v302_v54 = vld [vmem:[#allocation5 + $0x410] sm:$0xff] }
 0x136   :  { %3636 = vmatprep.subr.bf16.mxu0 %v9018_v8  ;;  %v262_v8 = vld [vmem:[#allocation5 + $0x2d0] sm:$0xff] }
 0x137   :  { %3465 = vmatpush1.bf16.msra.mxu1 %v9015_v10  ;;  %v9071_v10 = vcombine.low %v253_v61, %v257_v62  ;;  %v9082_v13 = vcombine.high %v262_v8, %v266_v9  ;;  %v306_v55 = vld [vmem:[#allocation5 + $0x430] sm:$0xff]  ;;  %v309_v61 = vld [vmem:[#allocation5 + $0x448] sm:$0xff] }
 0x138   :  { %3466 = vmatprep.subr.bf16.mxu1 %v9024_v12  ;;  %v9080_v12 = vcombine.high %v261_v6, %v265_v7  ;;  %v313_v62 = vld [vmem:[#allocation5 + $0x468] sm:$0xff] }
 0x139   :  { %3637 = vmatpush1.bf16.msra.mxu0 %v9017_v11  ;;  %v9073_v11 = vcombine.low %v254_v63, %v258_v1  ;;  %v310_v63 = vld [vmem:[#allocation5 + $0x450] sm:$0xff] }
 0x13a   :  { %3638 = vmatprep.subr.bf16.mxu0 %v9026_v16  ;;  %v270_v16 = vld [vmem:[#allocation5 + $0x310] sm:$0xff] }
 0x13b   :  { %3467 = vmatpush1.bf16.msra.mxu1 %v9023_v18  ;;  %v9079_v18 = vcombine.low %v261_v6, %v265_v7  ;;  %v9090_v22 = vcombine.high %v270_v16, %v274_v17  ;;  %v314_v1 = vld [vmem:[#allocation5 + $0x470] sm:$0xff]  ;;  %v317_v6 = vld [vmem:[#allocation5 + $0x488] sm:$0xff] }
 0x13c   :  { %3468 = vmatprep.subr.bf16.mxu1 %v9032_v20  ;;  %v9088_v20 = vcombine.high %v269_v14, %v273_v15  ;;  %v321_v7 = vld [vmem:[#allocation5 + $0x4a8] sm:$0xff] }
 0x13d   :  { %3639 = vmatpush1.bf16.msra.mxu0 %v9025_v19  ;;  %v9081_v19 = vcombine.low %v262_v8, %v266_v9  ;;  %v318_v8 = vld [vmem:[#allocation5 + $0x490] sm:$0xff] }
 0x13e   :  { %3640 = vmatprep.subr.bf16.mxu0 %v9034_v25  ;;  %v278_v25 = vld [vmem:[#allocation5 + $0x350] sm:$0xff] }
 0x13f   :  { %3469 = vmatpush1.bf16.msra.mxu1 %v9031_v28  ;;  %v9087_v28 = vcombine.low %v269_v14, %v273_v15  ;;  %v9098_v31 = vcombine.high %v278_v25, %v282_v27  ;;  %v322_v9 = vld [vmem:[#allocation5 + $0x4b0] sm:$0xff]  ;;  %v325_v14 = vld [vmem:[#allocation5 + $0x4c8] sm:$0xff] }
 0x140   :  { %3470 = vmatprep.subr.bf16.mxu1 %v9040_v30  ;;  %v9096_v30 = vcombine.high %v277_v23, %v281_v24  ;;  %v329_v15 = vld [vmem:[#allocation5 + $0x4e8] sm:$0xff] }
 0x141   :  { %3641 = vmatpush1.bf16.msra.mxu0 %v9033_v29  ;;  %v9089_v29 = vcombine.low %v270_v16, %v274_v17  ;;  %v326_v16 = vld [vmem:[#allocation5 + $0x4d0] sm:$0xff] }
 0x142   :  { %3642 = vmatprep.subr.bf16.mxu0 %v9042_v35  ;;  %v286_v35 = vld [vmem:[#allocation5 + $0x390] sm:$0xff] }
 0x143   :  { %3471 = vmatpush1.bf16.msra.mxu1 %v9039_v38  ;;  %v9095_v38 = vcombine.low %v277_v23, %v281_v24  ;;  %v330_v17 = vld [vmem:[#allocation5 + $0x4f0] sm:$0xff]  ;;  %v333_v23 = vld [vmem:[#allocation5 + $0x508] sm:$0xff] }
 0x144   :  { %3472 = vmatprep.subr.bf16.mxu1 %v9048_v40  ;;  %v9104_v40 = vcombine.high %v285_v32, %v289_v33  ;;  %v337_v24 = vld [vmem:[#allocation5 + $0x528] sm:$0xff] }
 0x145   :  { %3643 = vmatpush1.bf16.msra.mxu0 %v9041_v39  ;;  %v9097_v39 = vcombine.low %v278_v25, %v282_v27  ;;  %v334_v25 = vld [vmem:[#allocation5 + $0x510] sm:$0xff] }
 0x146   :  { %3644 = vmatprep.subr.bf16.mxu0 %v9050_v41  ;;  %v9106_v41 = vcombine.high %v286_v35, %v290_v36  ;;  %v338_v27 = vld [vmem:[#allocation5 + $0x530] sm:$0xff] }
 0x147   :  { %3473 = vmatpush1.bf16.msra.mxu1 %v9047_v47  ;;  %v9103_v47 = vcombine.low %v285_v32, %v289_v33  ;;  %v341_v32 = vld [vmem:[#allocation5 + $0x548] sm:$0xff] }
 0x148   :  { %3474 = vmatprep.subr.bf16.mxu1 %v9056_v50  ;;  %v9112_v50 = vcombine.high %v293_v42, %v297_v43  ;;  %v345_v33 = vld [vmem:[#allocation5 + $0x568] sm:$0xff] }
 0x149   :  { %3645 = vmatpush1.bf16.msra.mxu0 %v9049_v49  ;;  %v9105_v49 = vcombine.low %v286_v35, %v290_v36  ;;  %v342_v35 = vld [vmem:[#allocation5 + $0x550] sm:$0xff] }
 0x14a   :  { %3646 = vmatprep.subr.bf16.mxu0 %v9058_v51  ;;  %v9114_v51 = vcombine.high %v294_v44, %v298_v45  ;;  %v346_v36 = vld [vmem:[#allocation5 + $0x570] sm:$0xff] }
 0x14b   :  { %3475 = vmatpush1.bf16.msra.mxu1 %v9055_v56  ;;  %v9111_v56 = vcombine.low %v293_v42, %v297_v43  ;;  %v349_v42 = vld [vmem:[#allocation5 + $0x588] sm:$0xff] }
 0x14c   :  { %3476 = vmatprep.subr.bf16.mxu1 %v9064_v59  ;;  %v9120_v59 = vcombine.high %v301_v52, %v305_v53  ;;  %v353_v43 = vld [vmem:[#allocation5 + $0x5a8] sm:$0xff] }
 0x14d   :  { %3647 = vmatpush1.bf16.msra.mxu0 %v9057_v57  ;;  %v9113_v57 = vcombine.low %v294_v44, %v298_v45  ;;  %v350_v44 = vld [vmem:[#allocation5 + $0x590] sm:$0xff] }
 0x14e   :  { %3648 = vmatprep.subr.bf16.mxu0 %v9066_v60  ;;  %v9122_v60 = vcombine.high %v302_v54, %v306_v55  ;;  %v354_v45 = vld [vmem:[#allocation5 + $0x5b0] sm:$0xff] }
 0x14f   :  { %3477 = vmatpush1.bf16.msra.mxu1 %v9063_v2  ;;  %v9119_v2 = vcombine.low %v301_v52, %v305_v53  ;;  %v357_v52 = vld [vmem:[#allocation5 + $0x5c8] sm:$0xff] }
 0x150   :  { %3478 = vmatprep.subr.bf16.mxu1 %v9072_v4  ;;  %v9128_v4 = vcombine.high %v309_v61, %v313_v62  ;;  %v361_v53 = vld [vmem:[#allocation5 + $0x5e8] sm:$0xff] }
 0x151   :  { %3649 = vmatpush1.bf16.msra.mxu0 %v9065_v3  ;;  %v9121_v3 = vcombine.low %v302_v54, %v306_v55  ;;  %v358_v54 = vld [vmem:[#allocation5 + $0x5d0] sm:$0xff] }
 0x152   :  { %3650 = vmatprep.subr.bf16.mxu0 %v9074_v5  ;;  %v9130_v5 = vcombine.high %v310_v63, %v314_v1  ;;  %v362_v55 = vld [vmem:[#allocation5 + $0x5f0] sm:$0xff] }
 0x153   :  { %3479 = vmatpush1.bf16.msra.mxu1 %v9071_v10  ;;  %v9127_v10 = vcombine.low %v309_v61, %v313_v62  ;;  %v365_v61 = vld [vmem:[#allocation5 + $0x608] sm:$0xff] }
 0x154   :  { %3480 = vmatprep.subr.bf16.mxu1 %v9080_v12  ;;  %v9136_v12 = vcombine.high %v317_v6, %v321_v7  ;;  %v369_v62 = vld [vmem:[#allocation5 + $0x628] sm:$0xff] }
 0x155   :  { %3651 = vmatpush1.bf16.msra.mxu0 %v9073_v11  ;;  %v9129_v11 = vcombine.low %v310_v63, %v314_v1  ;;  %v366_v63 = vld [vmem:[#allocation5 + $0x610] sm:$0xff] }
 0x156   :  { %3652 = vmatprep.subr.bf16.mxu0 %v9082_v13  ;;  %v9138_v13 = vcombine.high %v318_v8, %v322_v9  ;;  %v370_v1 = vld [vmem:[#allocation5 + $0x630] sm:$0xff] }
 0x157   :  { %3481 = vmatpush1.bf16.msra.mxu1 %v9079_v18  ;;  %v9135_v18 = vcombine.low %v317_v6, %v321_v7  ;;  %v373_v6 = vld [vmem:[#allocation5 + $0x648] sm:$0xff] }
 0x158   :  { %3482 = vmatprep.subr.bf16.mxu1 %v9088_v20  ;;  %v9144_v20 = vcombine.high %v325_v14, %v329_v15  ;;  %v377_v7 = vld [vmem:[#allocation5 + $0x668] sm:$0xff] }
 0x159   :  { %3653 = vmatpush1.bf16.msra.mxu0 %v9081_v19  ;;  %v9137_v19 = vcombine.low %v318_v8, %v322_v9  ;;  %v374_v8 = vld [vmem:[#allocation5 + $0x650] sm:$0xff] }
 0x15a   :  { %3654 = vmatprep.subr.bf16.mxu0 %v9090_v22  ;;  %v9146_v22 = vcombine.high %v326_v16, %v330_v17  ;;  %v378_v9 = vld [vmem:[#allocation5 + $0x670] sm:$0xff] }
 0x15b   :  { %3483 = vmatpush1.bf16.msra.mxu1 %v9087_v28  ;;  %v9143_v28 = vcombine.low %v325_v14, %v329_v15  ;;  %v381_v14 = vld [vmem:[#allocation5 + $0x688] sm:$0xff] }
 0x15c   :  { %3484 = vmatprep.subr.bf16.mxu1 %v9096_v30  ;;  %v9152_v30 = vcombine.high %v333_v23, %v337_v24  ;;  %v385_v15 = vld [vmem:[#allocation5 + $0x6a8] sm:$0xff] }
 0x15d   :  { %3655 = vmatpush1.bf16.msra.mxu0 %v9089_v29  ;;  %v9145_v29 = vcombine.low %v326_v16, %v330_v17  ;;  %v382_v16 = vld [vmem:[#allocation5 + $0x690] sm:$0xff] }
 0x15e   :  { %3656 = vmatprep.subr.bf16.mxu0 %v9098_v31  ;;  %v9154_v31 = vcombine.high %v334_v25, %v338_v27  ;;  %v386_v17 = vld [vmem:[#allocation5 + $0x6b0] sm:$0xff] }
 0x15f   :  { %3485 = vmatpush1.bf16.msra.mxu1 %v9095_v38  ;;  %v9151_v38 = vcombine.low %v333_v23, %v337_v24  ;;  %v389_v23 = vld [vmem:[#allocation5 + $0x6c8] sm:$0xff] }
 0x160   :  { %3486 = vmatprep.subr.bf16.mxu1 %v9104_v40  ;;  %v9160_v40 = vcombine.high %v341_v32, %v345_v33  ;;  %v393_v24 = vld [vmem:[#allocation5 + $0x6e8] sm:$0xff] }
 0x161   :  { %3657 = vmatpush1.bf16.msra.mxu0 %v9097_v39  ;;  %v9153_v39 = vcombine.low %v334_v25, %v338_v27  ;;  %v390_v25 = vld [vmem:[#allocation5 + $0x6d0] sm:$0xff] }
 0x162   :  { %3658 = vmatprep.subr.bf16.mxu0 %v9106_v41  ;;  %v9162_v41 = vcombine.high %v342_v35, %v346_v36  ;;  %v394_v27 = vld [vmem:[#allocation5 + $0x6f0] sm:$0xff] }
 0x163   :  { %3487 = vmatpush1.bf16.msra.mxu1 %v9103_v47  ;;  %v9159_v47 = vcombine.low %v341_v32, %v345_v33  ;;  %v397_v32 = vld [vmem:[#allocation5 + $0x708] sm:$0xff] }
 0x164   :  { %3488 = vmatprep.subr.bf16.mxu1 %v9112_v50  ;;  %v9168_v50 = vcombine.high %v349_v42, %v353_v43  ;;  %v401_v33 = vld [vmem:[#allocation5 + $0x728] sm:$0xff] }
 0x165   :  { %3659 = vmatpush1.bf16.msra.mxu0 %v9105_v49  ;;  %v9161_v49 = vcombine.low %v342_v35, %v346_v36  ;;  %v398_v35 = vld [vmem:[#allocation5 + $0x710] sm:$0xff] }
 0x166   :  { %3660 = vmatprep.subr.bf16.mxu0 %v9114_v51  ;;  %v9170_v51 = vcombine.high %v350_v44, %v354_v45  ;;  %v402_v36 = vld [vmem:[#allocation5 + $0x730] sm:$0xff] }
 0x167   :  { %3489 = vmatpush1.bf16.msra.mxu1 %v9111_v56  ;;  %v9167_v56 = vcombine.low %v349_v42, %v353_v43  ;;  %v405_v42 = vld [vmem:[#allocation5 + $0x748] sm:$0xff] }
 0x168   :  { %3501 = vmatprep.subr.bf16.mxu1 %v9120_v59  ;;  %v9176_v59 = vcombine.high %v357_v52, %v361_v53  ;;  %v409_v43 = vld [vmem:[#allocation5 + $0x768] sm:$0xff] }
 0x169   :  { %3661 = vmatpush1.bf16.msra.mxu0 %v9113_v57  ;;  %v9169_v57 = vcombine.low %v350_v44, %v354_v45  ;;  %v406_v44 = vld [vmem:[#allocation5 + $0x750] sm:$0xff] }
 0x16a   :  { %3673 = vmatprep.subr.bf16.mxu0 %v9122_v60  ;;  %3491 = vmatmul.mubr.bf16.vlgmr.msra.gmra.mrb[4].mxu1 %v10977_v21  ;;  %v9178_v60 = vcombine.high %v358_v54, %v362_v55  ;;  %v410_v45 = vld [vmem:[#allocation5 + $0x770] sm:$0xff] }
 0x16b   :  { %3502 = vmatpush1.bf16.msra.mxu1 %v9119_v2  ;;  %3533 = vmatprep.mubr.bf16.mxu1 %v10981_v34  ;;  %v9175_v2 = vcombine.low %v357_v52, %v361_v53  ;;  %v413_v52 = vld [vmem:[#allocation5 + $0x788] sm:$0xff] }
 0x16c   :  { %3663 = vmatmul.mubr.bf16.vlgmr.msra.gmra.mrb[4].mxu0 %v10977_v21  ;;  %3503 = vmatprep.subr.bf16.mxu1 %v9128_v4  ;;  %v9184_v4 = vcombine.high %v365_v61, %v369_v62  ;;  %v417_v53 = vld [vmem:[#allocation5 + $0x7a8] sm:$0xff] }
 0x16d   :  { %3674 = vmatpush1.bf16.msra.mxu0 %v9121_v3  ;;  %3705 = vmatprep.mubr.bf16.mxu0 %v10981_v34  ;;  %v9177_v3 = vcombine.low %v358_v54, %v362_v55  ;;  %v414_v54 = vld [vmem:[#allocation5 + $0x790] sm:$0xff] }
 0x16e   :  { %3675 = vmatprep.subr.bf16.mxu0 %v9130_v5  ;;  %v9186_v5 = vcombine.high %v366_v63, %v370_v1  ;;  %v418_v55 = vld [vmem:[#allocation5 + $0x7b0] sm:$0xff] }
 0x16f   :  { %3504 = vmatpush1.bf16.msra.mxu1 %v9127_v10  ;;  %v9183_v10 = vcombine.low %v365_v61, %v369_v62  ;;  %v421_v61 = vld [vmem:[#allocation5 + $0x7c8] sm:$0xff] }
 0x170   :  { %3505 = vmatprep.subr.bf16.mxu1 %v9136_v12  ;;  %v9192_v12 = vcombine.high %v373_v6, %v377_v7  ;;  %v425_v62 = vld [vmem:[#allocation5 + $0x7e8] sm:$0xff] }
 0x171   :  { %3676 = vmatpush1.bf16.msra.mxu0 %v9129_v11  ;;  %v9185_v11 = vcombine.low %v366_v63, %v370_v1  ;;  %v422_v63 = vld [vmem:[#allocation5 + $0x7d0] sm:$0xff] }
 0x172   :  { %3677 = vmatprep.subr.bf16.mxu0 %v9138_v13  ;;  %v9194_v13 = vcombine.high %v374_v8, %v378_v9  ;;  %v426_v1 = vld [vmem:[#allocation5 + $0x7f0] sm:$0xff] }
 0x173   :  { %3506 = vmatpush1.bf16.msra.mxu1 %v9135_v18  ;;  %v9191_v18 = vcombine.low %v373_v6, %v377_v7  ;;  %v429_v6 = vld [vmem:[#allocation5 + $0x808] sm:$0xff] }
 0x174   :  { %3507 = vmatprep.subr.bf16.mxu1 %v9144_v20  ;;  %v9200_v20 = vcombine.high %v381_v14, %v385_v15  ;;  %v433_v7 = vld [vmem:[#allocation5 + $0x828] sm:$0xff] }
 0x175   :  { %3678 = vmatpush1.bf16.msra.mxu0 %v9137_v19  ;;  %v9193_v19 = vcombine.low %v374_v8, %v378_v9  ;;  %v430_v8 = vld [vmem:[#allocation5 + $0x810] sm:$0xff] }
 0x176   :  { %3679 = vmatprep.subr.bf16.mxu0 %v9146_v22  ;;  %v9202_v22 = vcombine.high %v382_v16, %v386_v17  ;;  %v434_v9 = vld [vmem:[#allocation5 + $0x830] sm:$0xff] }
 0x177   :  { %3508 = vmatpush1.bf16.msra.mxu1 %v9143_v28  ;;  %v9199_v28 = vcombine.low %v381_v14, %v385_v15  ;;  %v437_v14 = vld [vmem:[#allocation5 + $0x848] sm:$0xff] }
 0x178   :  { %3509 = vmatprep.subr.bf16.mxu1 %v9152_v30  ;;  %v9208_v30 = vcombine.high %v389_v23, %v393_v24  ;;  %v441_v15 = vld [vmem:[#allocation5 + $0x868] sm:$0xff] }
 0x179   :  { %3680 = vmatpush1.bf16.msra.mxu0 %v9145_v29  ;;  %v9201_v29 = vcombine.low %v382_v16, %v386_v17  ;;  %v438_v16 = vld [vmem:[#allocation5 + $0x850] sm:$0xff] }
 0x17a   :  { %3681 = vmatprep.subr.bf16.mxu0 %v9154_v31  ;;  %v9210_v31 = vcombine.high %v390_v25, %v394_v27  ;;  %v442_v17 = vld [vmem:[#allocation5 + $0x870] sm:$0xff] }
 0x17b   :  { %3510 = vmatpush1.bf16.msra.mxu1 %v9151_v38  ;;  %v9207_v38 = vcombine.low %v389_v23, %v393_v24  ;;  %v445_v23 = vld [vmem:[#allocation5 + $0x888] sm:$0xff] }
 0x17c   :  { %3511 = vmatprep.subr.bf16.mxu1 %v9160_v40  ;;  %v9216_v40 = vcombine.high %v397_v32, %v401_v33  ;;  %v449_v24 = vld [vmem:[#allocation5 + $0x8a8] sm:$0xff] }
 0x17d   :  { %3682 = vmatpush1.bf16.msra.mxu0 %v9153_v39  ;;  %v9209_v39 = vcombine.low %v390_v25, %v394_v27  ;;  %v446_v25 = vld [vmem:[#allocation5 + $0x890] sm:$0xff] }
 0x17e   :  { %3683 = vmatprep.subr.bf16.mxu0 %v9162_v41  ;;  %v9218_v41 = vcombine.high %v398_v35, %v402_v36  ;;  %v450_v27 = vld [vmem:[#allocation5 + $0x8b0] sm:$0xff] }
 0x17f   :  { %3512 = vmatpush1.bf16.msra.mxu1 %v9159_v47  ;;  %v9215_v47 = vcombine.low %v397_v32, %v401_v33  ;;  %v453_v32 = vld [vmem:[#allocation5 + $0x8c8] sm:$0xff] }
 0x180   :  { %3513 = vmatprep.subr.bf16.mxu1 %v9168_v50  ;;  %v9224_v50 = vcombine.high %v405_v42, %v409_v43  ;;  %v457_v33 = vld [vmem:[#allocation5 + $0x8e8] sm:$0xff] }
 0x181   :  { %3684 = vmatpush1.bf16.msra.mxu0 %v9161_v49  ;;  %v9217_v49 = vcombine.low %v398_v35, %v402_v36  ;;  %v454_v35 = vld [vmem:[#allocation5 + $0x8d0] sm:$0xff] }
 0x182   :  { %3685 = vmatprep.subr.bf16.mxu0 %v9170_v51  ;;  %v9226_v51 = vcombine.high %v406_v44, %v410_v45  ;;  %v458_v36 = vld [vmem:[#allocation5 + $0x8f0] sm:$0xff] }
 0x183   :  { %3514 = vmatpush1.bf16.msra.mxu1 %v9167_v56  ;;  %v9223_v56 = vcombine.low %v405_v42, %v409_v43  ;;  %v461_v42 = vld [vmem:[#allocation5 + $0x908] sm:$0xff] }
 0x184   :  { %3515 = vmatprep.subr.bf16.mxu1 %v9176_v59  ;;  %v9232_v59 = vcombine.high %v413_v52, %v417_v53  ;;  %v465_v43 = vld [vmem:[#allocation5 + $0x928] sm:$0xff] }
 0x185   :  { %3686 = vmatpush1.bf16.msra.mxu0 %v9169_v57  ;;  %v9225_v57 = vcombine.low %v406_v44, %v410_v45  ;;  %v462_v44 = vld [vmem:[#allocation5 + $0x910] sm:$0xff] }
 0x186   :  { %3687 = vmatprep.subr.bf16.mxu0 %v9178_v60  ;;  %v9234_v60 = vcombine.high %v414_v54, %v418_v55  ;;  %v466_v45 = vld [vmem:[#allocation5 + $0x930] sm:$0xff] }
 0x187   :  { %3516 = vmatpush1.bf16.msra.mxu1 %v9175_v2  ;;  %v9231_v2 = vcombine.low %v413_v52, %v417_v53  ;;  %v469_v52 = vld [vmem:[#allocation5 + $0x948] sm:$0xff] }
 0x188   :  { %3517 = vmatprep.subr.bf16.mxu1 %v9184_v4  ;;  %v9240_v4 = vcombine.high %v421_v61, %v425_v62  ;;  %v473_v53 = vld [vmem:[#allocation5 + $0x968] sm:$0xff] }
 0x189   :  { %3688 = vmatpush1.bf16.msra.mxu0 %v9177_v3  ;;  %v9233_v3 = vcombine.low %v414_v54, %v418_v55  ;;  %v470_v54 = vld [vmem:[#allocation5 + $0x950] sm:$0xff] }
 0x18a   :  { %3689 = vmatprep.subr.bf16.mxu0 %v9186_v5  ;;  %v9242_v5 = vcombine.high %v422_v63, %v426_v1  ;;  %v474_v55 = vld [vmem:[#allocation5 + $0x970] sm:$0xff] }
 0x18b   :  { %3518 = vmatpush1.bf16.msra.mxu1 %v9183_v10  ;;  %v9239_v10 = vcombine.low %v421_v61, %v425_v62  ;;  %v477_v61 = vld [vmem:[#allocation5 + $0x988] sm:$0xff] }
 0x18c   :  { %3519 = vmatprep.subr.bf16.mxu1 %v9192_v12  ;;  %v9248_v12 = vcombine.high %v429_v6, %v433_v7  ;;  %v481_v62 = vld [vmem:[#allocation5 + $0x9a8] sm:$0xff] }
 0x18d   :  { %3690 = vmatpush1.bf16.msra.mxu0 %v9185_v11  ;;  %v9241_v11 = vcombine.low %v422_v63, %v426_v1  ;;  %v478_v63 = vld [vmem:[#allocation5 + $0x990] sm:$0xff] }
 0x18e   :  { %3691 = vmatprep.subr.bf16.mxu0 %v9194_v13  ;;  %v9250_v13 = vcombine.high %v430_v8, %v434_v9  ;;  %v482_v1 = vld [vmem:[#allocation5 + $0x9b0] sm:$0xff] }
 0x18f   :  { %3520 = vmatpush1.bf16.msra.mxu1 %v9191_v18  ;;  %v9247_v18 = vcombine.low %v429_v6, %v433_v7  ;;  %v485_v6 = vld [vmem:[#allocation5 + $0x9c8] sm:$0xff] }
 0x190   :  { %3521 = vmatprep.subr.bf16.mxu1 %v9200_v20  ;;  %v9256_v20 = vcombine.high %v437_v14, %v441_v15  ;;  %v489_v7 = vld [vmem:[#allocation5 + $0x9e8] sm:$0xff] }
 0x191   :  { %3692 = vmatpush1.bf16.msra.mxu0 %v9193_v19  ;;  %v9249_v19 = vcombine.low %v430_v8, %v434_v9  ;;  %v486_v8 = vld [vmem:[#allocation5 + $0x9d0] sm:$0xff] }
 0x192   :  { %3693 = vmatprep.subr.bf16.mxu0 %v9202_v22  ;;  %v9258_v22 = vcombine.high %v438_v16, %v442_v17  ;;  %v490_v9 = vld [vmem:[#allocation5 + $0x9f0] sm:$0xff] }
 0x193   :  { %3522 = vmatpush1.bf16.msra.mxu1 %v9199_v28  ;;  %v9255_v28 = vcombine.low %v437_v14, %v441_v15  ;;  %v493_v14 = vld [vmem:[#allocation5 + $0xa08] sm:$0xff] }
 0x194   :  { %3523 = vmatprep.subr.bf16.mxu1 %v9208_v30  ;;  %v9264_v30 = vcombine.high %v445_v23, %v449_v24  ;;  %v497_v15 = vld [vmem:[#allocation5 + $0xa28] sm:$0xff] }
 0x195   :  { %3694 = vmatpush1.bf16.msra.mxu0 %v9201_v29  ;;  %v9257_v29 = vcombine.low %v438_v16, %v442_v17  ;;  %v494_v16 = vld [vmem:[#allocation5 + $0xa10] sm:$0xff] }
 0x196   :  { %3695 = vmatprep.subr.bf16.mxu0 %v9210_v31  ;;  %v9266_v31 = vcombine.high %v446_v25, %v450_v27  ;;  %v498_v17 = vld [vmem:[#allocation5 + $0xa30] sm:$0xff] }
 0x197   :  { %3524 = vmatpush1.bf16.msra.mxu1 %v9207_v38  ;;  %v9263_v38 = vcombine.low %v445_v23, %v449_v24  ;;  %v501_v23 = vld [vmem:[#allocation5 + $0xa48] sm:$0xff] }
 0x198   :  { %3525 = vmatprep.subr.bf16.mxu1 %v9216_v40  ;;  %v9272_v40 = vcombine.high %v453_v32, %v457_v33  ;;  %v505_v24 = vld [vmem:[#allocation5 + $0xa68] sm:$0xff] }
 0x199   :  { %3696 = vmatpush1.bf16.msra.mxu0 %v9209_v39  ;;  %v9265_v39 = vcombine.low %v446_v25, %v450_v27  ;;  %v502_v25 = vld [vmem:[#allocation5 + $0xa50] sm:$0xff] }
 0x19a   :  { %3697 = vmatprep.subr.bf16.mxu0 %v9218_v41  ;;  %v9274_v41 = vcombine.high %v454_v35, %v458_v36  ;;  %v506_v27 = vld [vmem:[#allocation5 + $0xa70] sm:$0xff] }
 0x19b   :  { %3526 = vmatpush1.bf16.msra.mxu1 %v9215_v47  ;;  %v9271_v47 = vcombine.low %v453_v32, %v457_v33  ;;  %v509_v32 = vld [vmem:[#allocation5 + $0xa88] sm:$0xff] }
 0x19c   :  { %3527 = vmatprep.subr.bf16.mxu1 %v9224_v50  ;;  %v9280_v50 = vcombine.high %v461_v42, %v465_v43  ;;  %v513_v33 = vld [vmem:[#allocation5 + $0xaa8] sm:$0xff] }
 0x19d   :  { %3698 = vmatpush1.bf16.msra.mxu0 %v9217_v49  ;;  %v9273_v49 = vcombine.low %v454_v35, %v458_v36  ;;  %v510_v35 = vld [vmem:[#allocation5 + $0xa90] sm:$0xff] }
 0x19e   :  { %3699 = vmatprep.subr.bf16.mxu0 %v9226_v51  ;;  %v9282_v51 = vcombine.high %v462_v44, %v466_v45  ;;  %v514_v36 = vld [vmem:[#allocation5 + $0xab0] sm:$0xff] }
 0x19f   :  { %3528 = vmatpush1.bf16.msra.mxu1 %v9223_v56  ;;  %v9279_v56 = vcombine.low %v461_v42, %v465_v43  ;;  %v517_v42 = vld [vmem:[#allocation5 + $0xac8] sm:$0xff] }
 0x1a0   :  { %3529 = vmatprep.subr.bf16.mxu1 %v9232_v59  ;;  %v9288_v59 = vcombine.high %v469_v52, %v473_v53  ;;  %v521_v43 = vld [vmem:[#allocation5 + $0xae8] sm:$0xff] }
 0x1a1   :  { %3700 = vmatpush1.bf16.msra.mxu0 %v9225_v57  ;;  %v9281_v57 = vcombine.low %v462_v44, %v466_v45  ;;  %v518_v44 = vld [vmem:[#allocation5 + $0xad0] sm:$0xff] }
 0x1a2   :  { %3701 = vmatprep.subr.bf16.mxu0 %v9234_v60  ;;  %v9290_v60 = vcombine.high %v470_v54, %v474_v55  ;;  %v522_v45 = vld [vmem:[#allocation5 + $0xaf0] sm:$0xff] }
 0x1a3   :  { %3530 = vmatpush1.bf16.msra.mxu1 %v9231_v2  ;;  %v9287_v2 = vcombine.low %v469_v52, %v473_v53  ;;  %v525_v52 = vld [vmem:[#allocation5 + $0xb08] sm:$0xff] }
 0x1a4   :  { %3531 = vmatprep.subr.bf16.mxu1 %v9240_v4  ;;  %v9296_v4 = vcombine.high %v477_v61, %v481_v62  ;;  %v529_v53 = vld [vmem:[#allocation5 + $0xb28] sm:$0xff] }
 0x1a5   :  { %3702 = vmatpush1.bf16.msra.mxu0 %v9233_v3  ;;  %v9289_v3 = vcombine.low %v470_v54, %v474_v55  ;;  %v526_v54 = vld [vmem:[#allocation5 + $0xb10] sm:$0xff] }
 0x1a6   :  { %3703 = vmatprep.subr.bf16.mxu0 %v9242_v5  ;;  %v9298_v5 = vcombine.high %v478_v63, %v482_v1  ;;  %v530_v55 = vld [vmem:[#allocation5 + $0xb30] sm:$0xff] }
 0x1a7   :  { %3532 = vmatpush1.bf16.msra.mxu1 %v9239_v10  ;;  %v9295_v10 = vcombine.low %v477_v61, %v481_v62  ;;  %v533_v61 = vld [vmem:[#allocation5 + $0xb48] sm:$0xff] }
 0x1a8   :  { %3544 = vmatprep.subr.bf16.mxu1 %v9248_v12  ;;  %v9304_v12 = vcombine.high %v485_v6, %v489_v7  ;;  %v537_v62 = vld [vmem:[#allocation5 + $0xb68] sm:$0xff] }
 0x1a9   :  { %3704 = vmatpush1.bf16.msra.mxu0 %v9241_v11  ;;  %v9297_v11 = vcombine.low %v478_v63, %v482_v1  ;;  %v534_v63 = vld [vmem:[#allocation5 + $0xb50] sm:$0xff] }
 0x1aa   :  { %3716 = vmatprep.subr.bf16.mxu0 %v9250_v13  ;;  %3534 = vmatmul.mubr.bf16.vlgmr.msra.gmra.mrb[4].mxu1 %v10989_v46  ;;  %v9306_v13 = vcombine.high %v486_v8, %v490_v9  ;;  %v538_v1 = vld [vmem:[#allocation5 + $0xb70] sm:$0xff] }
 0x1ab   :  { %3545 = vmatpush1.bf16.msra.mxu1 %v9247_v18  ;;  %3576 = vmatprep.mubr.bf16.mxu1 %v10974_v0  ;;  %v9303_v18 = vcombine.low %v485_v6, %v489_v7  ;;  %v541_v6 = vld [vmem:[#allocation5 + $0xb88] sm:$0xff] }
 0x1ac   :  { %3706 = vmatmul.mubr.bf16.vlgmr.msra.gmra.mrb[4].mxu0 %v10989_v46  ;;  %3546 = vmatprep.subr.bf16.mxu1 %v9256_v20  ;;  %v9312_v20 = vcombine.high %v493_v14, %v497_v15  ;;  %v545_v7 = vld [vmem:[#allocation5 + $0xba8] sm:$0xff] }
 0x1ad   :  { %3717 = vmatpush1.bf16.msra.mxu0 %v9249_v19  ;;  %3748 = vmatprep.mubr.bf16.mxu0 %v10974_v0  ;;  %v9305_v19 = vcombine.low %v486_v8, %v490_v9  ;;  %v542_v8 = vld [vmem:[#allocation5 + $0xb90] sm:$0xff] }
 0x1ae   :  { %3718 = vmatprep.subr.bf16.mxu0 %v9258_v22  ;;  %v9314_v22 = vcombine.high %v494_v16, %v498_v17  ;;  %v546_v9 = vld [vmem:[#allocation5 + $0xbb0] sm:$0xff] }
 0x1af   :  { %3547 = vmatpush1.bf16.msra.mxu1 %v9255_v28  ;;  %v9311_v28 = vcombine.low %v493_v14, %v497_v15  ;;  %v549_v14 = vld [vmem:[#allocation5 + $0xbc8] sm:$0xff] }
 0x1b0   :  { %3548 = vmatprep.subr.bf16.mxu1 %v9264_v30  ;;  %v9320_v30 = vcombine.high %v501_v23, %v505_v24  ;;  %v553_v15 = vld [vmem:[#allocation5 + $0xbe8] sm:$0xff] }
 0x1b1   :  { %3719 = vmatpush1.bf16.msra.mxu0 %v9257_v29  ;;  %v9313_v29 = vcombine.low %v494_v16, %v498_v17  ;;  %v550_v16 = vld [vmem:[#allocation5 + $0xbd0] sm:$0xff] }
 0x1b2   :  { %3720 = vmatprep.subr.bf16.mxu0 %v9266_v31  ;;  %v9322_v31 = vcombine.high %v502_v25, %v506_v27  ;;  %v554_v17 = vld [vmem:[#allocation5 + $0xbf0] sm:$0xff] }
 0x1b3   :  { %3549 = vmatpush1.bf16.msra.mxu1 %v9263_v38  ;;  %v9319_v38 = vcombine.low %v501_v23, %v505_v24  ;;  %v557_v23 = vld [vmem:[#allocation5 + $0xc08] sm:$0xff] }
 0x1b4   :  { %3550 = vmatprep.subr.bf16.mxu1 %v9272_v40  ;;  %v9328_v40 = vcombine.high %v509_v32, %v513_v33  ;;  %v561_v24 = vld [vmem:[#allocation5 + $0xc28] sm:$0xff] }
 0x1b5   :  { %3721 = vmatpush1.bf16.msra.mxu0 %v9265_v39  ;;  %v9321_v39 = vcombine.low %v502_v25, %v506_v27  ;;  %v558_v25 = vld [vmem:[#allocation5 + $0xc10] sm:$0xff] }
 0x1b6   :  { %3722 = vmatprep.subr.bf16.mxu0 %v9274_v41  ;;  %v9330_v41 = vcombine.high %v510_v35, %v514_v36  ;;  %v562_v27 = vld [vmem:[#allocation5 + $0xc30] sm:$0xff] }
 0x1b7   :  { %3551 = vmatpush1.bf16.msra.mxu1 %v9271_v47  ;;  %v9327_v47 = vcombine.low %v509_v32, %v513_v33  ;;  %v565_v32 = vld [vmem:[#allocation5 + $0xc48] sm:$0xff] }
 0x1b8   :  { %3552 = vmatprep.subr.bf16.mxu1 %v9280_v50  ;;  %v9336_v50 = vcombine.high %v517_v42, %v521_v43  ;;  %v569_v33 = vld [vmem:[#allocation5 + $0xc68] sm:$0xff] }
 0x1b9   :  { %3723 = vmatpush1.bf16.msra.mxu0 %v9273_v49  ;;  %v9329_v49 = vcombine.low %v510_v35, %v514_v36  ;;  %v566_v35 = vld [vmem:[#allocation5 + $0xc50] sm:$0xff] }
 0x1ba   :  { %3724 = vmatprep.subr.bf16.mxu0 %v9282_v51  ;;  %v9338_v51 = vcombine.high %v518_v44, %v522_v45  ;;  %v570_v36 = vld [vmem:[#allocation5 + $0xc70] sm:$0xff] }
 0x1bb   :  { %3553 = vmatpush1.bf16.msra.mxu1 %v9279_v56  ;;  %v9335_v56 = vcombine.low %v517_v42, %v521_v43  ;;  %v573_v42 = vld [vmem:[#allocation5 + $0xc88] sm:$0xff] }
 0x1bc   :  { %3554 = vmatprep.subr.bf16.mxu1 %v9288_v59  ;;  %v9344_v59 = vcombine.high %v525_v52, %v529_v53  ;;  %v577_v43 = vld [vmem:[#allocation5 + $0xca8] sm:$0xff] }
 0x1bd   :  { %3725 = vmatpush1.bf16.msra.mxu0 %v9281_v57  ;;  %v9337_v57 = vcombine.low %v518_v44, %v522_v45  ;;  %v574_v44 = vld [vmem:[#allocation5 + $0xc90] sm:$0xff] }
 0x1be   :  { %3726 = vmatprep.subr.bf16.mxu0 %v9290_v60  ;;  %v9346_v60 = vcombine.high %v526_v54, %v530_v55  ;;  %v578_v45 = vld [vmem:[#allocation5 + $0xcb0] sm:$0xff] }
 0x1bf   :  { %3555 = vmatpush1.bf16.msra.mxu1 %v9287_v2  ;;  %v9343_v2 = vcombine.low %v525_v52, %v529_v53  ;;  %v581_v52 = vld [vmem:[#allocation5 + $0xcc8] sm:$0xff] }
 0x1c0   :  { %3556 = vmatprep.subr.bf16.mxu1 %v9296_v4  ;;  %v9352_v4 = vcombine.high %v533_v61, %v537_v62  ;;  %v585_v53 = vld [vmem:[#allocation5 + $0xce8] sm:$0xff] }
 0x1c1   :  { %3727 = vmatpush1.bf16.msra.mxu0 %v9289_v3  ;;  %v9345_v3 = vcombine.low %v526_v54, %v530_v55  ;;  %v582_v54 = vld [vmem:[#allocation5 + $0xcd0] sm:$0xff] }
 0x1c2   :  { %3728 = vmatprep.subr.bf16.mxu0 %v9298_v5  ;;  %v9354_v5 = vcombine.high %v534_v63, %v538_v1  ;;  %v586_v55 = vld [vmem:[#allocation5 + $0xcf0] sm:$0xff] }
 0x1c3   :  { %3557 = vmatpush1.bf16.msra.mxu1 %v9295_v10  ;;  %v9351_v10 = vcombine.low %v533_v61, %v537_v62  ;;  %v9402_v61 = vcombine.high %v582_v54, %v586_v55  ;;  %v589_v62 = vld [vmem:[#allocation5 + $0xd08] sm:$0xff] }
 0x1c4   :  { %3558 = vmatprep.subr.bf16.mxu1 %v9304_v12  ;;  %v9360_v12 = vcombine.high %v541_v6, %v545_v7 }
 0x1c5   :  { %3729 = vmatpush1.bf16.msra.mxu0 %v9297_v11  ;;  %v9353_v11 = vcombine.low %v534_v63, %v538_v1  ;;  %v593_v63 = vld [vmem:[#allocation5 + $0xd28] sm:$0xff]  ;;  %v590_v1 = vld [vmem:[#allocation5 + $0xd10] sm:$0xff] }
 0x1c6   :  { %3730 = vmatprep.subr.bf16.mxu0 %v9306_v13  ;;  %v9362_v13 = vcombine.high %v542_v8, %v546_v9 }
 0x1c7   :  { %3559 = vmatpush1.bf16.msra.mxu1 %v9303_v18  ;;  %v9359_v18 = vcombine.low %v541_v6, %v545_v7  ;;  %v9408_v6 = vcombine.high %v589_v62, %v593_v63 }
 0x1c8   :  { %3560 = vmatprep.subr.bf16.mxu1 %v9312_v20  ;;  %v9368_v20 = vcombine.high %v549_v14, %v553_v15 }
 0x1c9   :  { %3731 = vmatpush1.bf16.msra.mxu0 %v9305_v19  ;;  %v9361_v19 = vcombine.low %v542_v8, %v546_v9  ;;  %v597_v8 = vld [vmem:[#allocation5 + $0xd48] sm:$0xff] }
 0x1ca   :  { %3732 = vmatprep.subr.bf16.mxu0 %v9314_v22  ;;  %v9370_v22 = vcombine.high %v550_v16, %v554_v17  ;;  %v601_v9 = vld [vmem:[#allocation5 + $0xd68] sm:$0xff] }
 0x1cb   :  { %3561 = vmatpush1.bf16.msra.mxu1 %v9311_v28  ;;  %v9367_v28 = vcombine.low %v549_v14, %v553_v15  ;;  %v684_v14 = vld [vmem:[#allocation7] sm:$0xff] }
 0x1cc   :  { %3562 = vmatprep.subr.bf16.mxu1 %v9320_v30  ;;  %v9376_v30 = vcombine.high %v557_v23, %v561_v24 }
 0x1cd   :  { %3733 = vmatpush1.bf16.msra.mxu0 %v9313_v29  ;;  %v9369_v29 = vcombine.low %v550_v16, %v554_v17  ;;  %v9416_v17 = vcombine.high %v597_v8, %v601_v9 }
 0x1ce   :  { %3734 = vmatprep.subr.bf16.mxu0 %v9322_v31  ;;  %v9378_v31 = vcombine.high %v558_v25, %v562_v27 }
 0x1cf   :  { %3563 = vmatpush1.bf16.msra.mxu1 %v9319_v38  ;;  %v9375_v38 = vcombine.low %v557_v23, %v561_v24  ;;  %v606_v23 = vld [vmem:[#allocation5 + $0xd90] sm:$0xff] }
 0x1d0   :  { %3564 = vmatprep.subr.bf16.mxu1 %v9328_v40  ;;  %v9384_v40 = vcombine.high %v565_v32, %v569_v33  ;;  %v610_v24 = vld [vmem:[#allocation5 + $0xdb0] sm:$0xff] }
 0x1d1   :  { %3735 = vmatpush1.bf16.msra.mxu0 %v9321_v39  ;;  %v9377_v39 = vcombine.low %v558_v25, %v562_v27  ;;  %v9415_v27 = vcombine.low %v597_v8, %v601_v9 }
 0x1d2   :  { %3736 = vmatprep.subr.bf16.mxu0 %v9330_v41  ;;  %v9386_v41 = vcombine.high %v566_v35, %v570_v36 }
 0x1d3   :  { %3565 = vmatpush1.bf16.msra.mxu1 %v9327_v47  ;;  %v9383_v47 = vcombine.low %v565_v32, %v569_v33  ;;  %v613_v32 = vld [vmem:[#allocation5 + $0xdc8] sm:$0xff] }
 0x1d4   :  { %3566 = vmatprep.subr.bf16.mxu1 %v9336_v50  ;;  %v9392_v50 = vcombine.high %v573_v42, %v577_v43  ;;  %v617_v33 = vld [vmem:[#allocation5 + $0xde8] sm:$0xff] }
 0x1d5   :  { %3737 = vmatpush1.bf16.msra.mxu0 %v9329_v49  ;;  %v9385_v49 = vcombine.low %v566_v35, %v570_v36 }
 0x1d6   :  { %3738 = vmatprep.subr.bf16.mxu0 %v9338_v51  ;;  %v9394_v51 = vcombine.high %v574_v44, %v578_v45 }
 0x1d7   :  { %3567 = vmatpush1.bf16.msra.mxu1 %v9335_v56  ;;  %v686_v56 = vlaneseq }
 0x1d8   :  { %3568 = vmatprep.subr.bf16.mxu1 %v9344_v59  ;;  %v9393_v59 = vcombine.low %v574_v44, %v578_v45  ;;  %v9425_v45 = vcombine.low %v606_v23, %v610_v24 }
 0x1d9   :  { %3739 = vmatpush1.bf16.msra.mxu0 %v9337_v57  ;;  %v9391_v57 = vcombine.low %v573_v42, %v577_v43 }
 0x1da   :  { %3740 = vmatprep.subr.bf16.mxu0 %v9346_v60  ;;  %v9400_v60 = vcombine.high %v581_v52, %v585_v53 }
 0x1db   :  { %3569 = vmatpush1.bf16.msra.mxu1 %v9343_v2  ;;  %v594_v2 = vld [vmem:[#allocation5 + $0xd30] sm:$0xff] }
 0x1dc   :  { %3570 = vmatprep.subr.bf16.mxu1 %v9352_v4  ;;  %v9399_v4 = vcombine.low %v581_v52, %v585_v53  ;;  %v9410_v7 = vcombine.high %v590_v1, %v594_v2  ;;  %v9409_v16 = vcombine.low %v590_v1, %v594_v2  ;;  %v9432_v52 = vcombine.high %v613_v32, %v617_v33 }
 0x1dd   :  { %3741 = vmatpush1.bf16.msra.mxu0 %v9345_v3  ;;  %v11009_v3 = vshrl.u32 %v686_v56, 7  ;;  %v9431_v1 = vcombine.low %v613_v32, %v617_v33  ;;  %v645_v32 = vld [vmem:[#allocation5 + $0xec8] sm:$0xff] }
 0x1de   :  { %3742 = vmatprep.subr.bf16.mxu0 %v9354_v5  ;;  %v9401_v5 = vcombine.low %v582_v54, %v586_v55  ;;  %v649_v33 = vld [vmem:[#allocation5 + $0xee8] sm:$0xff] }
 0x1df   :  { %3571 = vmatpush1.bf16.msra.mxu1 %v9351_v10  ;;  %v11012_v10 = vsub.s32 0, %v11009_v3  ;;  %v11015_v15 = vsub.s32 1, %v11009_v3 }
 0x1e0   :  { %3572 = vmatprep.subr.bf16.mxu1 %v9360_v12  ;;  %v602_v12 = vld [vmem:[#allocation5 + $0xd70] sm:$0xff] }
 0x1e1   :  { %3743 = vmatpush1.bf16.msra.mxu0 %v9353_v11  ;;  %v598_v11 = vld [vmem:[#allocation5 + $0xd50] sm:$0xff]  ;;  %v693_v25 = vrot.slane %v684_v14, %v11015_v15 }
 0x1e2   :  { %3744 = vmatprep.subr.bf16.mxu0 %v9362_v13  ;;  %v9407_v13 = vcombine.low %v589_v62, %v593_v63  ;;  %v626_v62 = vld [vmem:[#allocation5 + $0xe30] sm:$0xff] }
 0x1e3   :  { %3573 = vmatpush1.bf16.msra.mxu1 %v9359_v18  ;;  %v9418_v18 = vcombine.high %v598_v11, %v602_v12 }
 0x1e4   :  { %3574 = vmatprep.subr.bf16.mxu1 %v9368_v20  ;;  %v609_v20 = vld [vmem:[#allocation5 + $0xda8] sm:$0xff] }
 0x1e5   :  { %3745 = vmatpush1.bf16.msra.mxu0 %v9361_v19  ;;  %v605_v19 = vld [vmem:[#allocation5 + $0xd88] sm:$0xff] }
 0x1e6   :  { %3746 = vmatprep.subr.bf16.mxu0 %v9370_v22  ;;  %v689_v22 = vrot.slane %v684_v14, %v11012_v10  ;;  %v9423_v44 = vcombine.low %v605_v19, %v609_v20  ;;  %v630_v14 = vld [vmem:[#allocation5 + $0xe50] sm:$0xff] }
 0x1e7   :  { %3575 = vmatpush1.bf16.msra.mxu1 %v9367_v28  ;;  %v9417_v28 = vcombine.low %v598_v11, %v602_v12  ;;  %v629_v11 = vld [vmem:[#allocation5 + $0xe48] sm:$0xff] }
 0x1e8   :  { %3587 = vmatprep.subr.bf16.mxu1 %v9376_v30  ;;  %v633_v12 = vld [vmem:[#allocation5 + $0xe68] sm:$0xff] }
 0x1e9   :  { %3747 = vmatpush1.bf16.msra.mxu0 %v9369_v29  ;;  %v9424_v29 = vcombine.high %v605_v19, %v609_v20  ;;  %v9448_v20 = vcombine.high %v629_v11, %v633_v12 }
 0x1ea   :  { %3759 = vmatprep.subr.bf16.mxu0 %v9378_v31  ;;  %3577 = vmatmul.mubr.bf16.vlgmr.msra.gmra.mrb[4].mxu1 %v10979_v26  ;;  %v9426_v31 = vcombine.high %v606_v23, %v610_v24  ;;  %v637_v23 = vld [vmem:[#allocation5 + $0xe88] sm:$0xff] }
 0x1eb   :  { %3588 = vmatpush1.bf16.msra.mxu1 %v9375_v38  ;;  %3619 = vmatprep.mubr.bf16.mxu1 %v10984_v37  ;;  %v641_v24 = vld [vmem:[#allocation5 + $0xea8] sm:$0xff] }
 0x1ec   :  { %3749 = vmatmul.mubr.bf16.vlgmr.msra.gmra.mrb[4].mxu0 %v10979_v26  ;;  %3589 = vmatprep.subr.bf16.mxu1 %v9384_v40  ;;  %v618_v40 = vld [vmem:[#allocation5 + $0xdf0] sm:$0xff] }
 0x1ed   :  { %3760 = vmatpush1.bf16.msra.mxu0 %v9377_v39  ;;  %3791 = vmatprep.mubr.bf16.mxu0 %v10984_v37  ;;  %v614_v39 = vld [vmem:[#allocation5 + $0xdd0] sm:$0xff] }
 0x1ee   :  { %3761 = vmatprep.subr.bf16.mxu0 %v9386_v41  ;;  %v9434_v56 = vcombine.high %v614_v39, %v618_v40 }
 0x1ef   :  { %3590 = vmatpush1.bf16.msra.mxu1 %v9383_v47 }
 0x1f0   :  { %3591 = vmatprep.subr.bf16.mxu1 %v9392_v50 }
 0x1f1   :  { %3762 = vmatpush1.bf16.msra.mxu0 %v9385_v49 }
 0x1f2   :  { %3763 = vmatprep.subr.bf16.mxu0 %v9394_v51 }
 0x1f3   :  { %3592 = vmatpush1.bf16.msra.mxu1 %v9391_v57  ;;  %v621_v57 = vld [vmem:[#allocation5 + $0xe08] sm:$0xff] }
 0x1f4   :  { %3593 = vmatprep.subr.bf16.mxu1 %v9400_v60 }
 0x1f5   :  { %3764 = vmatpush1.bf16.msra.mxu0 %v9393_v59  ;;  %v625_v59 = vld [vmem:[#allocation5 + $0xe28] sm:$0xff] }
 0x1f6   :  { %3765 = vmatprep.subr.bf16.mxu0 %v9402_v61  ;;  %v622_v61 = vld [vmem:[#allocation5 + $0xe10] sm:$0xff] }
 0x1f7   :  { %3594 = vmatpush1.bf16.msra.mxu1 %v9399_v4  ;;  %v9442_v9 = vcombine.high %v622_v61, %v626_v62  ;;  %v9441_v19 = vcombine.low %v622_v61, %v626_v62  ;;  %v669_v61 = vld [vmem:[#allocation5 + $0xf88] sm:$0xff] }
 0x1f8   :  { %3595 = vmatprep.subr.bf16.mxu1 %v9408_v6  ;;  %v9440_v6 = vcombine.high %v621_v57, %v625_v59  ;;  %v673_v62 = vld [vmem:[#allocation5 + $0xfa8] sm:$0xff] }
 0x1f9   :  { %3766 = vmatpush1.bf16.msra.mxu0 %v9401_v5  ;;  %v9433_v5 = vcombine.low %v614_v39, %v618_v40  ;;  %v9464_v40 = vcombine.high %v645_v32, %v649_v33 }
 0x1fa   :  { %3767 = vmatprep.subr.bf16.mxu0 %v9410_v7 }
 0x1fb   :  { %3596 = vmatpush1.bf16.msra.mxu1 %v9407_v13 }
 0x1fc   :  { %3597 = vmatprep.subr.bf16.mxu1 %v9416_v17 }
 0x1fd   :  { %3768 = vmatpush1.bf16.msra.mxu0 %v9409_v16  ;;  %v3363_v30 = vpop.f32.mrb[0].mxu1  ;;  %v634_v16 = vld [vmem:[#allocation5 + $0xe70] sm:$0xff] }
 0x1fe   :  { %3769 = vmatprep.subr.bf16.mxu0 %v9418_v18  ;;  %v10189_v35 = vadd.f32 %v3363_v30, %v689_v22  ;;  %v3365_v36 = vpop.f32.mrb[1].mxu1  ;;  %v9439_v18 = vcombine.low %v621_v57, %v625_v59  ;;  %v9456_v30 = vcombine.high %v637_v23, %v641_v24 }
 0x1ff   :  { %v3449_v38 = vpop.f32.mrb[0].mxu0  ;;  %v10191_v41 = vadd.f32 %v3365_v36, %v693_v25  ;;  %v3367_v42 = vpop.f32.mrb[2].mxu1  ;;  %3598 = vmatpush1.bf16.msra.mxu1 %v9415_v27  ;;  %v642_v27 = vld [vmem:[#allocation5 + $0xeb0] sm:$0xff] }
 0x200   :  { %v3451_v43 = vpop.f32.mrb[1].mxu0  ;;  %v10193_v47 = vadd.f32 %v3367_v42, %v689_v22  ;;  %v10190_v49 = vadd.f32 %v10189_v35, %v3449_v38  ;;  %v3369_v50 = vpop.f32.mrb[3].mxu1  ;;  %3599 = vmatprep.subr.bf16.mxu1 %v9424_v29  ;;  %v9450_v22 = vcombine.high %v630_v14, %v634_v16  ;;  %v9449_v29 = vcombine.low %v630_v14, %v634_v16  ;;  %v646_v35 = vld [vmem:[#allocation5 + $0xed0] sm:$0xff]  ;;  %v653_v42 = vld [vmem:[#allocation5 + $0xf08] sm:$0xff] }
 0x201   :  { %3770 = vmatpush1.bf16.msra.mxu0 %v9417_v28  ;;  %v3453_v51 = vpop.f32.mrb[2].mxu0  ;;  %v10195_v53 = vadd.f32 %v3369_v50, %v693_v25  ;;  %v10192_v54 = vadd.f32 %v10191_v41, %v3451_v43  ;;  %v638_v25 = vld [vmem:[#allocation5 + $0xe90] sm:$0xff]  ;;  %v9447_v28 = vcombine.low %v629_v11, %v633_v12  ;;  %v9455_v38 = vcombine.low %v637_v23, %v641_v24  ;;  %v657_v43 = vld [vmem:[#allocation5 + $0xf28] sm:$0xff] }
 0x202   :  { %v3455_v55 = vpop.f32.mrb[3].mxu0  ;;  %3771 = vmatprep.subr.bf16.mxu0 %v9426_v31  ;;  %v10194_v60 = vadd.f32 %v10193_v47, %v3453_v51  ;;  %v3974_v2 = vmax.f32 %v10190_v49, 0.0  ;;  %v9458_v31 = vcombine.high %v638_v25, %v642_v27  ;;  %v650_v36 = vld [vmem:[#allocation5 + $0xef0] sm:$0xff]  ;;  %v9457_v39 = vcombine.low %v638_v25, %v642_v27  ;;  %v4002_v23 = vld [vmem:[#allocation8 + $0x20] sm:$0xff] }
 0x203   :  { %v10196_v63 = vadd.f32 %v10195_v53, %v3455_v55  ;;  %3600 = vmatpush1.bf16.msra.mxu1 %v9423_v44  ;;  %v3975_v7 = vmax.f32 %v10192_v54, 0.0  ;;  %v9466_v41 = vcombine.high %v646_v35, %v650_v36  ;;  %v654_v44 = vld [vmem:[#allocation5 + $0xf10] sm:$0xff]  ;;  %v9463_v47 = vcombine.low %v645_v32, %v649_v33  ;;  %v665_v53 = vld [vmem:[#allocation5 + $0xf68] sm:$0xff] }
 0x204   :  { %v3982_v4 = vmax.f32 %v10194_v60, 0.0  ;;  %3601 = vmatprep.subr.bf16.mxu1 %v9432_v52  ;;  %v9465_v49 = vcombine.low %v646_v35, %v650_v36  ;;  %v9472_v50 = vcombine.high %v653_v42, %v657_v43  ;;  %v661_v52 = vld [vmem:[#allocation5 + $0xf48] sm:$0xff]  ;;  %v662_v54 = vld [vmem:[#allocation5 + $0xf50] sm:$0xff]  ;;  %v9487_v12 = vcombine.low %v669_v61, %v673_v62 }
 0x205   :  { %3772 = vmatpush1.bf16.msra.mxu0 %v9425_v45  ;;  %v3983_v8 = vmax.f32 %v10196_v63, 0.0  ;;  %v658_v45 = vld [vmem:[#allocation5 + $0xf30] sm:$0xff]  ;;  %v9480_v59 = vcombine.high %v661_v52, %v665_v53  ;;  %v4010_v32 = vld [vmem:[#allocation8 + $0x60] sm:$0xff] }
 0x206   :  { %3773 = vmatprep.subr.bf16.mxu0 %v9434_v56  ;;  %v11019_v13 = vpack.c.bf16 %v3982_v4, %v3974_v2  ;;  %v9474_v51 = vcombine.high %v654_v44, %v658_v45  ;;  %v666_v55 = vld [vmem:[#allocation5 + $0xf70] sm:$0xff]  ;;  %v9471_v56 = vcombine.low %v653_v42, %v657_v43  ;;  %v9473_v57 = vcombine.low %v654_v44, %v658_v45  ;;  %v4018_v42 = vld [vmem:[#allocation8 + $0xa0] sm:$0xff] }
 0x207   :  { %v11021_v17 = vpack.c.bf16 %v3983_v8, %v3975_v7  ;;  %3602 = vmatpush1.bf16.msra.mxu1 %v9431_v1  ;;  %v9482_v60 = vcombine.high %v662_v54, %v666_v55  ;;  %v670_v63 = vld [vmem:[#allocation5 + $0xf90] sm:$0xff]  ;;  %v9479_v2 = vcombine.low %v661_v52, %v665_v53  ;;  %v9481_v4 = vcombine.low %v662_v54, %v666_v55  ;;  %v677_v7 = vld [vmem:[#allocation5 + $0xfc8] sm:$0xff] }
 0x208   :  { %3603 = vmatprep.subr.bf16.mxu1 %v9440_v6  ;;  %v674_v1 = vld [vmem:[#allocation5 + $0xfb0] sm:$0xff]  ;;  %v681_v8 = vld [vmem:[#allocation5 + $0xfe8] sm:$0xff] }
 0x209   :  { %3774 = vmatpush1.bf16.msra.mxu0 %v9433_v5  ;;  %v9488_v5 = vcombine.high %v669_v61, %v673_v62  ;;  %v9490_v6 = vcombine.high %v670_v63, %v674_v1  ;;  %v682_v11 = vld [vmem:[#allocation5 + $0xff0] sm:$0xff]  ;;  %v9489_v14 = vcombine.low %v670_v63, %v674_v1  ;;  %v9496_v16 = vcombine.high %v677_v7, %v681_v8  ;;  %v4026_v52 = vld [vmem:[#allocation8 + $0xe0] sm:$0xff] }
 0x20a   :  { %3775 = vmatprep.subr.bf16.mxu0 %v9442_v9  ;;  %v678_v9 = vld [vmem:[#allocation5 + $0xfd0] sm:$0xff]  ;;  %v9495_v24 = vcombine.low %v677_v7, %v681_v8  ;;  %v4034_v61 = vld [vmem:[#allocation8 + $0x120] sm:$0xff] }
 0x20b   :  { %3604 = vmatpush1.bf16.msra.mxu1 %v9439_v18  ;;  %v9498_v18 = vcombine.high %v678_v9, %v682_v11  ;;  %v9497_v25 = vcombine.low %v678_v9, %v682_v11 }
 0x20c   :  { %3605 = vmatprep.subr.bf16.mxu1 %v9448_v20  ;;  %v179_v20 = vld [vmem:[#allocation5 + $0x38] sm:$0xff] }
 0x20d   :  { %3776 = vmatpush1.bf16.msra.mxu0 %v9441_v19  ;;  %v175_v19 = vld [vmem:[#allocation5 + $0x18] sm:$0xff] }
 0x20e   :  { %3777 = vmatprep.subr.bf16.mxu0 %v9450_v22  ;;  %v3998_v22 = vld [vmem:[#allocation8] sm:$0xff]  ;;  %v8996_v27 = vcombine.high %v175_v19, %v179_v20  ;;  %v8995_v33 = vcombine.low %v175_v19, %v179_v20 }
 0x20f   :  { %3606 = vmatpush1.bf16.msra.mxu1 %v9447_v28  ;;  %v9502_v28 = vcombine.high %v3998_v22, %v4002_v23  ;;  %v9501_v35 = vcombine.low %v3998_v22, %v4002_v23 }
 0x210   :  { %3607 = vmatprep.subr.bf16.mxu1 %v9456_v30  ;;  %v187_v30 = vld [vmem:[#allocation5 + $0x78] sm:$0xff] }
 0x211   :  { %3778 = vmatpush1.bf16.msra.mxu0 %v9449_v29  ;;  %v183_v29 = vld [vmem:[#allocation5 + $0x58] sm:$0xff] }
 0x212   :  { %3779 = vmatprep.subr.bf16.mxu0 %v9458_v31  ;;  %v4006_v31 = vld [vmem:[#allocation8 + $0x40] sm:$0xff]  ;;  %v9004_v36 = vcombine.high %v183_v29, %v187_v30  ;;  %v9003_v43 = vcombine.low %v183_v29, %v187_v30 }
 0x213   :  { %3608 = vmatpush1.bf16.msra.mxu1 %v9455_v38  ;;  %v9510_v38 = vcombine.high %v4006_v31, %v4010_v32  ;;  %v9509_v44 = vcombine.low %v4006_v31, %v4010_v32 }
 0x214   :  { %3609 = vmatprep.subr.bf16.mxu1 %v9464_v40  ;;  %v195_v40 = vld [vmem:[#allocation5 + $0xb8] sm:$0xff] }
 0x215   :  { %3780 = vmatpush1.bf16.msra.mxu0 %v9457_v39  ;;  %v191_v39 = vld [vmem:[#allocation5 + $0x98] sm:$0xff] }
 0x216   :  { %3781 = vmatprep.subr.bf16.mxu0 %v9466_v41  ;;  %v4014_v41 = vld [vmem:[#allocation8 + $0x80] sm:$0xff]  ;;  %v9012_v45 = vcombine.high %v191_v39, %v195_v40  ;;  %v9011_v53 = vcombine.low %v191_v39, %v195_v40 }
 0x217   :  { %3610 = vmatpush1.bf16.msra.mxu1 %v9463_v47  ;;  %v9518_v47 = vcombine.high %v4014_v41, %v4018_v42  ;;  %v9517_v54 = vcombine.low %v4014_v41, %v4018_v42 }
 0x218   :  { %3611 = vmatprep.subr.bf16.mxu1 %v9472_v50  ;;  %v203_v50 = vld [vmem:[#allocation5 + $0xf8] sm:$0xff] }
 0x219   :  { %3782 = vmatpush1.bf16.msra.mxu0 %v9465_v49  ;;  %v199_v49 = vld [vmem:[#allocation5 + $0xd8] sm:$0xff] }
 0x21a   :  { %3783 = vmatprep.subr.bf16.mxu0 %v9474_v51  ;;  %v4022_v51 = vld [vmem:[#allocation8 + $0xc0] sm:$0xff]  ;;  %v9020_v55 = vcombine.high %v199_v49, %v203_v50  ;;  %v9019_v62 = vcombine.low %v199_v49, %v203_v50 }
 0x21b   :  { %3612 = vmatpush1.bf16.msra.mxu1 %v9471_v56  ;;  %v9526_v56 = vcombine.high %v4022_v51, %v4026_v52  ;;  %v9525_v63 = vcombine.low %v4022_v51, %v4026_v52 }
 0x21c   :  { %3613 = vmatprep.subr.bf16.mxu1 %v9480_v59  ;;  %v211_v59 = vld [vmem:[#allocation5 + $0x138] sm:$0xff] }
 0x21d   :  { %3784 = vmatpush1.bf16.msra.mxu0 %v9473_v57  ;;  %v207_v57 = vld [vmem:[#allocation5 + $0x118] sm:$0xff] }
 0x21e   :  { %3785 = vmatprep.subr.bf16.mxu0 %v9482_v60  ;;  %v4030_v60 = vld [vmem:[#allocation8 + $0x100] sm:$0xff]  ;;  %v9028_v1 = vcombine.high %v207_v57, %v211_v59  ;;  %v9027_v7 = vcombine.low %v207_v57, %v211_v59 }
 0x21f   :  { %3614 = vmatpush1.bf16.msra.mxu1 %v9479_v2  ;;  %v215_v2 = vld [vmem:[#allocation5 + $0x158] sm:$0xff]  ;;  %v9533_v8 = vcombine.low %v4030_v60, %v4034_v61 }
 0x220   :  { %3615 = vmatprep.subr.bf16.mxu1 %v9488_v5  ;;  %v4038_v5 = vld [vmem:[#allocation8 + $0x140] sm:$0xff] }
 0x221   :  { %3786 = vmatpush1.bf16.msra.mxu0 %v9481_v4  ;;  %v219_v4 = vld [vmem:[#allocation5 + $0x178] sm:$0xff] }
 0x222   :  { %3787 = vmatprep.subr.bf16.mxu0 %v9490_v6  ;;  %v4042_v6 = vld [vmem:[#allocation8 + $0x160] sm:$0xff]  ;;  %v9036_v9 = vcombine.high %v215_v2, %v219_v4  ;;  %v9035_v19 = vcombine.low %v215_v2, %v219_v4 }
 0x223   :  { %3616 = vmatpush1.bf16.msra.mxu1 %v9487_v12  ;;  %v9542_v11 = vcombine.high %v4038_v5, %v4042_v6  ;;  %v223_v12 = vld [vmem:[#allocation5 + $0x198] sm:$0xff]  ;;  %v9541_v20 = vcombine.low %v4038_v5, %v4042_v6 }
 0x224   :  { %3617 = vmatprep.subr.bf16.mxu1 %v9496_v16  ;;  %v4046_v16 = vld [vmem:[#allocation8 + $0x180] sm:$0xff] }
 0x225   :  { %3788 = vmatpush1.bf16.msra.mxu0 %v9489_v14  ;;  %v227_v14 = vld [vmem:[#allocation5 + $0x1b8] sm:$0xff] }
 0x226   :  { %3789 = vmatprep.subr.bf16.mxu0 %v9498_v18  ;;  %v4050_v18 = vld [vmem:[#allocation8 + $0x1a0] sm:$0xff]  ;;  %v9044_v22 = vcombine.high %v223_v12, %v227_v14  ;;  %v9043_v29 = vcombine.low %v223_v12, %v227_v14 }
 0x227   :  { %3618 = vmatpush1.bf16.msra.mxu1 %v9495_v24  ;;  %v9550_v23 = vcombine.high %v4046_v16, %v4050_v18  ;;  %v231_v24 = vld [vmem:[#allocation5 + $0x1d8] sm:$0xff]  ;;  %v9549_v30 = vcombine.low %v4046_v16, %v4050_v18 }
 0x228   :  { %3802 = vmatprep.subr.bf16.mxu1 %v8996_v27  ;;  %v4054_v27 = vld [vmem:[#allocation8 + $0x1c0] sm:$0xff] }
 0x229   :  { %3790 = vmatpush1.bf16.msra.mxu0 %v9497_v25  ;;  %v235_v25 = vld [vmem:[#allocation5 + $0x1f8] sm:$0xff] }
 0x22a   :  { %7112 = vmatprep.subr.bf16.mxu0 %v9502_v28  ;;  %3620 = vmatmul.mubr.bf16.vlgmr.msra.gmra.mrb[4].mxu1 %v10991_v48  ;;  %v4058_v28 = vld [vmem:[#allocation8 + $0x1e0] sm:$0xff]  ;;  %v9052_v31 = vcombine.high %v231_v24, %v235_v25  ;;  %v9051_v39 = vcombine.low %v231_v24, %v235_v25 }
 0x22b   :  { %3803 = vmatpush1.bf16.msra.mxu1 %v8995_v33  ;;  %3834 = vmatprep.mubr.bf16.mxu1 %v10971_v58  ;;  %v9534_v58 = vcombine.high %v4030_v60, %v4034_v61  ;;  %v9558_v32 = vcombine.high %v4054_v27, %v4058_v28  ;;  %v239_v33 = vld [vmem:[#allocation5 + $0x218] sm:$0xff]  ;;  %v9557_v40 = vcombine.low %v4054_v27, %v4058_v28 }
 0x22c   :  { %3792 = vmatmul.mubr.bf16.vlgmr.msra.gmra.mrb[4].mxu0 %v10991_v48  ;;  %3804 = vmatprep.subr.bf16.mxu1 %v9004_v36  ;;  %v4062_v36 = vld [vmem:[#allocation8 + $0x200] sm:$0xff] }
 0x22d   :  { %7113 = vmatpush1.bf16.msra.mxu0 %v9501_v35  ;;  %7144 = vmatprep.mubr.bf16.mxu0 %v11021_v17  ;;  %v243_v35 = vld [vmem:[#allocation5 + $0x238] sm:$0xff] }
 0x22e   :  { %7114 = vmatprep.subr.bf16.mxu0 %v9510_v38  ;;  %v4066_v38 = vld [vmem:[#allocation8 + $0x220] sm:$0xff]  ;;  %v9060_v41 = vcombine.high %v239_v33, %v243_v35  ;;  %v9059_v49 = vcombine.low %v239_v33, %v243_v35 }
 0x22f   :  { %3805 = vmatpush1.bf16.msra.mxu1 %v9003_v43  ;;  %v9566_v42 = vcombine.high %v4062_v36, %v4066_v38  ;;  %v247_v43 = vld [vmem:[#allocation5 + $0x258] sm:$0xff]  ;;  %v9565_v50 = vcombine.low %v4062_v36, %v4066_v38 }
 0x230   :  { %3806 = vmatprep.subr.bf16.mxu1 %v9012_v45  ;;  %v4070_v45 = vld [vmem:[#allocation8 + $0x240] sm:$0xff] }
 0x231   :  { %7115 = vmatpush1.bf16.msra.mxu0 %v9509_v44  ;;  %v251_v44 = vld [vmem:[#allocation5 + $0x278] sm:$0xff] }
 0x232   :  { %7116 = vmatprep.subr.bf16.mxu0 %v9518_v47  ;;  %v4074_v47 = vld [vmem:[#allocation8 + $0x260] sm:$0xff]  ;;  %v9068_v51 = vcombine.high %v247_v43, %v251_v44  ;;  %v9067_v57 = vcombine.low %v247_v43, %v251_v44 }
 0x233   :  { %3807 = vmatpush1.bf16.msra.mxu1 %v9011_v53  ;;  %v9574_v52 = vcombine.high %v4070_v45, %v4074_v47  ;;  %v255_v53 = vld [vmem:[#allocation5 + $0x298] sm:$0xff]  ;;  %v9573_v59 = vcombine.low %v4070_v45, %v4074_v47 }
 0x234   :  { %3808 = vmatprep.subr.bf16.mxu1 %v9020_v55  ;;  %v4078_v55 = vld [vmem:[#allocation8 + $0x280] sm:$0xff] }
 0x235   :  { %7117 = vmatpush1.bf16.msra.mxu0 %v9517_v54  ;;  %v259_v54 = vld [vmem:[#allocation5 + $0x2b8] sm:$0xff] }
 0x236   :  { %7118 = vmatprep.subr.bf16.mxu0 %v9526_v56  ;;  %v4082_v56 = vld [vmem:[#allocation8 + $0x2a0] sm:$0xff]  ;;  %v9076_v60 = vcombine.high %v255_v53, %v259_v54  ;;  %v9075_v2 = vcombine.low %v255_v53, %v259_v54 }
 0x237   :  { %3809 = vmatpush1.bf16.msra.mxu1 %v9019_v62  ;;  %v9582_v61 = vcombine.high %v4078_v55, %v4082_v56  ;;  %v263_v62 = vld [vmem:[#allocation5 + $0x2d8] sm:$0xff]  ;;  %v9581_v4 = vcombine.low %v4078_v55, %v4082_v56 }
 0x238   :  { %3810 = vmatprep.subr.bf16.mxu1 %v9028_v1  ;;  %v4086_v1 = vld [vmem:[#allocation8 + $0x2c0] sm:$0xff]  ;;  %v311_v56 = vld [vmem:[#allocation5 + $0x458] sm:$0xff] }
 0x239   :  { %7119 = vmatpush1.bf16.msra.mxu0 %v9525_v63  ;;  %v267_v63 = vld [vmem:[#allocation5 + $0x2f8] sm:$0xff] }
 0x23a   :  { %7120 = vmatprep.subr.bf16.mxu0 %v9534_v58  ;;  %v4090_v58 = vld [vmem:[#allocation8 + $0x2e0] sm:$0xff]  ;;  %v9084_v5 = vcombine.high %v263_v62, %v267_v63  ;;  %v9083_v12 = vcombine.low %v263_v62, %v267_v63 }
 0x23b   :  { %3811 = vmatpush1.bf16.msra.mxu1 %v9027_v7  ;;  %v9590_v6 = vcombine.high %v4086_v1, %v4090_v58  ;;  %v271_v7 = vld [vmem:[#allocation5 + $0x318] sm:$0xff]  ;;  %v9589_v14 = vcombine.low %v4086_v1, %v4090_v58  ;;  %v4138_v62 = vld [vmem:[#allocation8 + $0x460] sm:$0xff] }
 0x23c   :  { %3812 = vmatprep.subr.bf16.mxu1 %v9036_v9  ;;  %v4094_v9 = vld [vmem:[#allocation8 + $0x300] sm:$0xff]  ;;  %v319_v1 = vld [vmem:[#allocation5 + $0x498] sm:$0xff] }
 0x23d   :  { %7121 = vmatpush1.bf16.msra.mxu0 %v9533_v8  ;;  %v275_v8 = vld [vmem:[#allocation5 + $0x338] sm:$0xff] }
 0x23e   :  { %7122 = vmatprep.subr.bf16.mxu0 %v9542_v11  ;;  %v4098_v11 = vld [vmem:[#allocation8 + $0x320] sm:$0xff]  ;;  %v9092_v16 = vcombine.high %v271_v7, %v275_v8  ;;  %v9091_v24 = vcombine.low %v271_v7, %v275_v8  ;;  %v323_v58 = vld [vmem:[#allocation5 + $0x4b8] sm:$0xff] }
 0x23f   :  { %3813 = vmatpush1.bf16.msra.mxu1 %v9035_v19  ;;  %v9598_v18 = vcombine.high %v4094_v9, %v4098_v11  ;;  %v279_v19 = vld [vmem:[#allocation5 + $0x358] sm:$0xff]  ;;  %v9597_v25 = vcombine.low %v4094_v9, %v4098_v11  ;;  %v4146_v7 = vld [vmem:[#allocation8 + $0x4a0] sm:$0xff]  ;;  %v9140_v8 = vcombine.high %v319_v1, %v323_v58 }
 0x240   :  { %3814 = vmatprep.subr.bf16.mxu1 %v9044_v22  ;;  %v4102_v22 = vld [vmem:[#allocation8 + $0x340] sm:$0xff]  ;;  %v327_v9 = vld [vmem:[#allocation5 + $0x4d8] sm:$0xff] }
 0x241   :  { %7123 = vmatpush1.bf16.msra.mxu0 %v9541_v20  ;;  %v283_v20 = vld [vmem:[#allocation5 + $0x378] sm:$0xff] }
 0x242   :  { %7124 = vmatprep.subr.bf16.mxu0 %v9550_v23  ;;  %v4106_v23 = vld [vmem:[#allocation8 + $0x360] sm:$0xff]  ;;  %v9100_v27 = vcombine.high %v279_v19, %v283_v20  ;;  %v9099_v33 = vcombine.low %v279_v19, %v283_v20  ;;  %v331_v11 = vld [vmem:[#allocation5 + $0x4f8] sm:$0xff] }
 0x243   :  { %3815 = vmatpush1.bf16.msra.mxu1 %v9043_v29  ;;  %v9606_v28 = vcombine.high %v4102_v22, %v4106_v23  ;;  %v287_v29 = vld [vmem:[#allocation5 + $0x398] sm:$0xff]  ;;  %v9605_v35 = vcombine.low %v4102_v22, %v4106_v23  ;;  %v9148_v19 = vcombine.high %v327_v9, %v331_v11 }
 0x244   :  { %3816 = vmatprep.subr.bf16.mxu1 %v9052_v31  ;;  %v4110_v31 = vld [vmem:[#allocation8 + $0x380] sm:$0xff]  ;;  %v335_v20 = vld [vmem:[#allocation5 + $0x518] sm:$0xff] }
 0x245   :  { %7125 = vmatpush1.bf16.msra.mxu0 %v9549_v30  ;;  %v291_v30 = vld [vmem:[#allocation5 + $0x3b8] sm:$0xff] }
 0x246   :  { %7126 = vmatprep.subr.bf16.mxu0 %v9558_v32  ;;  %v4114_v32 = vld [vmem:[#allocation8 + $0x3a0] sm:$0xff]  ;;  %v9108_v36 = vcombine.high %v287_v29, %v291_v30  ;;  %v9107_v43 = vcombine.low %v287_v29, %v291_v30  ;;  %v339_v22 = vld [vmem:[#allocation5 + $0x538] sm:$0xff] }
 0x247   :  { %3817 = vmatpush1.bf16.msra.mxu1 %v9051_v39  ;;  %v9614_v38 = vcombine.high %v4110_v31, %v4114_v32  ;;  %v295_v39 = vld [vmem:[#allocation5 + $0x3d8] sm:$0xff]  ;;  %v9613_v44 = vcombine.low %v4110_v31, %v4114_v32 }
 0x248   :  { %3818 = vmatprep.subr.bf16.mxu1 %v9060_v41  ;;  %v4118_v41 = vld [vmem:[#allocation8 + $0x3c0] sm:$0xff]  ;;  %v343_v29 = vld [vmem:[#allocation5 + $0x558] sm:$0xff] }
 0x249   :  { %7127 = vmatpush1.bf16.msra.mxu0 %v9557_v40  ;;  %v299_v40 = vld [vmem:[#allocation5 + $0x3f8] sm:$0xff] }
 0x24a   :  { %7128 = vmatprep.subr.bf16.mxu0 %v9566_v42  ;;  %v4122_v42 = vld [vmem:[#allocation8 + $0x3e0] sm:$0xff]  ;;  %v9116_v45 = vcombine.high %v295_v39, %v299_v40  ;;  %v9115_v53 = vcombine.low %v295_v39, %v299_v40  ;;  %v347_v30 = vld [vmem:[#allocation5 + $0x578] sm:$0xff] }
 0x24b   :  { %3819 = vmatpush1.bf16.msra.mxu1 %v9059_v49  ;;  %v9622_v47 = vcombine.high %v4118_v41, %v4122_v42  ;;  %v303_v49 = vld [vmem:[#allocation5 + $0x418] sm:$0xff]  ;;  %v9621_v54 = vcombine.low %v4118_v41, %v4122_v42 }
 0x24c   :  { %3820 = vmatprep.subr.bf16.mxu1 %v9068_v51  ;;  %v4126_v51 = vld [vmem:[#allocation8 + $0x400] sm:$0xff]  ;;  %v351_v39 = vld [vmem:[#allocation5 + $0x598] sm:$0xff] }
 0x24d   :  { %7129 = vmatpush1.bf16.msra.mxu0 %v9565_v50  ;;  %v307_v50 = vld [vmem:[#allocation5 + $0x438] sm:$0xff] }
 0x24e   :  { %7130 = vmatprep.subr.bf16.mxu0 %v9574_v52  ;;  %v4130_v52 = vld [vmem:[#allocation8 + $0x420] sm:$0xff]  ;;  %v9124_v55 = vcombine.high %v303_v49, %v307_v50  ;;  %v355_v40 = vld [vmem:[#allocation5 + $0x5b8] sm:$0xff] }
 0x24f   :  { %3821 = vmatpush1.bf16.msra.mxu1 %v9067_v57  ;;  %v315_v57 = vld [vmem:[#allocation5 + $0x478] sm:$0xff] }
 0x250   :  { %3822 = vmatprep.subr.bf16.mxu1 %v9076_v60  ;;  %v9123_v60 = vcombine.low %v303_v49, %v307_v50  ;;  %v9132_v63 = vcombine.high %v311_v56, %v315_v57  ;;  %v359_v49 = vld [vmem:[#allocation5 + $0x5d8] sm:$0xff] }
 0x251   :  { %7131 = vmatpush1.bf16.msra.mxu0 %v9573_v59  ;;  %v9630_v59 = vcombine.high %v4126_v51, %v4130_v52  ;;  %v363_v50 = vld [vmem:[#allocation5 + $0x5f8] sm:$0xff] }
 0x252   :  { %7132 = vmatprep.subr.bf16.mxu0 %v9582_v61  ;;  %v4134_v61 = vld [vmem:[#allocation8 + $0x440] sm:$0xff] }
 0x253   :  { %3823 = vmatpush1.bf16.msra.mxu1 %v9075_v2  ;;  %v9629_v2 = vcombine.low %v4126_v51, %v4130_v52 }
 0x254   :  { %3824 = vmatprep.subr.bf16.mxu1 %v9084_v5  ;;  %v9131_v5 = vcombine.low %v311_v56, %v315_v57  ;;  %v9180_v56 = vcombine.high %v359_v49, %v363_v50  ;;  %v367_v57 = vld [vmem:[#allocation5 + $0x618] sm:$0xff] }
 0x255   :  { %7133 = vmatpush1.bf16.msra.mxu0 %v9581_v4  ;;  %v9638_v4 = vcombine.high %v4134_v61, %v4138_v62 }
 0x256   :  { %7134 = vmatprep.subr.bf16.mxu0 %v9590_v6  ;;  %v4142_v6 = vld [vmem:[#allocation8 + $0x480] sm:$0xff] }
 0x257   :  { %3825 = vmatpush1.bf16.msra.mxu1 %v9083_v12  ;;  %v9637_v12 = vcombine.low %v4134_v61, %v4138_v62  ;;  %v9645_v23 = vcombine.low %v4142_v6, %v4146_v7  ;;  %v9179_v62 = vcombine.low %v359_v49, %v363_v50 }
 0x258   :  { %3826 = vmatprep.subr.bf16.mxu1 %v9092_v16  ;;  %v9139_v16 = vcombine.low %v319_v1, %v323_v58  ;;  %v4194_v1 = vld [vmem:[#allocation8 + $0x620] sm:$0xff] }
 0x259   :  { %7135 = vmatpush1.bf16.msra.mxu0 %v9589_v14  ;;  %v9646_v14 = vcombine.high %v4142_v6, %v4146_v7  ;;  %v11030_v6 = vld [vmem:[#allocation8 + $0x800] sm:$0xff] }
 0x25a   :  { %7136 = vmatprep.subr.bf16.mxu0 %v9598_v18  ;;  %v4154_v18 = vld [vmem:[#allocation8 + $0x4e0] sm:$0xff] }
 0x25b   :  { %3827 = vmatpush1.bf16.msra.mxu1 %v9091_v24  ;;  %v11032_v7 = vld [vmem:[#allocation8 + $0x820] sm:$0xff] }
 0x25c   :  { %3828 = vmatprep.subr.bf16.mxu1 %v9100_v27  ;;  %v4162_v27 = vld [vmem:[#allocation8 + $0x520] sm:$0xff] }
 0x25d   :  { %7137 = vmatpush1.bf16.msra.mxu0 %v9597_v25  ;;  %v4158_v25 = vld [vmem:[#allocation8 + $0x500] sm:$0xff] }
 0x25e   :  { %7138 = vmatprep.subr.bf16.mxu0 %v9606_v28  ;;  %v9156_v28 = vcombine.high %v335_v20, %v339_v22  ;;  %v9662_v32 = vcombine.high %v4158_v25, %v4162_v27  ;;  %v9661_v41 = vcombine.low %v4158_v25, %v4162_v27  ;;  %v391_v25 = vld [vmem:[#allocation5 + $0x6d8] sm:$0xff] }
 0x25f   :  { %3829 = vmatpush1.bf16.msra.mxu1 %v9099_v33  ;;  %v9155_v33 = vcombine.low %v335_v20, %v339_v22  ;;  %v395_v27 = vld [vmem:[#allocation5 + $0x6f8] sm:$0xff] }
 0x260   :  { %3830 = vmatprep.subr.bf16.mxu1 %v9108_v36  ;;  %v4170_v36 = vld [vmem:[#allocation8 + $0x560] sm:$0xff] }
 0x261   :  { %7139 = vmatpush1.bf16.msra.mxu0 %v9605_v35  ;;  %v4166_v35 = vld [vmem:[#allocation8 + $0x540] sm:$0xff] }
 0x262   :  { %7140 = vmatprep.subr.bf16.mxu0 %v9614_v38  ;;  %v9164_v38 = vcombine.high %v343_v29, %v347_v30  ;;  %v9670_v42 = vcombine.high %v4166_v35, %v4170_v36  ;;  %v9669_v51 = vcombine.low %v4166_v35, %v4170_v36  ;;  %v399_v35 = vld [vmem:[#allocation5 + $0x718] sm:$0xff] }
 0x263   :  { %3831 = vmatpush1.bf16.msra.mxu1 %v9107_v43  ;;  %v9163_v43 = vcombine.low %v343_v29, %v347_v30  ;;  %v403_v36 = vld [vmem:[#allocation5 + $0x738] sm:$0xff] }
 0x264   :  { %3832 = vmatprep.subr.bf16.mxu1 %v9116_v45  ;;  %v4178_v45 = vld [vmem:[#allocation8 + $0x5a0] sm:$0xff]  ;;  %v9219_v50 = vcombine.low %v399_v35, %v403_v36 }
 0x265   :  { %7141 = vmatpush1.bf16.msra.mxu0 %v9613_v44  ;;  %v4174_v44 = vld [vmem:[#allocation8 + $0x580] sm:$0xff] }
 0x266   :  { %7142 = vmatprep.subr.bf16.mxu0 %v9622_v47  ;;  %v9172_v47 = vcombine.high %v351_v39, %v355_v40  ;;  %v9678_v52 = vcombine.high %v4174_v44, %v4178_v45 }
 0x267   :  { %3833 = vmatpush1.bf16.msra.mxu1 %v9115_v53  ;;  %v9171_v53 = vcombine.low %v351_v39, %v355_v40  ;;  %v9211_v40 = vcombine.low %v391_v25, %v395_v27 }
 0x268   :  { %3845 = vmatprep.subr.bf16.mxu1 %v9124_v55  ;;  %v4186_v55 = vld [vmem:[#allocation8 + $0x5e0] sm:$0xff] }
 0x269   :  { %7143 = vmatpush1.bf16.msra.mxu0 %v9621_v54  ;;  %v4182_v54 = vld [vmem:[#allocation8 + $0x5c0] sm:$0xff] }
 0x26a   :  { %7155 = vmatprep.subr.bf16.mxu0 %v9630_v59  ;;  %3835 = vmatmul.mubr.bf16.vlgmr.msra.gmra.mrb[8].mxu1 %v10977_v21  ;;  %v4150_v21 = vld [vmem:[#allocation8 + $0x4c0] sm:$0xff]  ;;  %v371_v59 = vld [vmem:[#allocation5 + $0x638] sm:$0xff]  ;;  %v9686_v61 = vcombine.high %v4182_v54, %v4186_v55 }
 0x26b   :  { %3846 = vmatpush1.bf16.msra.mxu1 %v9123_v60  ;;  %3877 = vmatprep.mubr.bf16.mxu1 %v10981_v34  ;;  %v9654_v24 = vcombine.high %v4150_v21, %v4154_v18  ;;  %v9147_v34 = vcombine.low %v327_v9, %v331_v11  ;;  %v9653_v31 = vcombine.low %v4150_v21, %v4154_v18  ;;  %v4198_v11 = vld [vmem:[#allocation8 + $0x640] sm:$0xff]  ;;  %v383_v21 = vld [vmem:[#allocation5 + $0x698] sm:$0xff] }
 0x26c   :  { %7145 = vmatmul.mubr.bf16.vlgmr.msra.gmra.mrb[8].mxu0 %v11019_v13  ;;  %3847 = vmatprep.subr.bf16.mxu1 %v9132_v63  ;;  %v9677_v60 = vcombine.low %v4174_v44, %v4178_v45  ;;  %v4190_v63 = vld [vmem:[#allocation8 + $0x600] sm:$0xff]  ;;  %v9188_v58 = vcombine.high %v367_v57, %v371_v59  ;;  %v9187_v9 = vcombine.low %v367_v57, %v371_v59  ;;  %v387_v18 = vld [vmem:[#allocation5 + $0x6b8] sm:$0xff] }
 0x26d   :  { %7156 = vmatpush1.bf16.msra.mxu0 %v9629_v2  ;;  %v375_v2 = vld [vmem:[#allocation5 + $0x658] sm:$0xff]  ;;  %v9203_v30 = vcombine.low %v383_v21, %v387_v18 }
 0x26e   :  { %7157 = vmatprep.subr.bf16.mxu0 %v9638_v4  ;;  %v379_v4 = vld [vmem:[#allocation5 + $0x678] sm:$0xff] }
 0x26f   :  { %3848 = vmatpush1.bf16.msra.mxu1 %v9131_v5  ;;  %v9685_v5 = vcombine.low %v4182_v54, %v4186_v55  ;;  %v9195_v22 = vcombine.low %v375_v2, %v379_v4  ;;  %v407_v44 = vld [vmem:[#allocation5 + $0x758] sm:$0xff] }
 0x270   :  { %3849 = vmatprep.subr.bf16.mxu1 %v9140_v8  ;;  %v9694_v8 = vcombine.high %v4190_v63, %v4194_v1  ;;  %v411_v45 = vld [vmem:[#allocation5 + $0x778] sm:$0xff] }
 0x271   :  { %7158 = vmatpush1.bf16.msra.mxu0 %v9637_v12  ;;  %v4202_v12 = vld [vmem:[#allocation8 + $0x660] sm:$0xff]  ;;  %v415_v54 = vld [vmem:[#allocation5 + $0x798] sm:$0xff]  ;;  %v9227_v59 = vcombine.low %v407_v44, %v411_v45 }
 0x272   :  { %7159 = vmatprep.subr.bf16.mxu0 %v9646_v14  ;;  %v9757_v14 = vcombine.low %v11030_v6, %v11032_v7  ;;  %v9702_v20 = vcombine.high %v4198_v11, %v4202_v12  ;;  %v419_v55 = vld [vmem:[#allocation5 + $0x7b8] sm:$0xff] }
 0x273   :  { %3850 = vmatpush1.bf16.msra.mxu1 %v9139_v16  ;;  %v9196_v16 = vcombine.high %v375_v2, %v379_v4  ;;  %v9235_v4 = vcombine.low %v415_v54, %v419_v55 }
 0x274   :  { %3851 = vmatprep.subr.bf16.mxu1 %v9148_v19  ;;  %v9693_v19 = vcombine.low %v4190_v63, %v4194_v1  ;;  %v423_v63 = vld [vmem:[#allocation5 + $0x7d8] sm:$0xff] }
 0x275   :  { %7160 = vmatpush1.bf16.msra.mxu0 %v9645_v23  ;;  %v4206_v23 = vld [vmem:[#allocation8 + $0x680] sm:$0xff]  ;;  %v427_v1 = vld [vmem:[#allocation5 + $0x7f8] sm:$0xff] }
 0x276   :  { %7161 = vmatprep.subr.bf16.mxu0 %v9654_v24  ;;  %v4210_v24 = vld [vmem:[#allocation8 + $0x6a0] sm:$0xff] }
 0x277   :  { %3852 = vmatpush1.bf16.msra.mxu1 %v9147_v34  ;;  %v9204_v34 = vcombine.high %v383_v21, %v387_v18  ;;  %v9710_v29 = vcombine.high %v4206_v23, %v4210_v24  ;;  %v9243_v18 = vcombine.low %v423_v63, %v427_v1 }
 0x278   :  { %3853 = vmatprep.subr.bf16.mxu1 %v9156_v28  ;;  %v9701_v28 = vcombine.low %v4198_v11, %v4202_v12  ;;  %v431_v11 = vld [vmem:[#allocation5 + $0x818] sm:$0xff] }
 0x279   :  { %7162 = vmatpush1.bf16.msra.mxu0 %v9653_v31  ;;  %v4214_v31 = vld [vmem:[#allocation8 + $0x6c0] sm:$0xff]  ;;  %v435_v12 = vld [vmem:[#allocation5 + $0x838] sm:$0xff] }
 0x27a   :  { %7163 = vmatprep.subr.bf16.mxu0 %v9662_v32  ;;  %v4218_v32 = vld [vmem:[#allocation8 + $0x6e0] sm:$0xff] }
 0x27b   :  { %3854 = vmatpush1.bf16.msra.mxu1 %v9155_v33  ;;  %v9212_v33 = vcombine.high %v391_v25, %v395_v27  ;;  %v9718_v39 = vcombine.high %v4214_v31, %v4218_v32  ;;  %v447_v27 = vld [vmem:[#allocation5 + $0x898] sm:$0xff] }
 0x27c   :  { %3855 = vmatprep.subr.bf16.mxu1 %v9164_v38  ;;  %v9709_v38 = vcombine.low %v4206_v23, %v4210_v24  ;;  %v9758_v24 = vcombine.high %v11030_v6, %v11032_v7 }
 0x27d   :  { %7164 = vmatpush1.bf16.msra.mxu0 %v9661_v41  ;;  %v4222_v41 = vld [vmem:[#allocation8 + $0x700] sm:$0xff] }
 0x27e   :  { %7165 = vmatprep.subr.bf16.mxu0 %v9670_v42  ;;  %v4226_v42 = vld [vmem:[#allocation8 + $0x720] sm:$0xff] }
 0x27f   :  { %3856 = vmatpush1.bf16.msra.mxu1 %v9163_v43  ;;  %v9220_v43 = vcombine.high %v399_v35, %v403_v36  ;;  %v9726_v49 = vcombine.high %v4222_v41, %v4226_v42  ;;  %v463_v36 = vld [vmem:[#allocation5 + $0x918] sm:$0xff] }
 0x280   :  { %3857 = vmatprep.subr.bf16.mxu1 %v9172_v47  ;;  %v9717_v47 = vcombine.low %v4214_v31, %v4218_v32  ;;  %v455_v31 = vld [vmem:[#allocation5 + $0x8d8] sm:$0xff] }
 0x281   :  { %7166 = vmatpush1.bf16.msra.mxu0 %v9669_v51  ;;  %v4230_v51 = vld [vmem:[#allocation8 + $0x740] sm:$0xff]  ;;  %v459_v32 = vld [vmem:[#allocation5 + $0x8f8] sm:$0xff] }
 0x282   :  { %7167 = vmatprep.subr.bf16.mxu0 %v9678_v52  ;;  %v4234_v52 = vld [vmem:[#allocation8 + $0x760] sm:$0xff]  ;;  %v9276_v35 = vcombine.high %v455_v31, %v459_v32 }
 0x283   :  { %3858 = vmatpush1.bf16.msra.mxu1 %v9171_v53  ;;  %v9228_v53 = vcombine.high %v407_v44, %v411_v45  ;;  %v9734_v57 = vcombine.high %v4230_v51, %v4234_v52  ;;  %v483_v44 = vld [vmem:[#allocation5 + $0x9b8] sm:$0xff] }
 0x284   :  { %3859 = vmatprep.subr.bf16.mxu1 %v9180_v56  ;;  %v9725_v56 = vcombine.low %v4222_v41, %v4226_v42  ;;  %v475_v41 = vld [vmem:[#allocation5 + $0x978] sm:$0xff] }
 0x285   :  { %7168 = vmatpush1.bf16.msra.mxu0 %v9677_v60  ;;  %v4238_v60 = vld [vmem:[#allocation8 + $0x780] sm:$0xff] }
 0x286   :  { %7169 = vmatprep.subr.bf16.mxu0 %v9686_v61  ;;  %v4242_v61 = vld [vmem:[#allocation8 + $0x7a0] sm:$0xff] }
 0x287   :  { %3860 = vmatpush1.bf16.msra.mxu1 %v9179_v62  ;;  %v9236_v62 = vcombine.high %v415_v54, %v419_v55  ;;  %v9742_v2 = vcombine.high %v4238_v60, %v4242_v61  ;;  %v499_v54 = vld [vmem:[#allocation5 + $0xa38] sm:$0xff] }
 0x288   :  { %3861 = vmatprep.subr.bf16.mxu1 %v9188_v58  ;;  %v9733_v58 = vcombine.low %v4230_v51, %v4234_v52 }
 0x289   :  { %7170 = vmatpush1.bf16.msra.mxu0 %v9685_v5  ;;  %v4246_v5 = vld [vmem:[#allocation8 + $0x7c0] sm:$0xff] }
 0x28a   :  { %7171 = vmatprep.subr.bf16.mxu0 %v9694_v8  ;;  %v4250_v8 = vld [vmem:[#allocation8 + $0x7e0] sm:$0xff] }
 0x28b   :  { %3862 = vmatpush1.bf16.msra.mxu1 %v9187_v9  ;;  %v9244_v9 = vcombine.high %v423_v63, %v427_v1  ;;  %v9750_v21 = vcombine.high %v4246_v5, %v4250_v8  ;;  %v9749_v23 = vcombine.low %v4246_v5, %v4250_v8  ;;  %v515_v63 = vld [vmem:[#allocation5 + $0xab8] sm:$0xff] }
 0x28c   :  { %3863 = vmatprep.subr.bf16.mxu1 %v9196_v16  ;;  %v9741_v16 = vcombine.low %v4238_v60, %v4242_v61 }
 0x28d   :  { %7172 = vmatpush1.bf16.msra.mxu0 %v9693_v19  ;;  %v9252_v19 = vcombine.high %v431_v11, %v435_v12 }
 0x28e   :  { %7173 = vmatprep.subr.bf16.mxu0 %v9702_v20  ;;  %v439_v20 = vld [vmem:[#allocation5 + $0x858] sm:$0xff] }
 0x28f   :  { %3864 = vmatpush1.bf16.msra.mxu1 %v9195_v22  ;;  %v443_v22 = vld [vmem:[#allocation5 + $0x878] sm:$0xff] }
 0x290   :  { %3865 = vmatprep.subr.bf16.mxu1 %v9204_v34  ;;  %v9251_v34 = vcombine.low %v431_v11, %v435_v12  ;;  %v9260_v25 = vcombine.high %v439_v20, %v443_v22  ;;  %v531_v11 = vld [vmem:[#allocation5 + $0xb38] sm:$0xff] }
 0x291   :  { %7174 = vmatpush1.bf16.msra.mxu0 %v9701_v28  ;;  %v451_v28 = vld [vmem:[#allocation5 + $0x8b8] sm:$0xff] }
 0x292   :  { %7175 = vmatprep.subr.bf16.mxu0 %v9710_v29  ;;  %v9259_v29 = vcombine.low %v439_v20, %v443_v22  ;;  %v543_v22 = vld [vmem:[#allocation5 + $0xb98] sm:$0xff] }
 0x293   :  { %3866 = vmatpush1.bf16.msra.mxu1 %v9203_v30  ;;  %v9268_v30 = vcombine.high %v447_v27, %v451_v28 }
 0x294   :  { %3867 = vmatprep.subr.bf16.mxu1 %v9212_v33  ;;  %v9267_v33 = vcombine.low %v447_v27, %v451_v28  ;;  %v555_v27 = vld [vmem:[#allocation5 + $0xbf8] sm:$0xff] }
 0x295   :  { %7176 = vmatpush1.bf16.msra.mxu0 %v9709_v38  ;;  %v467_v38 = vld [vmem:[#allocation5 + $0x938] sm:$0xff] }
 0x296   :  { %7177 = vmatprep.subr.bf16.mxu0 %v9718_v39  ;;  %v9275_v39 = vcombine.low %v455_v31, %v459_v32  ;;  %v9283_v42 = vcombine.low %v463_v36, %v467_v38  ;;  %v563_v31 = vld [vmem:[#allocation5 + $0xc38] sm:$0xff] }
 0x297   :  { %3868 = vmatpush1.bf16.msra.mxu1 %v9211_v40  ;;  %v9284_v40 = vcombine.high %v463_v36, %v467_v38  ;;  %v571_v36 = vld [vmem:[#allocation5 + $0xc78] sm:$0xff] }
 0x298   :  { %3869 = vmatprep.subr.bf16.mxu1 %v9220_v43  ;;  %v479_v43 = vld [vmem:[#allocation5 + $0x998] sm:$0xff] }
 0x299   :  { %7178 = vmatpush1.bf16.msra.mxu0 %v9717_v47  ;;  %v9300_v47 = vcombine.high %v479_v43, %v483_v44  ;;  %v9299_v51 = vcombine.low %v479_v43, %v483_v44  ;;  %v587_v43 = vld [vmem:[#allocation5 + $0xcf8] sm:$0xff] }
 0x29a   :  { %7179 = vmatprep.subr.bf16.mxu0 %v9726_v49  ;;  %v487_v49 = vld [vmem:[#allocation5 + $0x9d8] sm:$0xff] }
 0x29b   :  { %3870 = vmatpush1.bf16.msra.mxu1 %v9219_v50  ;;  %v491_v50 = vld [vmem:[#allocation5 + $0x9f8] sm:$0xff] }
 0x29c   :  { %3871 = vmatprep.subr.bf16.mxu1 %v9228_v53  ;;  %v9308_v52 = vcombine.high %v487_v49, %v491_v50  ;;  %v495_v53 = vld [vmem:[#allocation5 + $0xa18] sm:$0xff]  ;;  %v9307_v55 = vcombine.low %v487_v49, %v491_v50 }
 0x29d   :  { %7180 = vmatpush1.bf16.msra.mxu0 %v9725_v56  ;;  %v9316_v56 = vcombine.high %v495_v53, %v499_v54  ;;  %v9315_v60 = vcombine.low %v495_v53, %v499_v54  ;;  %v595_v49 = vld [vmem:[#allocation5 + $0xd38] sm:$0xff]  ;;  %v696_v53 = vsub.s32 2, %v11009_v3  ;;  %v704_v54 = vsub.s32 4, %v11009_v3 }
 0x29e   :  { %7181 = vmatprep.subr.bf16.mxu0 %v9734_v57  ;;  %v503_v57 = vld [vmem:[#allocation5 + $0xa58] sm:$0xff] }
 0x29f   :  { %3872 = vmatpush1.bf16.msra.mxu1 %v9227_v59  ;;  %v507_v59 = vld [vmem:[#allocation5 + $0xa78] sm:$0xff] }
 0x2a0   :  { %3873 = vmatprep.subr.bf16.mxu1 %v9236_v62  ;;  %v9324_v61 = vcombine.high %v503_v57, %v507_v59  ;;  %v511_v62 = vld [vmem:[#allocation5 + $0xa98] sm:$0xff]  ;;  %v9323_v1 = vcombine.low %v503_v57, %v507_v59 }
 0x2a1   :  { %7182 = vmatpush1.bf16.msra.mxu0 %v9733_v58  ;;  %v9332_v58 = vcombine.high %v511_v62, %v515_v63  ;;  %v9331_v5 = vcombine.low %v511_v62, %v515_v63  ;;  %v607_v59 = vld [vmem:[#allocation5 + $0xd98] sm:$0xff] }
 0x2a2   :  { %7183 = vmatprep.subr.bf16.mxu0 %v9742_v2  ;;  %v519_v2 = vld [vmem:[#allocation5 + $0xad8] sm:$0xff] }
 0x2a3   :  { %3874 = vmatpush1.bf16.msra.mxu1 %v9235_v4  ;;  %v523_v4 = vld [vmem:[#allocation5 + $0xaf8] sm:$0xff] }
 0x2a4   :  { %3875 = vmatprep.subr.bf16.mxu1 %v9244_v9  ;;  %v9340_v8 = vcombine.high %v519_v2, %v523_v4  ;;  %v527_v9 = vld [vmem:[#allocation5 + $0xb18] sm:$0xff]  ;;  %v9339_v12 = vcombine.low %v519_v2, %v523_v4 }
 0x2a5   :  { %7184 = vmatpush1.bf16.msra.mxu0 %v9741_v16  ;;  %v9348_v16 = vcombine.high %v527_v9, %v531_v11 }
 0x2a6   :  { %7185 = vmatprep.subr.bf16.mxu0 %v9750_v21  ;;  %v535_v21 = vld [vmem:[#allocation5 + $0xb58] sm:$0xff] }
 0x2a7   :  { %3876 = vmatpush1.bf16.msra.mxu1 %v9243_v18  ;;  %v539_v18 = vld [vmem:[#allocation5 + $0xb78] sm:$0xff] }
 0x2a8   :  { %3888 = vmatprep.subr.bf16.mxu1 %v9252_v19  ;;  %v9347_v19 = vcombine.low %v527_v9, %v531_v11  ;;  %v9356_v20 = vcombine.high %v535_v21, %v539_v18  ;;  %v619_v9 = vld [vmem:[#allocation5 + $0xdf8] sm:$0xff] }
 0x2a9   :  { %7186 = vmatpush1.bf16.msra.mxu0 %v9749_v23  ;;  %v547_v23 = vld [vmem:[#allocation5 + $0xbb8] sm:$0xff] }
 0x2aa   :  { %3878 = vmatmul.mubr.bf16.vlgmr.msra.gmra.mrb[8].mxu1 %v10989_v46  ;;  %7198 = vmatprep.subr.bf16.mxu0 %v9758_v24  ;;  %v471_v46 = vld [vmem:[#allocation5 + $0x958] sm:$0xff]  ;;  %v9355_v24 = vcombine.low %v535_v21, %v539_v18  ;;  %v9363_v28 = vcombine.low %v543_v22, %v547_v23 }
 0x2ab   :  { %3889 = vmatpush1.bf16.msra.mxu1 %v9251_v34  ;;  %3920 = vmatprep.mubr.bf16.mxu1 %v10974_v0  ;;  %v9292_v0 = vcombine.high %v471_v46, %v475_v41  ;;  %v9291_v45 = vcombine.low %v471_v46, %v475_v41  ;;  %v9364_v34 = vcombine.high %v543_v22, %v547_v23  ;;  %v579_v46 = vld [vmem:[#allocation5 + $0xcb8] sm:$0xff] }
 0x2ac   :  { %3890 = vmatprep.subr.bf16.mxu1 %v9260_v25  ;;  %v551_v25 = vld [vmem:[#allocation5 + $0xbd8] sm:$0xff] }
 0x2ad   :  { %v9371_v32 = vcombine.low %v551_v25, %v555_v27 }
 0x2af   :  { %3891 = vmatpush1.bf16.msra.mxu1 %v9259_v29  ;;  %v9372_v29 = vcombine.high %v551_v25, %v555_v27 }
 0x2b0   :  { %3892 = vmatprep.subr.bf16.mxu1 %v9268_v30  ;;  %v559_v30 = vld [vmem:[#allocation5 + $0xc18] sm:$0xff] }
 0x2b1   :  { %v9379_v38 = vcombine.low %v559_v30, %v563_v31 }
 0x2b3   :  { %3893 = vmatpush1.bf16.msra.mxu1 %v9267_v33  ;;  %v9380_v33 = vcombine.high %v559_v30, %v563_v31 }
 0x2b4   :  { %3894 = vmatprep.subr.bf16.mxu1 %v9276_v35  ;;  %v567_v35 = vld [vmem:[#allocation5 + $0xc58] sm:$0xff] }
 0x2b5   :  { %v9387_v41 = vcombine.low %v567_v35, %v571_v36 }
 0x2b7   :  { %3895 = vmatpush1.bf16.msra.mxu1 %v9275_v39  ;;  %v9388_v39 = vcombine.high %v567_v35, %v571_v36 }
 0x2b8   :  { %3896 = vmatprep.subr.bf16.mxu1 %v9284_v40  ;;  %v575_v40 = vld [vmem:[#allocation5 + $0xc98] sm:$0xff] }
 0x2b9   :  { %v9395_v44 = vcombine.low %v575_v40, %v579_v46 }
 0x2bb   :  { %3897 = vmatpush1.bf16.msra.mxu1 %v9283_v42  ;;  %v9396_v42 = vcombine.high %v575_v40, %v579_v46 }
 0x2bc   :  { %3898 = vmatprep.subr.bf16.mxu1 %v9292_v0  ;;  %v583_v0 = vld [vmem:[#allocation5 + $0xcd8] sm:$0xff] }
 0x2bd   :  { %v9403_v50 = vcombine.low %v583_v0, %v587_v43 }
 0x2bf   :  { %3899 = vmatpush1.bf16.msra.mxu1 %v9291_v45  ;;  %v9404_v45 = vcombine.high %v583_v0, %v587_v43  ;;  %v4266_v0 = vld [vmem:[#allocation8 + $0x860] sm:$0xff] }
 0x2c0   :  { %3900 = vmatprep.subr.bf16.mxu1 %v9300_v47  ;;  %v591_v47 = vld [vmem:[#allocation5 + $0xd18] sm:$0xff] }
 0x2c3   :  { %3901 = vmatpush1.bf16.msra.mxu1 %v9299_v51  ;;  %v9412_v51 = vcombine.high %v591_v47, %v595_v49 }
 0x2c4   :  { %3902 = vmatprep.subr.bf16.mxu1 %v9308_v52  ;;  %v599_v52 = vld [vmem:[#allocation5 + $0xd58] sm:$0xff] }
 0x2c7   :  { %3903 = vmatpush1.bf16.msra.mxu1 %v9307_v55  ;;  %v700_v55 = vsub.s32 3, %v11009_v3 }
 0x2c8   :  { %3904 = vmatprep.subr.bf16.mxu1 %v9316_v56  ;;  %v708_v56 = vsub.s32 5, %v11009_v3 }
 0x2cb   :  { %3905 = vmatpush1.bf16.msra.mxu1 %v9315_v60  ;;  %v611_v60 = vld [vmem:[#allocation5 + $0xdb8] sm:$0xff] }
 0x2cc   :  { %3906 = vmatprep.subr.bf16.mxu1 %v9324_v61  ;;  %v10558_v61 = vld [vmem:[#allocation7] sm:$0xff]  ;;  %v9428_v4 = vcombine.high %v607_v59, %v611_v60  ;;  %v9427_v22 = vcombine.low %v607_v59, %v611_v60  ;;  %v4270_v59 = vld [vmem:[#allocation8 + $0x880] sm:$0xff] }
 0x2cd   :  { %v697_v62 = vrot.slane %v10558_v61, %v696_v53  ;;  %v705_v63 = vrot.slane %v10558_v61, %v704_v54  ;;  %v709_v2 = vrot.slane %v10558_v61, %v708_v56  ;;  %v4274_v60 = vld [vmem:[#allocation8 + $0x8a0] sm:$0xff] }
 0x2cf   :  { %3907 = vmatpush1.bf16.msra.mxu1 %v9323_v1  ;;  %v701_v1 = vrot.slane %v10558_v61, %v700_v55 }
 0x2d0   :  { %3908 = vmatprep.subr.bf16.mxu1 %v9332_v58 }
 0x2d3   :  { %3909 = vmatpush1.bf16.msra.mxu1 %v9331_v5 }
 0x2d4   :  { %3910 = vmatprep.subr.bf16.mxu1 %v9340_v8  ;;  %v615_v8 = vld [vmem:[#allocation5 + $0xdd8] sm:$0xff] }
 0x2d5   :  { %v9436_v27 = vcombine.high %v615_v8, %v619_v9 }
 0x2d7   :  { %3911 = vmatpush1.bf16.msra.mxu1 %v9339_v12 }
 0x2d8   :  { %3912 = vmatprep.subr.bf16.mxu1 %v9348_v16 }
 0x2db   :  { %3913 = vmatpush1.bf16.msra.mxu1 %v9347_v19 }
 0x2dc   :  { %3914 = vmatprep.subr.bf16.mxu1 %v9356_v20 }
 0x2df   :  { %3915 = vmatpush1.bf16.msra.mxu1 %v9355_v24 }
 0x2e0   :  { %3916 = vmatprep.subr.bf16.mxu1 %v9364_v34 }
 0x2e3   :  { %3917 = vmatpush1.bf16.msra.mxu1 %v9363_v28 }
 0x2e4   :  { %3918 = vmatprep.subr.bf16.mxu1 %v9372_v29 }
 0x2e7   :  { %3919 = vmatpush1.bf16.msra.mxu1 %v9371_v32  ;;  %v623_v32 = vld [vmem:[#allocation5 + $0xe18] sm:$0xff] }
 0x2e8   :  { %3931 = vmatprep.subr.bf16.mxu1 %v9380_v33  ;;  %v627_v33 = vld [vmem:[#allocation5 + $0xe38] sm:$0xff] }
 0x2ea   :  { %3921 = vmatmul.mubr.bf16.vlgmr.msra.gmra.mrb[8].mxu1 %v10979_v26  ;;  %v603_v26 = vld [vmem:[#allocation5 + $0xd78] sm:$0xff] }
 0x2eb   :  { %3932 = vmatpush1.bf16.msra.mxu1 %v9379_v38  ;;  %3963 = vmatprep.mubr.bf16.mxu1 %v10984_v37  ;;  %v9411_v37 = vcombine.low %v591_v47, %v595_v49  ;;  %v9420_v57 = vcombine.high %v599_v52, %v603_v26  ;;  %v9419_v58 = vcombine.low %v599_v52, %v603_v26  ;;  %v635_v52 = vld [vmem:[#allocation5 + $0xe78] sm:$0xff] }
 0x2ec   :  { %3933 = vmatprep.subr.bf16.mxu1 %v9388_v39  ;;  %v9444_v47 = vcombine.high %v623_v32, %v627_v33 }
 0x2ef   :  { %3934 = vmatpush1.bf16.msra.mxu1 %v9387_v41  ;;  %v9435_v41 = vcombine.low %v615_v8, %v619_v9  ;;  %v9773_v9 = vcombine.low %v4270_v59, %v4274_v60 }
 0x2f0   :  { %3935 = vmatprep.subr.bf16.mxu1 %v9396_v42  ;;  %v4262_v42 = vld [vmem:[#allocation8 + $0x840] sm:$0xff] }
 0x2f3   :  { %3936 = vmatpush1.bf16.msra.mxu1 %v9395_v44 }
 0x2f4   :  { %3937 = vmatprep.subr.bf16.mxu1 %v9404_v45 }
 0x2f7   :  { %3938 = vmatpush1.bf16.msra.mxu1 %v9403_v50 }
 0x2f8   :  { %3939 = vmatprep.subr.bf16.mxu1 %v9412_v51  ;;  %v631_v51 = vld [vmem:[#allocation5 + $0xe58] sm:$0xff] }
 0x2f9   :  { %v9452_v61 = vcombine.high %v631_v51, %v635_v52 }
 0x2fb   :  { %3940 = vmatpush1.bf16.msra.mxu1 %v9411_v37  ;;  %v9766_v37 = vcombine.high %v4262_v42, %v4266_v0 }
 0x2fc   :  { %3941 = vmatprep.subr.bf16.mxu1 %v9420_v57  ;;  %v9443_v57 = vcombine.low %v623_v32, %v627_v33  ;;  %v4302_v32 = vld [vmem:[#allocation8 + $0x980] sm:$0xff] }
 0x2fd   :  { %v3621_v5 = vpop.f32.mrb[4].mxu1  ;;  %v4306_v33 = vld [vmem:[#allocation8 + $0x9a0] sm:$0xff] }
 0x2fe   :  { %v10197_v11 = vadd.f32 %v3621_v5, %v697_v62  ;;  %v3623_v16 = vpop.f32.mrb[5].mxu1  ;;  %v4282_v5 = vld [vmem:[#allocation8 + $0x8e0] sm:$0xff] }
 0x2ff   :  { %v3793_v12 = vpop.f32.mrb[4].mxu0  ;;  %v10198_v18 = vadd.f32 %v3623_v16, %v701_v1  ;;  %v3625_v20 = vpop.f32.mrb[6].mxu1  ;;  %3942 = vmatpush1.bf16.msra.mxu1 %v9419_v58  ;;  %v9774_v58 = vcombine.high %v4270_v59, %v4274_v60  ;;  %v4290_v16 = vld [vmem:[#allocation8 + $0x920] sm:$0xff] }
 0x300   :  { %v10201_v21 = vadd.f32 %v3793_v12, %v705_v63  ;;  %v3795_v19 = vpop.f32.mrb[5].mxu0  ;;  %v10199_v24 = vadd.f32 %v3625_v20, %v697_v62  ;;  %v3627_v25 = vpop.f32.mrb[7].mxu1  ;;  %3943 = vmatprep.subr.bf16.mxu1 %v9428_v4  ;;  %v3976_v35 = vmax.f32 %v10197_v11, 0.0  ;;  %v9765_v62 = vcombine.low %v4262_v42, %v4266_v0  ;;  %v4278_v4 = vld [vmem:[#allocation8 + $0x8c0] sm:$0xff]  ;;  %v647_v11 = vld [vmem:[#allocation5 + $0xed8] sm:$0xff] }
 0x301   :  { %v10202_v23 = vadd.f32 %v3795_v19, %v709_v2  ;;  %v3797_v34 = vpop.f32.mrb[6].mxu0  ;;  %v10200_v30 = vadd.f32 %v3627_v25, %v701_v1  ;;  %v3977_v39 = vmax.f32 %v10198_v18, 0.0  ;;  %v643_v1 = vld [vmem:[#allocation5 + $0xeb8] sm:$0xff]  ;;  %v9782_v6 = vcombine.high %v4278_v4, %v4282_v5  ;;  %v4314_v42 = vld [vmem:[#allocation8 + $0x9e0] sm:$0xff] }
 0x302   :  { %v3978_v28 = vmax.f32 %v10201_v21, 0.0  ;;  %v10203_v29 = vadd.f32 %v3797_v34, %v705_v63  ;;  %v3799_v31 = vpop.f32.mrb[7].mxu0  ;;  %v3984_v36 = vmax.f32 %v10199_v24, 0.0  ;;  %v639_v63 = vld [vmem:[#allocation5 + $0xe98] sm:$0xff]  ;;  %v9781_v18 = vcombine.low %v4278_v4, %v4282_v5  ;;  %v4294_v24 = vld [vmem:[#allocation8 + $0x940] sm:$0xff] }
 0x303   :  { %v10204_v38 = vadd.f32 %v3799_v31, %v709_v2  ;;  %v3985_v46 = vmax.f32 %v10200_v30, 0.0  ;;  %3944 = vmatpush1.bf16.msra.mxu1 %v9427_v22  ;;  %v3979_v43 = vmax.f32 %v10202_v23, 0.0  ;;  %v9451_v2 = vcombine.low %v631_v51, %v635_v52  ;;  %v651_v12 = vld [vmem:[#allocation5 + $0xef8] sm:$0xff]  ;;  %v4298_v34 = vld [vmem:[#allocation8 + $0x960] sm:$0xff] }
 0x304   :  { %v3986_v40 = vmax.f32 %v10203_v29, 0.0  ;;  %v11054_v44 = vpack.c.bf16 %v3984_v36, %v3976_v35  ;;  %3945 = vmatprep.subr.bf16.mxu1 %v9436_v27  ;;  %v9460_v8 = vcombine.high %v639_v63, %v643_v1  ;;  %v9459_v7 = vcombine.low %v639_v63, %v643_v1  ;;  %v655_v19 = vld [vmem:[#allocation5 + $0xf18] sm:$0xff] }
 0x305   :  { %v3987_v45 = vmax.f32 %v10204_v38, 0.0  ;;  %v11058_v50 = vpack.c.bf16 %v3985_v46, %v3977_v39  ;;  %v9468_v21 = vcombine.high %v647_v11, %v651_v12  ;;  %v659_v20 = vld [vmem:[#allocation5 + $0xf38] sm:$0xff]  ;;  %v9467_v23 = vcombine.low %v647_v11, %v651_v12 }
 0x306   :  { %v11056_v49 = vpack.c.bf16 %v3986_v40, %v3978_v28  ;;  %v9476_v25 = vcombine.high %v655_v19, %v659_v20  ;;  %v663_v28 = vld [vmem:[#allocation5 + $0xf58] sm:$0xff]  ;;  %v9798_v30 = vcombine.high %v4294_v24, %v4298_v34  ;;  %v9475_v31 = vcombine.low %v655_v19, %v659_v20 }
 0x307   :  { %v11060_v26 = vpack.c.bf16 %v3987_v45, %v3979_v43  ;;  %3946 = vmatpush1.bf16.msra.mxu1 %v9435_v41  ;;  %7187 = vmatprep.mubr.bf16.mxu0 %v11058_v50  ;;  %v667_v29 = vld [vmem:[#allocation5 + $0xf78] sm:$0xff]  ;;  %v9797_v36 = vcombine.low %v4294_v24, %v4298_v34  ;;  %v9806_v40 = vcombine.high %v4302_v32, %v4306_v33  ;;  %v4310_v41 = vld [vmem:[#allocation8 + $0x9c0] sm:$0xff] }
 0x308   :  { %7188 = vmatmul.mubr.bf16.vlgmr.msra.gmra.mrb[8].mxu0 %v11054_v44  ;;  %3947 = vmatprep.subr.bf16.mxu1 %v9444_v47  ;;  %v9484_v35 = vcombine.high %v663_v28, %v667_v29  ;;  %v671_v38 = vld [vmem:[#allocation5 + $0xf98] sm:$0xff]  ;;  %v9483_v46 = vcombine.low %v663_v28, %v667_v29  ;;  %v9805_v43 = vcombine.low %v4302_v32, %v4306_v33  ;;  %v4031_v33 = vld [vmem:[#allocation8 + $0x108] sm:$0xff] }
 0x309   :  { %7199 = vmatpush1.bf16.msra.mxu0 %v9757_v14  ;;  %7230 = vmatprep.mubr.bf16.mxu0 %v11060_v26  ;;  %v4286_v14 = vld [vmem:[#allocation8 + $0x900] sm:$0xff]  ;;  %v675_v39 = vld [vmem:[#allocation5 + $0xfb8] sm:$0xff]  ;;  %v9814_v51 = vcombine.high %v4310_v41, %v4314_v42  ;;  %v9813_v60 = vcombine.low %v4310_v41, %v4314_v42  ;;  %v4039_v42 = vld [vmem:[#allocation8 + $0x148] sm:$0xff] }
 0x30a   :  { %7200 = vmatprep.subr.bf16.mxu0 %v9766_v37  ;;  %v9790_v22 = vcombine.high %v4286_v14, %v4290_v16  ;;  %v9789_v27 = vcombine.low %v4286_v14, %v4290_v16  ;;  %v9492_v0 = vcombine.high %v671_v38, %v675_v39  ;;  %v679_v45 = vld [vmem:[#allocation5 + $0xfd8] sm:$0xff]  ;;  %v9491_v52 = vcombine.low %v671_v38, %v675_v39  ;;  %v4318_v37 = vld [vmem:[#allocation8 + $0xa00] sm:$0xff] }
 0x30b   :  { %3948 = vmatpush1.bf16.msra.mxu1 %v9443_v57  ;;  %v683_v47 = vld [vmem:[#allocation5 + $0xff8] sm:$0xff]  ;;  %v4322_v57 = vld [vmem:[#allocation8 + $0xa20] sm:$0xff] }
 0x30c   :  { %3949 = vmatprep.subr.bf16.mxu1 %v9452_v61  ;;  %v9500_v59 = vcombine.high %v679_v45, %v683_v47  ;;  %v3999_v61 = vld [vmem:[#allocation8 + $0x8] sm:$0xff]  ;;  %v9822_v63 = vcombine.high %v4318_v37, %v4322_v57  ;;  %v9499_v1 = vcombine.low %v679_v45, %v683_v47  ;;  %v9821_v5 = vcombine.low %v4318_v37, %v4322_v57  ;;  %v4358_v39 = vld [vmem:[#allocation8 + $0xb40] sm:$0xff] }
 0x30d   :  { %7201 = vmatpush1.bf16.msra.mxu0 %v9765_v62  ;;  %v4003_v62 = vld [vmem:[#allocation8 + $0x28] sm:$0xff]  ;;  %v4366_v47 = vld [vmem:[#allocation8 + $0xb80] sm:$0xff] }
 0x30e   :  { %7202 = vmatprep.subr.bf16.mxu0 %v9774_v58  ;;  %v4326_v58 = vld [vmem:[#allocation8 + $0xa40] sm:$0xff]  ;;  %v9504_v4 = vcombine.high %v3999_v61, %v4003_v62  ;;  %v9503_v12 = vcombine.low %v3999_v61, %v4003_v62  ;;  %v4047_v57 = vld [vmem:[#allocation8 + $0x188] sm:$0xff] }
 0x30f   :  { %3950 = vmatpush1.bf16.msra.mxu1 %v9451_v2  ;;  %v4330_v2 = vld [vmem:[#allocation8 + $0xa60] sm:$0xff] }
 0x310   :  { %3951 = vmatprep.subr.bf16.mxu1 %v9460_v8  ;;  %v4007_v8 = vld [vmem:[#allocation8 + $0x48] sm:$0xff]  ;;  %v9830_v11 = vcombine.high %v4326_v58, %v4330_v2  ;;  %v9829_v16 = vcombine.low %v4326_v58, %v4330_v2  ;;  %v4374_v62 = vld [vmem:[#allocation8 + $0xbc0] sm:$0xff] }
 0x311   :  { %7203 = vmatpush1.bf16.msra.mxu0 %v9773_v9  ;;  %v4011_v9 = vld [vmem:[#allocation8 + $0x68] sm:$0xff] }
 0x312   :  { %7204 = vmatprep.subr.bf16.mxu0 %v9782_v6  ;;  %v4334_v6 = vld [vmem:[#allocation8 + $0xa80] sm:$0xff]  ;;  %v9512_v14 = vcombine.high %v4007_v8, %v4011_v9  ;;  %v9511_v20 = vcombine.low %v4007_v8, %v4011_v9  ;;  %v4055_v2 = vld [vmem:[#allocation8 + $0x1c8] sm:$0xff] }
 0x313   :  { %3952 = vmatpush1.bf16.msra.mxu1 %v9459_v7  ;;  %v4338_v7 = vld [vmem:[#allocation8 + $0xaa0] sm:$0xff] }
 0x314   :  { %3953 = vmatprep.subr.bf16.mxu1 %v9468_v21  ;;  %v4015_v21 = vld [vmem:[#allocation8 + $0x88] sm:$0xff]  ;;  %v9838_v19 = vcombine.high %v4334_v6, %v4338_v7  ;;  %v9837_v34 = vcombine.low %v4334_v6, %v4338_v7 }
 0x315   :  { %7205 = vmatpush1.bf16.msra.mxu0 %v9781_v18  ;;  %v4019_v18 = vld [vmem:[#allocation8 + $0xa8] sm:$0xff] }
 0x316   :  { %7206 = vmatprep.subr.bf16.mxu0 %v9790_v22  ;;  %v4342_v22 = vld [vmem:[#allocation8 + $0xac0] sm:$0xff]  ;;  %v9520_v24 = vcombine.high %v4015_v21, %v4019_v18  ;;  %v9519_v29 = vcombine.low %v4015_v21, %v4019_v18  ;;  %v4067_v6 = vld [vmem:[#allocation8 + $0x228] sm:$0xff] }
 0x317   :  { %3954 = vmatpush1.bf16.msra.mxu1 %v9467_v23  ;;  %v4346_v23 = vld [vmem:[#allocation8 + $0xae0] sm:$0xff]  ;;  %v4071_v18 = vld [vmem:[#allocation8 + $0x248] sm:$0xff] }
 0x318   :  { %3955 = vmatprep.subr.bf16.mxu1 %v9476_v25  ;;  %v4023_v25 = vld [vmem:[#allocation8 + $0xc8] sm:$0xff]  ;;  %v9846_v28 = vcombine.high %v4342_v22, %v4346_v23  ;;  %v9845_v32 = vcombine.low %v4342_v22, %v4346_v23  ;;  %v4386_v21 = vld [vmem:[#allocation8 + $0xc20] sm:$0xff] }
 0x319   :  { %7207 = vmatpush1.bf16.msra.mxu0 %v9789_v27  ;;  %v4027_v27 = vld [vmem:[#allocation8 + $0xe8] sm:$0xff] }
 0x31a   :  { %7208 = vmatprep.subr.bf16.mxu0 %v9798_v30  ;;  %v4350_v30 = vld [vmem:[#allocation8 + $0xb00] sm:$0xff]  ;;  %v9527_v38 = vcombine.low %v4023_v25, %v4027_v27 }
 0x31b   :  { %3956 = vmatpush1.bf16.msra.mxu1 %v9475_v31  ;;  %v9528_v31 = vcombine.high %v4023_v25, %v4027_v27  ;;  %v4394_v25 = vld [vmem:[#allocation8 + $0xc60] sm:$0xff]  ;;  %v4079_v27 = vld [vmem:[#allocation8 + $0x288] sm:$0xff] }
 0x31c   :  { %3957 = vmatprep.subr.bf16.mxu1 %v9484_v35  ;;  %v4035_v35 = vld [vmem:[#allocation8 + $0x128] sm:$0xff] }
 0x31d   :  { %7209 = vmatpush1.bf16.msra.mxu0 %v9797_v36  ;;  %v9535_v45 = vcombine.low %v4031_v33, %v4035_v35 }
 0x31e   :  { %7210 = vmatprep.subr.bf16.mxu0 %v9806_v40  ;;  %v4362_v40 = vld [vmem:[#allocation8 + $0xb60] sm:$0xff] }
 0x31f   :  { %3958 = vmatpush1.bf16.msra.mxu1 %v9483_v46  ;;  %v9536_v46 = vcombine.high %v4031_v33, %v4035_v35  ;;  %v9861_v37 = vcombine.low %v4358_v39, %v4362_v40  ;;  %v4402_v33 = vld [vmem:[#allocation8 + $0xca0] sm:$0xff]  ;;  %v4087_v35 = vld [vmem:[#allocation8 + $0x2c8] sm:$0xff] }
 0x320   :  { %3959 = vmatprep.subr.bf16.mxu1 %v9492_v0  ;;  %v4043_v0 = vld [vmem:[#allocation8 + $0x168] sm:$0xff] }
 0x321   :  { %7211 = vmatpush1.bf16.msra.mxu0 %v9805_v43  ;;  %v9862_v43 = vcombine.high %v4358_v39, %v4362_v40  ;;  %v9543_v61 = vcombine.low %v4039_v42, %v4043_v0 }
 0x322   :  { %7212 = vmatprep.subr.bf16.mxu0 %v9814_v51  ;;  %v4370_v51 = vld [vmem:[#allocation8 + $0xba0] sm:$0xff] }
 0x323   :  { %3960 = vmatpush1.bf16.msra.mxu1 %v9491_v52  ;;  %v9544_v52 = vcombine.high %v4039_v42, %v4043_v0  ;;  %v9869_v58 = vcombine.low %v4366_v47, %v4370_v51  ;;  %v4410_v42 = vld [vmem:[#allocation8 + $0xce0] sm:$0xff]  ;;  %v4095_v0 = vld [vmem:[#allocation8 + $0x308] sm:$0xff] }
 0x324   :  { %3961 = vmatprep.subr.bf16.mxu1 %v9500_v59  ;;  %v4051_v59 = vld [vmem:[#allocation8 + $0x1a8] sm:$0xff] }
 0x325   :  { %7213 = vmatpush1.bf16.msra.mxu0 %v9813_v60  ;;  %v9870_v60 = vcombine.high %v4366_v47, %v4370_v51  ;;  %v9551_v8 = vcombine.low %v4047_v57, %v4051_v59 }
 0x326   :  { %7214 = vmatprep.subr.bf16.mxu0 %v9822_v63  ;;  %v4378_v63 = vld [vmem:[#allocation8 + $0xbe0] sm:$0xff] }
 0x327   :  { %3962 = vmatpush1.bf16.msra.mxu1 %v9499_v1  ;;  %v9552_v1 = vcombine.high %v4047_v57, %v4051_v59  ;;  %v4418_v57 = vld [vmem:[#allocation8 + $0xd20] sm:$0xff]  ;;  %v4103_v59 = vld [vmem:[#allocation8 + $0x348] sm:$0xff] }
 0x328   :  { %7284 = vmatprep.subr.bf16.mxu1 %v9504_v4  ;;  %v4059_v4 = vld [vmem:[#allocation8 + $0x1e8] sm:$0xff] }
 0x329   :  { %7215 = vmatpush1.bf16.msra.mxu0 %v9821_v5  ;;  %v9878_v5 = vcombine.high %v4374_v62, %v4378_v63  ;;  %v9560_v9 = vcombine.high %v4055_v2, %v4059_v4  ;;  %v9559_v7 = vcombine.low %v4055_v2, %v4059_v4  ;;  %v4426_v2 = vld [vmem:[#allocation8 + $0xd60] sm:$0xff]  ;;  %v4111_v4 = vld [vmem:[#allocation8 + $0x388] sm:$0xff] }
 0x32a   :  { %3964 = vmatmul.mubr.bf16.vlgmr.msra.gmra.mrb[8].mxu1 %v10991_v48  ;;  %7216 = vmatprep.subr.bf16.mxu0 %v9830_v11  ;;  %v4354_v48 = vld [vmem:[#allocation8 + $0xb20] sm:$0xff]  ;;  %v9877_v11 = vcombine.low %v4374_v62, %v4378_v63 }
 0x32b   :  { %7285 = vmatpush1.bf16.msra.mxu1 %v9503_v12  ;;  %7316 = vmatprep.mubr.bf16.mxu1 %v11021_v17  ;;  %v9854_v36 = vcombine.high %v4350_v30, %v4354_v48  ;;  %v9853_v41 = vcombine.low %v4350_v30, %v4354_v48  ;;  %v4063_v12 = vld [vmem:[#allocation8 + $0x208] sm:$0xff] }
 0x32c   :  { %7286 = vmatprep.subr.bf16.mxu1 %v9512_v14  ;;  %v9568_v14 = vcombine.high %v4063_v12, %v4067_v6  ;;  %v9567_v23 = vcombine.low %v4063_v12, %v4067_v6  ;;  %v4430_v6 = vld [vmem:[#allocation8 + $0xd80] sm:$0xff] }
 0x32d   :  { %7217 = vmatpush1.bf16.msra.mxu0 %v9829_v16  ;;  %v4382_v16 = vld [vmem:[#allocation8 + $0xc00] sm:$0xff] }
 0x32e   :  { %7218 = vmatprep.subr.bf16.mxu0 %v9838_v19  ;;  %v4075_v19 = vld [vmem:[#allocation8 + $0x268] sm:$0xff]  ;;  %v9886_v22 = vcombine.high %v4382_v16, %v4386_v21 }
 0x32f   :  { %7287 = vmatpush1.bf16.msra.mxu1 %v9511_v20  ;;  %v9885_v20 = vcombine.low %v4382_v16, %v4386_v21  ;;  %v9575_v48 = vcombine.low %v4071_v18, %v4075_v19  ;;  %v4123_v16 = vld [vmem:[#allocation8 + $0x3e8] sm:$0xff] }
 0x330   :  { %7288 = vmatprep.subr.bf16.mxu1 %v9520_v24  ;;  %v9576_v24 = vcombine.high %v4071_v18, %v4075_v19 }
 0x331   :  { %7219 = vmatpush1.bf16.msra.mxu0 %v9837_v34  ;;  %v4390_v34 = vld [vmem:[#allocation8 + $0xc40] sm:$0xff] }
 0x332   :  { %7220 = vmatprep.subr.bf16.mxu0 %v9846_v28  ;;  %v4083_v28 = vld [vmem:[#allocation8 + $0x2a8] sm:$0xff]  ;;  %v9894_v30 = vcombine.high %v4390_v34, %v4394_v25 }
 0x333   :  { %7289 = vmatpush1.bf16.msra.mxu1 %v9519_v29  ;;  %v9893_v29 = vcombine.low %v4390_v34, %v4394_v25  ;;  %v9583_v40 = vcombine.low %v4079_v27, %v4083_v28  ;;  %v4131_v34 = vld [vmem:[#allocation8 + $0x428] sm:$0xff] }
 0x334   :  { %7290 = vmatprep.subr.bf16.mxu1 %v9528_v31  ;;  %v9584_v31 = vcombine.high %v4079_v27, %v4083_v28 }
 0x335   :  { %7221 = vmatpush1.bf16.msra.mxu0 %v9845_v32  ;;  %v4398_v32 = vld [vmem:[#allocation8 + $0xc80] sm:$0xff] }
 0x336   :  { %7222 = vmatprep.subr.bf16.mxu0 %v9854_v36  ;;  %v4091_v36 = vld [vmem:[#allocation8 + $0x2e8] sm:$0xff]  ;;  %v9902_v39 = vcombine.high %v4398_v32, %v4402_v33 }
 0x337   :  { %7291 = vmatpush1.bf16.msra.mxu1 %v9527_v38  ;;  %v9901_v38 = vcombine.low %v4398_v32, %v4402_v33  ;;  %v9591_v51 = vcombine.low %v4087_v35, %v4091_v36  ;;  %v4139_v32 = vld [vmem:[#allocation8 + $0x468] sm:$0xff] }
 0x338   :  { %7292 = vmatprep.subr.bf16.mxu1 %v9536_v46  ;;  %v9592_v46 = vcombine.high %v4087_v35, %v4091_v36 }
 0x339   :  { %7223 = vmatpush1.bf16.msra.mxu0 %v9853_v41  ;;  %v4406_v41 = vld [vmem:[#allocation8 + $0xcc0] sm:$0xff] }
 0x33a   :  { %7224 = vmatprep.subr.bf16.mxu0 %v9862_v43  ;;  %v4099_v43 = vld [vmem:[#allocation8 + $0x328] sm:$0xff]  ;;  %v9910_v47 = vcombine.high %v4406_v41, %v4410_v42 }
 0x33b   :  { %7293 = vmatpush1.bf16.msra.mxu1 %v9535_v45  ;;  %v9909_v45 = vcombine.low %v4406_v41, %v4410_v42  ;;  %v9599_v63 = vcombine.low %v4095_v0, %v4099_v43  ;;  %v4458_v41 = vld [vmem:[#allocation8 + $0xe60] sm:$0xff] }
 0x33c   :  { %7294 = vmatprep.subr.bf16.mxu1 %v9544_v52  ;;  %v9600_v52 = vcombine.high %v4095_v0, %v4099_v43 }
 0x33d   :  { %7225 = vmatpush1.bf16.msra.mxu0 %v9861_v37  ;;  %v4414_v37 = vld [vmem:[#allocation8 + $0xd00] sm:$0xff] }
 0x33e   :  { %7226 = vmatprep.subr.bf16.mxu0 %v9870_v60  ;;  %v4107_v60 = vld [vmem:[#allocation8 + $0x368] sm:$0xff]  ;;  %v9918_v62 = vcombine.high %v4414_v37, %v4418_v57 }
 0x33f   :  { %7295 = vmatpush1.bf16.msra.mxu1 %v9543_v61  ;;  %v9917_v61 = vcombine.low %v4414_v37, %v4418_v57  ;;  %v4155_v37 = vld [vmem:[#allocation8 + $0x4e8] sm:$0xff] }
 0x340   :  { %7296 = vmatprep.subr.bf16.mxu1 %v9552_v1  ;;  %v9608_v1 = vcombine.high %v4103_v59, %v4107_v60 }
 0x341   :  { %7227 = vmatpush1.bf16.msra.mxu0 %v9869_v58  ;;  %v4422_v58 = vld [vmem:[#allocation8 + $0xd40] sm:$0xff] }
 0x342   :  { %7228 = vmatprep.subr.bf16.mxu0 %v9878_v5  ;;  %v4115_v5 = vld [vmem:[#allocation8 + $0x3a8] sm:$0xff] }
 0x343   :  { %7297 = vmatpush1.bf16.msra.mxu1 %v9551_v8  ;;  %v9925_v8 = vcombine.low %v4422_v58, %v4426_v2  ;;  %v9616_v12 = vcombine.high %v4111_v4, %v4115_v5  ;;  %v9615_v19 = vcombine.low %v4111_v4, %v4115_v5 }
 0x344   :  { %7298 = vmatprep.subr.bf16.mxu1 %v9560_v9  ;;  %v9926_v9 = vcombine.high %v4422_v58, %v4426_v2  ;;  %v4163_v58 = vld [vmem:[#allocation8 + $0x528] sm:$0xff] }
 0x345   :  { %7229 = vmatpush1.bf16.msra.mxu0 %v9877_v11  ;;  %v9607_v11 = vcombine.low %v4103_v59, %v4107_v60 }
 0x346   :  { %7241 = vmatprep.subr.bf16.mxu0 %v9886_v22  ;;  %v4438_v22 = vld [vmem:[#allocation8 + $0xdc0] sm:$0xff] }
 0x347   :  { %7299 = vmatpush1.bf16.msra.mxu1 %v9559_v7  ;;  %v4434_v7 = vld [vmem:[#allocation8 + $0xda0] sm:$0xff] }
 0x348   :  { %7231 = vmatmul.mubr.bf16.vlgmr.msra.gmra.mrb[8].mxu0 %v11056_v49  ;;  %7300 = vmatprep.subr.bf16.mxu1 %v9568_v14  ;;  %v4119_v14 = vld [vmem:[#allocation8 + $0x3c8] sm:$0xff]  ;;  %v9933_v21 = vcombine.low %v4430_v6, %v4434_v7  ;;  %v9934_v18 = vcombine.high %v4430_v6, %v4434_v7 }
 0x349   :  { %7242 = vmatpush1.bf16.msra.mxu0 %v9885_v20  ;;  %v9624_v20 = vcombine.high %v4119_v14, %v4123_v16  ;;  %v9623_v28 = vcombine.low %v4119_v14, %v4123_v16  ;;  %v4171_v6 = vld [vmem:[#allocation8 + $0x568] sm:$0xff] }
 0x34a   :  { %7243 = vmatprep.subr.bf16.mxu0 %v9894_v30  ;;  %v4446_v30 = vld [vmem:[#allocation8 + $0xe00] sm:$0xff] }
 0x34b   :  { %7301 = vmatpush1.bf16.msra.mxu1 %v9567_v23  ;;  %v4442_v23 = vld [vmem:[#allocation8 + $0xde0] sm:$0xff] }
 0x34c   :  { %7302 = vmatprep.subr.bf16.mxu1 %v9576_v24  ;;  %v4127_v24 = vld [vmem:[#allocation8 + $0x408] sm:$0xff]  ;;  %v9941_v25 = vcombine.low %v4438_v22, %v4442_v23  ;;  %v9942_v27 = vcombine.high %v4438_v22, %v4442_v23 }
 0x34d   :  { %7244 = vmatpush1.bf16.msra.mxu0 %v9893_v29  ;;  %v9632_v29 = vcombine.high %v4127_v24, %v4131_v34  ;;  %v9631_v36 = vcombine.low %v4127_v24, %v4131_v34  ;;  %v4179_v22 = vld [vmem:[#allocation8 + $0x5a8] sm:$0xff] }
 0x34e   :  { %7245 = vmatprep.subr.bf16.mxu0 %v9902_v39  ;;  %v4143_v39 = vld [vmem:[#allocation8 + $0x488] sm:$0xff] }
 0x34f   :  { %7303 = vmatpush1.bf16.msra.mxu1 %v9575_v48  ;;  %v4450_v48 = vld [vmem:[#allocation8 + $0xe20] sm:$0xff] }
 0x350   :  { %7304 = vmatprep.subr.bf16.mxu1 %v9584_v31  ;;  %v4135_v31 = vld [vmem:[#allocation8 + $0x448] sm:$0xff]  ;;  %v9949_v33 = vcombine.low %v4446_v30, %v4450_v48  ;;  %v9950_v35 = vcombine.high %v4446_v30, %v4450_v48  ;;  %v4498_v30 = vld [vmem:[#allocation8 + $0xfa0] sm:$0xff] }
 0x351   :  { %7246 = vmatpush1.bf16.msra.mxu0 %v9901_v38  ;;  %v9640_v38 = vcombine.high %v4135_v31, %v4139_v32  ;;  %v9639_v43 = vcombine.low %v4135_v31, %v4139_v32 }
 0x352   :  { %7247 = vmatprep.subr.bf16.mxu0 %v9910_v47  ;;  %v4462_v47 = vld [vmem:[#allocation8 + $0xe80] sm:$0xff] }
 0x353   :  { %7305 = vmatpush1.bf16.msra.mxu1 %v9583_v40  ;;  %v4147_v40 = vld [vmem:[#allocation8 + $0x4a8] sm:$0xff] }
 0x354   :  { %7306 = vmatprep.subr.bf16.mxu1 %v9592_v46  ;;  %v4454_v46 = vld [vmem:[#allocation8 + $0xe40] sm:$0xff]  ;;  %v9647_v60 = vcombine.low %v4143_v39, %v4147_v40 }
 0x355   :  { %7248 = vmatpush1.bf16.msra.mxu0 %v9909_v45  ;;  %v9957_v42 = vcombine.low %v4454_v46, %v4458_v41  ;;  %v9958_v0 = vcombine.high %v4454_v46, %v4458_v41  ;;  %v9648_v45 = vcombine.high %v4143_v39, %v4147_v40  ;;  %v4506_v39 = vld [vmem:[#allocation8 + $0xfe0] sm:$0xff] }
 0x356   :  { %7249 = vmatprep.subr.bf16.mxu0 %v9918_v62  ;;  %v4470_v62 = vld [vmem:[#allocation8 + $0xec0] sm:$0xff] }
 0x357   :  { %7307 = vmatpush1.bf16.msra.mxu1 %v9591_v51  ;;  %v4466_v51 = vld [vmem:[#allocation8 + $0xea0] sm:$0xff] }
 0x358   :  { %7308 = vmatprep.subr.bf16.mxu1 %v9600_v52  ;;  %v4151_v52 = vld [vmem:[#allocation8 + $0x4c8] sm:$0xff]  ;;  %v9965_v57 = vcombine.low %v4462_v47, %v4466_v51  ;;  %v9966_v59 = vcombine.high %v4462_v47, %v4466_v51  ;;  %v11075_v47 = vld [vmem:[#allocation8 + $0x30] sm:$0xff] }
 0x359   :  { %7250 = vmatpush1.bf16.msra.mxu0 %v9917_v61  ;;  %v9656_v61 = vcombine.high %v4151_v52, %v4155_v37  ;;  %v9655_v5 = vcombine.low %v4151_v52, %v4155_v37 }
 0x35a   :  { %7251 = vmatprep.subr.bf16.mxu0 %v9926_v9  ;;  %v4478_v9 = vld [vmem:[#allocation8 + $0xf00] sm:$0xff] }
 0x35b   :  { %7309 = vmatpush1.bf16.msra.mxu1 %v9599_v63  ;;  %v4474_v63 = vld [vmem:[#allocation8 + $0xee0] sm:$0xff] }
 0x35c   :  { %7310 = vmatprep.subr.bf16.mxu1 %v9608_v1  ;;  %v4159_v1 = vld [vmem:[#allocation8 + $0x508] sm:$0xff]  ;;  %v9973_v2 = vcombine.low %v4470_v62, %v4474_v63  ;;  %v9974_v4 = vcombine.high %v4470_v62, %v4474_v63 }
 0x35d   :  { %7252 = vmatpush1.bf16.msra.mxu0 %v9925_v8  ;;  %v9664_v8 = vcombine.high %v4159_v1, %v4163_v58  ;;  %v9663_v16 = vcombine.low %v4159_v1, %v4163_v58  ;;  %v4215_v63 = vld [vmem:[#allocation8 + $0x6c8] sm:$0xff] }
 0x35e   :  { %7253 = vmatprep.subr.bf16.mxu0 %v9934_v18  ;;  %v4486_v18 = vld [vmem:[#allocation8 + $0xf40] sm:$0xff]  ;;  %v4219_v1 = vld [vmem:[#allocation8 + $0x6e8] sm:$0xff] }
 0x35f   :  { %7311 = vmatpush1.bf16.msra.mxu1 %v9607_v11  ;;  %v4482_v11 = vld [vmem:[#allocation8 + $0xf20] sm:$0xff] }
 0x360   :  { %7312 = vmatprep.subr.bf16.mxu1 %v9616_v12  ;;  %v4167_v12 = vld [vmem:[#allocation8 + $0x548] sm:$0xff]  ;;  %v9981_v7 = vcombine.low %v4478_v9, %v4482_v11  ;;  %v9982_v14 = vcombine.high %v4478_v9, %v4482_v11 }
 0x361   :  { %7254 = vmatpush1.bf16.msra.mxu0 %v9933_v21  ;;  %v9672_v21 = vcombine.high %v4167_v12, %v4171_v6  ;;  %v9671_v34 = vcombine.low %v4167_v12, %v4171_v6  ;;  %v4231_v11 = vld [vmem:[#allocation8 + $0x748] sm:$0xff] }
 0x362   :  { %7255 = vmatprep.subr.bf16.mxu0 %v9942_v27  ;;  %v4183_v27 = vld [vmem:[#allocation8 + $0x5c8] sm:$0xff] }
 0x363   :  { %7313 = vmatpush1.bf16.msra.mxu1 %v9615_v19  ;;  %v4490_v19 = vld [vmem:[#allocation8 + $0xf60] sm:$0xff]  ;;  %v4235_v12 = vld [vmem:[#allocation8 + $0x768] sm:$0xff] }
 0x364   :  { %7314 = vmatprep.subr.bf16.mxu1 %v9624_v20  ;;  %v4175_v20 = vld [vmem:[#allocation8 + $0x588] sm:$0xff]  ;;  %v9989_v23 = vcombine.low %v4486_v18, %v4490_v19  ;;  %v9990_v24 = vcombine.high %v4486_v18, %v4490_v19 }
 0x365   :  { %7256 = vmatpush1.bf16.msra.mxu0 %v9941_v25  ;;  %v9680_v25 = vcombine.high %v4175_v20, %v4179_v22  ;;  %v9679_v31 = vcombine.low %v4175_v20, %v4179_v22  ;;  %v4247_v19 = vld [vmem:[#allocation8 + $0x7c8] sm:$0xff] }
 0x366   :  { %7257 = vmatprep.subr.bf16.mxu0 %v9950_v35  ;;  %v4191_v35 = vld [vmem:[#allocation8 + $0x608] sm:$0xff] }
 0x367   :  { %7315 = vmatpush1.bf16.msra.mxu1 %v9623_v28  ;;  %v4187_v28 = vld [vmem:[#allocation8 + $0x5e8] sm:$0xff] }
 0x368   :  { %7327 = vmatprep.subr.bf16.mxu1 %v9632_v29  ;;  %v4494_v29 = vld [vmem:[#allocation8 + $0xf80] sm:$0xff]  ;;  %v9687_v46 = vcombine.low %v4183_v27, %v4187_v28  ;;  %v4251_v20 = vld [vmem:[#allocation8 + $0x7e8] sm:$0xff] }
 0x369   :  { %7258 = vmatpush1.bf16.msra.mxu0 %v9949_v33  ;;  %v9998_v48 = vcombine.high %v4494_v29, %v4498_v30  ;;  %v9997_v32 = vcombine.low %v4494_v29, %v4498_v30  ;;  %v9688_v33 = vcombine.high %v4183_v27, %v4187_v28  ;;  %v4263_v28 = vld [vmem:[#allocation8 + $0x848] sm:$0xff] }
 0x36a   :  { %7317 = vmatmul.mubr.bf16.vlgmr.msra.gmra.mrb[12].mxu1 %v11019_v13  ;;  %7259 = vmatprep.subr.bf16.mxu0 %v9958_v0  ;;  %v4199_v0 = vld [vmem:[#allocation8 + $0x648] sm:$0xff] }
 0x36b   :  { %7328 = vmatpush1.bf16.msra.mxu1 %v9631_v36  ;;  %7359 = vmatprep.mubr.bf16.mxu1 %v11058_v50  ;;  %v4195_v36 = vld [vmem:[#allocation8 + $0x628] sm:$0xff] }
 0x36c   :  { %7329 = vmatprep.subr.bf16.mxu1 %v9640_v38  ;;  %v4502_v38 = vld [vmem:[#allocation8 + $0xfc0] sm:$0xff]  ;;  %v9695_v52 = vcombine.low %v4191_v35, %v4195_v36  ;;  %v4267_v29 = vld [vmem:[#allocation8 + $0x868] sm:$0xff] }
 0x36d   :  { %7260 = vmatpush1.bf16.msra.mxu0 %v9957_v42  ;;  %v10006_v40 = vcombine.high %v4502_v38, %v4506_v39  ;;  %v10005_v41 = vcombine.low %v4502_v38, %v4506_v39  ;;  %v9696_v42 = vcombine.high %v4191_v35, %v4195_v36  ;;  %v4279_v36 = vld [vmem:[#allocation8 + $0x8c8] sm:$0xff] }
 0x36e   :  { %7261 = vmatprep.subr.bf16.mxu0 %v9966_v59  ;;  %v4207_v59 = vld [vmem:[#allocation8 + $0x688] sm:$0xff] }
 0x36f   :  { %7330 = vmatpush1.bf16.msra.mxu1 %v9639_v43  ;;  %v4203_v43 = vld [vmem:[#allocation8 + $0x668] sm:$0xff] }
 0x370   :  { %7331 = vmatprep.subr.bf16.mxu1 %v9648_v45  ;;  %v11073_v45 = vld [vmem:[#allocation8 + $0x10] sm:$0xff]  ;;  %v4283_v38 = vld [vmem:[#allocation8 + $0x8e8] sm:$0xff] }
 0x371   :  { %7262 = vmatpush1.bf16.msra.mxu0 %v9965_v57  ;;  %v9506_v51 = vcombine.high %v11073_v45, %v11075_v47  ;;  %v9505_v37 = vcombine.low %v11073_v45, %v11075_v47  ;;  %v9704_v57 = vcombine.high %v4199_v0, %v4203_v43 }
 0x372   :  { %7263 = vmatprep.subr.bf16.mxu0 %v9974_v4  ;;  %v4223_v4 = vld [vmem:[#allocation8 + $0x708] sm:$0xff] }
 0x373   :  { %7332 = vmatpush1.bf16.msra.mxu1 %v9647_v60  ;;  %v4211_v60 = vld [vmem:[#allocation8 + $0x6a8] sm:$0xff] }
 0x374   :  { %7333 = vmatprep.subr.bf16.mxu1 %v9656_v61  ;;  %v9703_v61 = vcombine.low %v4199_v0, %v4203_v43  ;;  %v9712_v62 = vcombine.high %v4207_v59, %v4211_v60  ;;  %v9711_v58 = vcombine.low %v4207_v59, %v4211_v60  ;;  %v4295_v43 = vld [vmem:[#allocation8 + $0x948] sm:$0xff] }
 0x375   :  { %7264 = vmatpush1.bf16.msra.mxu0 %v9973_v2  ;;  %v9720_v2 = vcombine.high %v4215_v63, %v4219_v1  ;;  %v4303_v59 = vld [vmem:[#allocation8 + $0x988] sm:$0xff] }
 0x376   :  { %7265 = vmatprep.subr.bf16.mxu0 %v9982_v14  ;;  %v4239_v14 = vld [vmem:[#allocation8 + $0x788] sm:$0xff] }
 0x377   :  { %7334 = vmatpush1.bf16.msra.mxu1 %v9655_v5  ;;  %v4227_v5 = vld [vmem:[#allocation8 + $0x728] sm:$0xff] }
 0x378   :  { %7335 = vmatprep.subr.bf16.mxu1 %v9664_v8  ;;  %v9719_v8 = vcombine.low %v4215_v63, %v4219_v1  ;;  %v9728_v9 = vcombine.high %v4223_v4, %v4227_v5  ;;  %v9727_v6 = vcombine.low %v4223_v4, %v4227_v5  ;;  %v4307_v60 = vld [vmem:[#allocation8 + $0x9a8] sm:$0xff] }
 0x379   :  { %7266 = vmatpush1.bf16.msra.mxu0 %v9981_v7  ;;  %v9736_v7 = vcombine.high %v4231_v11, %v4235_v12  ;;  %v4311_v63 = vld [vmem:[#allocation8 + $0x9c8] sm:$0xff] }
 0x37a   :  { %7267 = vmatprep.subr.bf16.mxu0 %v9990_v24  ;;  %v4255_v24 = vld [vmem:[#allocation8 + $0x808] sm:$0xff] }
 0x37b   :  { %7336 = vmatpush1.bf16.msra.mxu1 %v9663_v16  ;;  %v4243_v16 = vld [vmem:[#allocation8 + $0x7a8] sm:$0xff] }
 0x37c   :  { %7337 = vmatprep.subr.bf16.mxu1 %v9672_v21  ;;  %v9735_v21 = vcombine.low %v4231_v11, %v4235_v12  ;;  %v9744_v18 = vcombine.high %v4239_v14, %v4243_v16  ;;  %v9743_v22 = vcombine.low %v4239_v14, %v4243_v16  ;;  %v4315_v1 = vld [vmem:[#allocation8 + $0x9e8] sm:$0xff] }
 0x37d   :  { %7268 = vmatpush1.bf16.msra.mxu0 %v9989_v23  ;;  %v9752_v23 = vcombine.high %v4247_v19, %v4251_v20  ;;  %v4319_v4 = vld [vmem:[#allocation8 + $0xa08] sm:$0xff] }
 0x37e   :  { %7269 = vmatprep.subr.bf16.mxu0 %v9998_v48  ;;  %v9768_v48 = vcombine.high %v4263_v28, %v4267_v29  ;;  %v4323_v5 = vld [vmem:[#allocation8 + $0xa28] sm:$0xff] }
 0x37f   :  { %7338 = vmatpush1.bf16.msra.mxu1 %v9671_v34  ;;  %v4259_v34 = vld [vmem:[#allocation8 + $0x828] sm:$0xff] }
 0x380   :  { %7339 = vmatprep.subr.bf16.mxu1 %v9680_v25  ;;  %v9751_v25 = vcombine.low %v4247_v19, %v4251_v20  ;;  %v9760_v27 = vcombine.high %v4255_v24, %v4259_v34  ;;  %v9759_v30 = vcombine.low %v4255_v24, %v4259_v34  ;;  %v4327_v11 = vld [vmem:[#allocation8 + $0xa48] sm:$0xff] }
 0x381   :  { %7270 = vmatpush1.bf16.msra.mxu0 %v9997_v32  ;;  %v4275_v32 = vld [vmem:[#allocation8 + $0x8a8] sm:$0xff] }
 0x382   :  { %7271 = vmatprep.subr.bf16.mxu0 %v10006_v40  ;;  %v9784_v40 = vcombine.high %v4279_v36, %v4283_v38  ;;  %v4331_v12 = vld [vmem:[#allocation8 + $0xa68] sm:$0xff] }
 0x383   :  { %7340 = vmatpush1.bf16.msra.mxu1 %v9679_v31  ;;  %v4271_v31 = vld [vmem:[#allocation8 + $0x888] sm:$0xff] }
 0x384   :  { %7341 = vmatprep.subr.bf16.mxu1 %v9688_v33  ;;  %v9767_v33 = vcombine.low %v4263_v28, %v4267_v29  ;;  %v9776_v35 = vcombine.high %v4271_v31, %v4275_v32  ;;  %v9775_v39 = vcombine.low %v4271_v31, %v4275_v32  ;;  %v4335_v14 = vld [vmem:[#allocation8 + $0xa88] sm:$0xff] }
 0x385   :  { %7272 = vmatpush1.bf16.msra.mxu0 %v10005_v41  ;;  %v4291_v41 = vld [vmem:[#allocation8 + $0x928] sm:$0xff] }
 0x386   :  { %7456 = vmatprep.subr.bf16.mxu0 %v9506_v51  ;;  %v4299_v51 = vld [vmem:[#allocation8 + $0x968] sm:$0xff] }
 0x387   :  { %7342 = vmatpush1.bf16.msra.mxu1 %v9687_v46  ;;  %v4287_v46 = vld [vmem:[#allocation8 + $0x908] sm:$0xff] }
 0x388   :  { %7343 = vmatprep.subr.bf16.mxu1 %v9696_v42  ;;  %v9783_v42 = vcombine.low %v4279_v36, %v4283_v38  ;;  %v9792_v0 = vcombine.high %v4287_v46, %v4291_v41  ;;  %v4339_v16 = vld [vmem:[#allocation8 + $0xaa8] sm:$0xff] }
 0x389   :  { %v4343_v19 = vld [vmem:[#allocation8 + $0xac8] sm:$0xff] }
 0x38a   :  { %v4347_v20 = vld [vmem:[#allocation8 + $0xae8] sm:$0xff] }
 0x38b   :  { %7344 = vmatpush1.bf16.msra.mxu1 %v9695_v52  ;;  %v9791_v52 = vcombine.low %v4287_v46, %v4291_v41  ;;  %v4351_v24 = vld [vmem:[#allocation8 + $0xb08] sm:$0xff] }
 0x38c   :  { %7345 = vmatprep.subr.bf16.mxu1 %v9704_v57  ;;  %v9800_v57 = vcombine.high %v4295_v43, %v4299_v51  ;;  %v4355_v34 = vld [vmem:[#allocation8 + $0xb28] sm:$0xff] }
 0x38d   :  { %v4359_v28 = vld [vmem:[#allocation8 + $0xb48] sm:$0xff] }
 0x38e   :  { %v4363_v29 = vld [vmem:[#allocation8 + $0xb68] sm:$0xff] }
 0x38f   :  { %7346 = vmatpush1.bf16.msra.mxu1 %v9703_v61  ;;  %v9799_v61 = vcombine.low %v4295_v43, %v4299_v51  ;;  %v4367_v31 = vld [vmem:[#allocation8 + $0xb88] sm:$0xff] }
 0x390   :  { %7347 = vmatprep.subr.bf16.mxu1 %v9712_v62  ;;  %v9808_v62 = vcombine.high %v4303_v59, %v4307_v60  ;;  %v4371_v32 = vld [vmem:[#allocation8 + $0xba8] sm:$0xff] }
 0x391   :  { %v4375_v36 = vld [vmem:[#allocation8 + $0xbc8] sm:$0xff] }
 0x392   :  { %v4379_v38 = vld [vmem:[#allocation8 + $0xbe8] sm:$0xff] }
 0x393   :  { %7348 = vmatpush1.bf16.msra.mxu1 %v9711_v58  ;;  %v9807_v58 = vcombine.low %v4303_v59, %v4307_v60  ;;  %v4383_v46 = vld [vmem:[#allocation8 + $0xc08] sm:$0xff] }
 0x394   :  { %7349 = vmatprep.subr.bf16.mxu1 %v9720_v2  ;;  %v9816_v2 = vcombine.high %v4311_v63, %v4315_v1  ;;  %v4387_v41 = vld [vmem:[#allocation8 + $0xc28] sm:$0xff] }
 0x395   :  { %v4391_v43 = vld [vmem:[#allocation8 + $0xc48] sm:$0xff] }
 0x396   :  { %v4395_v51 = vld [vmem:[#allocation8 + $0xc68] sm:$0xff] }
 0x397   :  { %7350 = vmatpush1.bf16.msra.mxu1 %v9719_v8  ;;  %v9815_v8 = vcombine.low %v4311_v63, %v4315_v1  ;;  %v4399_v59 = vld [vmem:[#allocation8 + $0xc88] sm:$0xff] }
 0x398   :  { %7351 = vmatprep.subr.bf16.mxu1 %v9728_v9  ;;  %v9824_v9 = vcombine.high %v4319_v4, %v4323_v5  ;;  %v4403_v60 = vld [vmem:[#allocation8 + $0xca8] sm:$0xff] }
 0x399   :  { %v4407_v63 = vld [vmem:[#allocation8 + $0xcc8] sm:$0xff] }
 0x39a   :  { %v4411_v1 = vld [vmem:[#allocation8 + $0xce8] sm:$0xff] }
 0x39b   :  { %7352 = vmatpush1.bf16.msra.mxu1 %v9727_v6  ;;  %v9823_v6 = vcombine.low %v4319_v4, %v4323_v5  ;;  %v4415_v4 = vld [vmem:[#allocation8 + $0xd08] sm:$0xff] }
 0x39c   :  { %7353 = vmatprep.subr.bf16.mxu1 %v9736_v7  ;;  %v9832_v7 = vcombine.high %v4327_v11, %v4331_v12  ;;  %v4419_v5 = vld [vmem:[#allocation8 + $0xd28] sm:$0xff] }
 0x39f   :  { %7354 = vmatpush1.bf16.msra.mxu1 %v9735_v21  ;;  %v9831_v21 = vcombine.low %v4327_v11, %v4331_v12  ;;  %v4423_v11 = vld [vmem:[#allocation8 + $0xd48] sm:$0xff] }
 0x3a0   :  { %7355 = vmatprep.subr.bf16.mxu1 %v9744_v18  ;;  %v9840_v18 = vcombine.high %v4335_v14, %v4339_v16  ;;  %v4427_v12 = vld [vmem:[#allocation8 + $0xd68] sm:$0xff] }
 0x3a3   :  { %7356 = vmatpush1.bf16.msra.mxu1 %v9743_v22  ;;  %v9839_v22 = vcombine.low %v4335_v14, %v4339_v16  ;;  %v716_v14 = vsub.s32 7, %v11009_v3  ;;  %v9928_v16 = vcombine.high %v4423_v11, %v4427_v12 }
 0x3a4   :  { %7357 = vmatprep.subr.bf16.mxu1 %v9752_v23  ;;  %v9848_v23 = vcombine.high %v4343_v19, %v4347_v20 }
 0x3a7   :  { %7358 = vmatpush1.bf16.msra.mxu1 %v9751_v25  ;;  %v9847_v25 = vcombine.low %v4343_v19, %v4347_v20  ;;  %v10559_v19 = vld [vmem:[#allocation7] sm:$0xff] }
 0x3a8   :  { %7370 = vmatprep.subr.bf16.mxu1 %v9760_v27  ;;  %v9856_v27 = vcombine.high %v4351_v24, %v4355_v34 }
 0x3aa   :  { %7360 = vmatmul.mubr.bf16.vlgmr.msra.gmra.mrb[12].mxu1 %v11054_v44 }
 0x3ab   :  { %7371 = vmatpush1.bf16.msra.mxu1 %v9759_v30  ;;  %7402 = vmatprep.mubr.bf16.mxu1 %v11060_v26  ;;  %v9855_v30 = vcombine.low %v4351_v24, %v4355_v34 }
 0x3ac   :  { %7372 = vmatprep.subr.bf16.mxu1 %v9768_v48  ;;  %v9864_v48 = vcombine.high %v4359_v28, %v4363_v29 }
 0x3af   :  { %7373 = vmatpush1.bf16.msra.mxu1 %v9767_v33  ;;  %v9863_v33 = vcombine.low %v4359_v28, %v4363_v29 }
 0x3b0   :  { %7374 = vmatprep.subr.bf16.mxu1 %v9776_v35  ;;  %v9872_v35 = vcombine.high %v4367_v31, %v4371_v32 }
 0x3b3   :  { %7375 = vmatpush1.bf16.msra.mxu1 %v9775_v39  ;;  %v9871_v39 = vcombine.low %v4367_v31, %v4371_v32 }
 0x3b4   :  { %7376 = vmatprep.subr.bf16.mxu1 %v9784_v40  ;;  %v9880_v40 = vcombine.high %v4375_v36, %v4379_v38 }
 0x3b7   :  { %7377 = vmatpush1.bf16.msra.mxu1 %v9783_v42  ;;  %v9879_v42 = vcombine.low %v4375_v36, %v4379_v38 }
 0x3b8   :  { %7378 = vmatprep.subr.bf16.mxu1 %v9792_v0  ;;  %v9888_v0 = vcombine.high %v4383_v46, %v4387_v41 }
 0x3bb   :  { %7379 = vmatpush1.bf16.msra.mxu1 %v9791_v52  ;;  %v9887_v52 = vcombine.low %v4383_v46, %v4387_v41 }
 0x3bc   :  { %7380 = vmatprep.subr.bf16.mxu1 %v9800_v57  ;;  %v9896_v57 = vcombine.high %v4391_v43, %v4395_v51 }
 0x3bf   :  { %7381 = vmatpush1.bf16.msra.mxu1 %v9799_v61  ;;  %v9895_v61 = vcombine.low %v4391_v43, %v4395_v51  ;;  %v4008_v43 = vld [vmem:[#allocation8 + $0x50] sm:$0xff] }
 0x3c0   :  { %7382 = vmatprep.subr.bf16.mxu1 %v9808_v62  ;;  %v9904_v62 = vcombine.high %v4399_v59, %v4403_v60  ;;  %v4012_v51 = vld [vmem:[#allocation8 + $0x70] sm:$0xff] }
 0x3c3   :  { %7383 = vmatpush1.bf16.msra.mxu1 %v9807_v58  ;;  %v9903_v58 = vcombine.low %v4399_v59, %v4403_v60  ;;  %v4455_v59 = vld [vmem:[#allocation8 + $0xe48] sm:$0xff] }
 0x3c4   :  { %7384 = vmatprep.subr.bf16.mxu1 %v9816_v2  ;;  %v9912_v2 = vcombine.high %v4407_v63, %v4411_v1  ;;  %v4459_v60 = vld [vmem:[#allocation8 + $0xe68] sm:$0xff] }
 0x3c7   :  { %7385 = vmatpush1.bf16.msra.mxu1 %v9815_v8  ;;  %v9911_v8 = vcombine.low %v4407_v63, %v4411_v1  ;;  %v4016_v1 = vld [vmem:[#allocation8 + $0x90] sm:$0xff] }
 0x3c8   :  { %7386 = vmatprep.subr.bf16.mxu1 %v9824_v9  ;;  %v9920_v9 = vcombine.high %v4415_v4, %v4419_v5 }
 0x3cb   :  { %7387 = vmatpush1.bf16.msra.mxu1 %v9823_v6  ;;  %v712_v6 = vsub.s32 6, %v11009_v3 }
 0x3cc   :  { %7388 = vmatprep.subr.bf16.mxu1 %v9832_v7  ;;  %v9919_v7 = vcombine.low %v4415_v4, %v4419_v5  ;;  %v9513_v4 = vcombine.low %v4008_v43, %v4012_v51  ;;  %v4463_v5 = vld [vmem:[#allocation8 + $0xe88] sm:$0xff] }
 0x3cd   :  { %v713_v20 = vrot.slane %v10559_v19, %v712_v6 }
 0x3cf   :  { %7389 = vmatpush1.bf16.msra.mxu1 %v9831_v21  ;;  %v4431_v21 = vld [vmem:[#allocation8 + $0xd88] sm:$0xff] }
 0x3d0   :  { %7390 = vmatprep.subr.bf16.mxu1 %v9840_v18  ;;  %v4435_v18 = vld [vmem:[#allocation8 + $0xda8] sm:$0xff] }
 0x3d1   :  { %v9936_v24 = vcombine.high %v4431_v21, %v4435_v18  ;;  %v9935_v31 = vcombine.low %v4431_v21, %v4435_v18  ;;  %v4471_v18 = vld [vmem:[#allocation8 + $0xec8] sm:$0xff] }
 0x3d3   :  { %7391 = vmatpush1.bf16.msra.mxu1 %v9839_v22  ;;  %v717_v22 = vrot.slane %v10559_v19, %v716_v14  ;;  %v4475_v19 = vld [vmem:[#allocation8 + $0xee8] sm:$0xff] }
 0x3d4   :  { %7392 = vmatprep.subr.bf16.mxu1 %v9848_v23  ;;  %v9927_v23 = vcombine.low %v4423_v11, %v4427_v12  ;;  %v9959_v11 = vcombine.low %v4455_v59, %v4459_v60  ;;  %v4024_v12 = vld [vmem:[#allocation8 + $0xd0] sm:$0xff] }
 0x3d7   :  { %7393 = vmatpush1.bf16.msra.mxu1 %v9847_v25  ;;  %v4439_v25 = vld [vmem:[#allocation8 + $0xdc8] sm:$0xff] }
 0x3d8   :  { %7394 = vmatprep.subr.bf16.mxu1 %v9856_v27  ;;  %v4443_v27 = vld [vmem:[#allocation8 + $0xde8] sm:$0xff] }
 0x3db   :  { %7395 = vmatpush1.bf16.msra.mxu1 %v9855_v30 }
 0x3dc   :  { %7396 = vmatprep.subr.bf16.mxu1 %v9864_v48 }
 0x3df   :  { %7397 = vmatpush1.bf16.msra.mxu1 %v9863_v33 }
 0x3e0   :  { %7398 = vmatprep.subr.bf16.mxu1 %v9872_v35  ;;  %v9944_v35 = vcombine.high %v4439_v25, %v4443_v27 }
 0x3e3   :  { %7399 = vmatpush1.bf16.msra.mxu1 %v9871_v39 }
 0x3e4   :  { %7400 = vmatprep.subr.bf16.mxu1 %v9880_v40  ;;  %v4447_v40 = vld [vmem:[#allocation8 + $0xe08] sm:$0xff] }
 0x3e7   :  { %7401 = vmatpush1.bf16.msra.mxu1 %v9879_v42  ;;  %v9943_v42 = vcombine.low %v4439_v25, %v4443_v27  ;;  %v9975_v27 = vcombine.low %v4471_v18, %v4475_v19 }
 0x3e8   :  { %7413 = vmatprep.subr.bf16.mxu1 %v9888_v0  ;;  %v4451_v0 = vld [vmem:[#allocation8 + $0xe28] sm:$0xff] }
 0x3e9   :  { %v9951_v63 = vcombine.low %v4447_v40, %v4451_v0 }
 0x3ea   :  { %7403 = vmatmul.mubr.bf16.vlgmr.msra.gmra.mrb[12].mxu1 %v11056_v49 }
 0x3eb   :  { %7414 = vmatpush1.bf16.msra.mxu1 %v9887_v52 }
 0x3ec   :  { %7415 = vmatprep.subr.bf16.mxu1 %v9896_v57 }
 0x3ef   :  { %7416 = vmatpush1.bf16.msra.mxu1 %v9895_v61  ;;  %v9952_v61 = vcombine.high %v4447_v40, %v4451_v0 }
 0x3f0   :  { %7417 = vmatprep.subr.bf16.mxu1 %v9904_v62  ;;  %v9514_v62 = vcombine.high %v4008_v43, %v4012_v51  ;;  %v4056_v43 = vld [vmem:[#allocation8 + $0x1d0] sm:$0xff] }
 0x3f1   :  { %v4060_v51 = vld [vmem:[#allocation8 + $0x1f0] sm:$0xff] }
 0x3f3   :  { %7418 = vmatpush1.bf16.msra.mxu1 %v9903_v58  ;;  %v4020_v58 = vld [vmem:[#allocation8 + $0xb0] sm:$0xff] }
 0x3f4   :  { %7419 = vmatprep.subr.bf16.mxu1 %v9912_v2  ;;  %v9960_v2 = vcombine.high %v4455_v59, %v4459_v60  ;;  %v9521_v21 = vcombine.low %v4016_v1, %v4020_v58 }
 0x3f7   :  { %7420 = vmatpush1.bf16.msra.mxu1 %v9911_v8  ;;  %v4467_v8 = vld [vmem:[#allocation8 + $0xea8] sm:$0xff] }
 0x3f8   :  { %7421 = vmatprep.subr.bf16.mxu1 %v9920_v9  ;;  %v9522_v9 = vcombine.high %v4016_v1, %v4020_v58  ;;  %v9967_v47 = vcombine.low %v4463_v5, %v4467_v8  ;;  %v4064_v58 = vld [vmem:[#allocation8 + $0x210] sm:$0xff] }
 0x3fb   :  { %7422 = vmatpush1.bf16.msra.mxu1 %v9919_v7  ;;  %v4028_v7 = vld [vmem:[#allocation8 + $0xf0] sm:$0xff] }
 0x3fc   :  { %7423 = vmatprep.subr.bf16.mxu1 %v9928_v16  ;;  %v9968_v16 = vcombine.high %v4463_v5, %v4467_v8  ;;  %v9530_v45 = vcombine.high %v4024_v12, %v4028_v7  ;;  %v9561_v5 = vcombine.low %v4056_v43, %v4060_v51  ;;  %v4001_v8 = vld [vmem:[#allocation8 + $0x18] sm:$0xff] }
 0x3fd   :  { %v3965_v34 = vpop.f32.mrb[8].mxu1 }
 0x3fe   :  { %v10205_v28 = vadd.f32 %v3965_v34, %v713_v20  ;;  %v3967_v29 = vpop.f32.mrb[9].mxu1  ;;  %v4483_v34 = vld [vmem:[#allocation8 + $0xf28] sm:$0xff] }
 0x3ff   :  { %v10206_v30 = vadd.f32 %v3967_v29, %v717_v22  ;;  %v3969_v48 = vpop.f32.mrb[10].mxu1  ;;  %7424 = vmatpush1.bf16.msra.mxu1 %v9927_v23  ;;  %v9529_v23 = vcombine.low %v4024_v12, %v4028_v7  ;;  %v4044_v29 = vld [vmem:[#allocation8 + $0x170] sm:$0xff] }
 0x400   :  { %v10207_v32 = vadd.f32 %v3969_v48, %v713_v20  ;;  %v3971_v33 = vpop.f32.mrb[11].mxu1  ;;  %7425 = vmatprep.subr.bf16.mxu1 %v9936_v24  ;;  %v3980_v38 = vmax.f32 %v10205_v28, 0.0  ;;  %v4036_v20 = vld [vmem:[#allocation8 + $0x130] sm:$0xff]  ;;  %v4479_v24 = vld [vmem:[#allocation8 + $0xf08] sm:$0xff] }
 0x401   :  { %v10208_v36 = vadd.f32 %v3971_v33, %v717_v22  ;;  %v3981_v46 = vmax.f32 %v10206_v30, 0.0  ;;  %v9976_v22 = vcombine.high %v4471_v18, %v4475_v19  ;;  %v4040_v28 = vld [vmem:[#allocation8 + $0x150] sm:$0xff]  ;;  %v9984_v30 = vcombine.high %v4479_v24, %v4483_v34  ;;  %v4009_v19 = vld [vmem:[#allocation8 + $0x58] sm:$0xff] }
 0x402   :  { %v3988_v39 = vmax.f32 %v10207_v32, 0.0  ;;  %v4491_v32 = vld [vmem:[#allocation8 + $0xf68] sm:$0xff]  ;;  %v9546_v33 = vcombine.high %v4040_v28, %v4044_v29  ;;  %v9545_v40 = vcombine.low %v4040_v28, %v4044_v29  ;;  %v4072_v7 = vld [vmem:[#allocation8 + $0x250] sm:$0xff] }
 0x403   :  { %v3989_v41 = vmax.f32 %v10208_v36, 0.0  ;;  %7426 = vmatpush1.bf16.msra.mxu1 %v9935_v31  ;;  %v4487_v31 = vld [vmem:[#allocation8 + $0xf48] sm:$0xff]  ;;  %v4048_v36 = vld [vmem:[#allocation8 + $0x190] sm:$0xff] }
 0x404   :  { %v11090_v52 = vpack.c.bf16 %v3988_v39, %v3980_v38  ;;  %7427 = vmatprep.subr.bf16.mxu1 %v9944_v35  ;;  %v9983_v35 = vcombine.low %v4479_v24, %v4483_v34  ;;  %v4052_v38 = vld [vmem:[#allocation8 + $0x1b0] sm:$0xff]  ;;  %v9992_v39 = vcombine.high %v4487_v31, %v4491_v32  ;;  %v9991_v0 = vcombine.low %v4487_v31, %v4491_v32  ;;  %v4017_v34 = vld [vmem:[#allocation8 + $0x98] sm:$0xff] }
 0x405   :  { %v11092_v57 = vpack.c.bf16 %v3989_v41, %v3981_v46  ;;  %v4495_v46 = vld [vmem:[#allocation8 + $0xf88] sm:$0xff]  ;;  %v9553_v60 = vcombine.low %v4048_v36, %v4052_v38  ;;  %v4088_v29 = vld [vmem:[#allocation8 + $0x2d0] sm:$0xff]  ;;  %v4025_v32 = vld [vmem:[#allocation8 + $0xd8] sm:$0xff] }
 0x406   :  { %v4499_v41 = vld [vmem:[#allocation8 + $0xfa8] sm:$0xff] }
 0x407   :  { %7273 = vmatprep.mubr.bf16.mxu0 %v11092_v57  ;;  %7428 = vmatpush1.bf16.msra.mxu1 %v9943_v42  ;;  %v9554_v42 = vcombine.high %v4048_v36, %v4052_v38  ;;  %v10000_v59 = vcombine.high %v4495_v46, %v4499_v41  ;;  %v9999_v1 = vcombine.low %v4495_v46, %v4499_v41  ;;  %v4096_v38 = vld [vmem:[#allocation8 + $0x310] sm:$0xff]  ;;  %v4037_v41 = vld [vmem:[#allocation8 + $0x138] sm:$0xff] }
 0x408   :  { %7445 = vmatprep.mubr.bf16.mxu1 %v11092_v57  ;;  %7274 = vmatmul.mubr.bf16.vlgmr.msra.gmra.mrb[8].mxu0 %v11090_v52 }
 0x409   :  { %7457 = vmatpush1.bf16.msra.mxu0 %v9505_v37  ;;  %7488 = vmatprep.mubr.bf16.mxu0 %v11021_v17  ;;  %v4032_v37 = vld [vmem:[#allocation8 + $0x110] sm:$0xff] }
 0x40a   :  { %7429 = vmatprep.subr.bf16.mxu1 %v9952_v61  ;;  %7458 = vmatprep.subr.bf16.mxu0 %v9514_v62  ;;  %v9538_v25 = vcombine.high %v4032_v37, %v4036_v20  ;;  %v9537_v48 = vcombine.low %v4032_v37, %v4036_v20  ;;  %v4503_v61 = vld [vmem:[#allocation8 + $0xfc8] sm:$0xff]  ;;  %v4080_v20 = vld [vmem:[#allocation8 + $0x290] sm:$0xff] }
 0x40b   :  { %7430 = vmatpush1.bf16.msra.mxu1 %v9951_v63  ;;  %v4507_v62 = vld [vmem:[#allocation8 + $0xfe8] sm:$0xff]  ;;  %v9562_v63 = vcombine.high %v4056_v43, %v4060_v51  ;;  %v4104_v43 = vld [vmem:[#allocation8 + $0x350] sm:$0xff] }
 0x40c   :  { %7431 = vmatprep.subr.bf16.mxu1 %v9960_v2  ;;  %v4068_v2 = vld [vmem:[#allocation8 + $0x230] sm:$0xff]  ;;  %v10007_v12 = vcombine.low %v4503_v61, %v4507_v62 }
 0x40d   :  { %7459 = vmatpush1.bf16.msra.mxu0 %v9513_v4  ;;  %v10008_v4 = vcombine.high %v4503_v61, %v4507_v62  ;;  %v9569_v18 = vcombine.low %v4064_v58, %v4068_v2  ;;  %v4108_v51 = vld [vmem:[#allocation8 + $0x370] sm:$0xff]  ;;  %v4041_v61 = vld [vmem:[#allocation8 + $0x158] sm:$0xff] }
 0x40e   :  { %7460 = vmatprep.subr.bf16.mxu0 %v9522_v9  ;;  %v4005_v9 = vld [vmem:[#allocation8 + $0x38] sm:$0xff] }
 0x40f   :  { %7432 = vmatpush1.bf16.msra.mxu1 %v9959_v11  ;;  %v9570_v11 = vcombine.high %v4064_v58, %v4068_v2  ;;  %v9507_v37 = vcombine.low %v4001_v8, %v4005_v9  ;;  %v4045_v62 = vld [vmem:[#allocation8 + $0x178] sm:$0xff]  ;;  %v4112_v58 = vld [vmem:[#allocation8 + $0x390] sm:$0xff] }
 0x410   :  { %7433 = vmatprep.subr.bf16.mxu1 %v9968_v16  ;;  %v4076_v16 = vld [vmem:[#allocation8 + $0x270] sm:$0xff] }
 0x411   :  { %7461 = vmatpush1.bf16.msra.mxu0 %v9521_v21  ;;  %v9508_v21 = vcombine.high %v4001_v8, %v4005_v9  ;;  %v9577_v24 = vcombine.low %v4072_v7, %v4076_v16  ;;  %v4116_v2 = vld [vmem:[#allocation8 + $0x3b0] sm:$0xff]  ;;  %v4049_v8 = vld [vmem:[#allocation8 + $0x198] sm:$0xff] }
 0x412   :  { %7462 = vmatprep.subr.bf16.mxu0 %v9530_v45  ;;  %v4013_v45 = vld [vmem:[#allocation8 + $0x78] sm:$0xff] }
 0x413   :  { %7434 = vmatpush1.bf16.msra.mxu1 %v9967_v47  ;;  %v9578_v47 = vcombine.high %v4072_v7, %v4076_v16  ;;  %v9515_v28 = vcombine.low %v4009_v19, %v4013_v45  ;;  %v4053_v9 = vld [vmem:[#allocation8 + $0x1b8] sm:$0xff]  ;;  %v4120_v7 = vld [vmem:[#allocation8 + $0x3d0] sm:$0xff] }
 0x414   :  { %7435 = vmatprep.subr.bf16.mxu1 %v9976_v22  ;;  %v4084_v22 = vld [vmem:[#allocation8 + $0x2b0] sm:$0xff] }
 0x415   :  { %7463 = vmatpush1.bf16.msra.mxu0 %v9529_v23  ;;  %v9516_v23 = vcombine.high %v4009_v19, %v4013_v45  ;;  %v9585_v31 = vcombine.low %v4080_v20, %v4084_v22  ;;  %v4124_v16 = vld [vmem:[#allocation8 + $0x3f0] sm:$0xff]  ;;  %v4057_v19 = vld [vmem:[#allocation8 + $0x1d8] sm:$0xff] }
 0x416   :  { %7464 = vmatprep.subr.bf16.mxu0 %v9538_v25  ;;  %v4021_v25 = vld [vmem:[#allocation8 + $0xb8] sm:$0xff] }
 0x417   :  { %7436 = vmatpush1.bf16.msra.mxu1 %v9975_v27  ;;  %v9586_v27 = vcombine.high %v4080_v20, %v4084_v22  ;;  %v9523_v36 = vcombine.low %v4017_v34, %v4021_v25  ;;  %v4061_v45 = vld [vmem:[#allocation8 + $0x1f8] sm:$0xff]  ;;  %v4128_v20 = vld [vmem:[#allocation8 + $0x410] sm:$0xff] }
 0x418   :  { %7437 = vmatprep.subr.bf16.mxu1 %v9984_v30  ;;  %v4092_v30 = vld [vmem:[#allocation8 + $0x2f0] sm:$0xff] }
 0x419   :  { %7465 = vmatpush1.bf16.msra.mxu0 %v9537_v48  ;;  %v9524_v48 = vcombine.high %v4017_v34, %v4021_v25  ;;  %v9593_v46 = vcombine.low %v4088_v29, %v4092_v30  ;;  %v4132_v22 = vld [vmem:[#allocation8 + $0x430] sm:$0xff]  ;;  %v4065_v34 = vld [vmem:[#allocation8 + $0x218] sm:$0xff] }
 0x41a   :  { %7466 = vmatprep.subr.bf16.mxu0 %v9546_v33  ;;  %v4029_v33 = vld [vmem:[#allocation8 + $0xf8] sm:$0xff] }
 0x41b   :  { %7438 = vmatpush1.bf16.msra.mxu1 %v9983_v35  ;;  %v9594_v35 = vcombine.high %v4088_v29, %v4092_v30  ;;  %v4069_v25 = vld [vmem:[#allocation8 + $0x238] sm:$0xff]  ;;  %v4136_v29 = vld [vmem:[#allocation8 + $0x450] sm:$0xff] }
 0x41c   :  { %7439 = vmatprep.subr.bf16.mxu1 %v9992_v39  ;;  %v4100_v39 = vld [vmem:[#allocation8 + $0x330] sm:$0xff] }
 0x41d   :  { %7467 = vmatpush1.bf16.msra.mxu0 %v9545_v40  ;;  %v9532_v40 = vcombine.high %v4025_v32, %v4029_v33  ;;  %v4140_v30 = vld [vmem:[#allocation8 + $0x470] sm:$0xff] }
 0x41e   :  { %7468 = vmatprep.subr.bf16.mxu0 %v9554_v42  ;;  %v9602_v42 = vcombine.high %v4096_v38, %v4100_v39 }
 0x41f   :  { %7440 = vmatpush1.bf16.msra.mxu1 %v9991_v0  ;;  %v9531_v0 = vcombine.low %v4025_v32, %v4029_v33  ;;  %v4073_v32 = vld [vmem:[#allocation8 + $0x258] sm:$0xff] }
 0x420   :  { %7441 = vmatprep.subr.bf16.mxu1 %v10000_v59  ;;  %v4077_v33 = vld [vmem:[#allocation8 + $0x278] sm:$0xff] }
 0x421   :  { %7469 = vmatpush1.bf16.msra.mxu0 %v9553_v60  ;;  %v9601_v60 = vcombine.low %v4096_v38, %v4100_v39  ;;  %v4144_v38 = vld [vmem:[#allocation8 + $0x490] sm:$0xff] }
 0x422   :  { %7470 = vmatprep.subr.bf16.mxu0 %v9562_v63  ;;  %v9610_v63 = vcombine.high %v4104_v43, %v4108_v51  ;;  %v4148_v39 = vld [vmem:[#allocation8 + $0x4b0] sm:$0xff] }
 0x423   :  { %7442 = vmatpush1.bf16.msra.mxu1 %v9999_v1 }
 0x424   :  { %7443 = vmatprep.subr.bf16.mxu1 %v10008_v4  ;;  %v9548_v4 = vcombine.high %v4041_v61, %v4045_v62 }
 0x425   :  { %7471 = vmatpush1.bf16.msra.mxu0 %v9561_v5  ;;  %v9609_v5 = vcombine.low %v4104_v43, %v4108_v51  ;;  %v4152_v43 = vld [vmem:[#allocation8 + $0x4d0] sm:$0xff] }
 0x426   :  { %7472 = vmatprep.subr.bf16.mxu0 %v9570_v11  ;;  %v9618_v11 = vcombine.high %v4112_v58, %v4116_v2  ;;  %v4156_v51 = vld [vmem:[#allocation8 + $0x4f0] sm:$0xff] }
 0x427   :  { %7444 = vmatpush1.bf16.msra.mxu1 %v10007_v12  ;;  %v9547_v12 = vcombine.low %v4041_v61, %v4045_v62  ;;  %v4089_v61 = vld [vmem:[#allocation8 + $0x2d8] sm:$0xff] }
 0x428   :  { %7628 = vmatprep.subr.bf16.mxu1 %v9508_v21  ;;  %v9556_v21 = vcombine.high %v4049_v8, %v4053_v9  ;;  %v4093_v62 = vld [vmem:[#allocation8 + $0x2f8] sm:$0xff] }
 0x429   :  { %7473 = vmatpush1.bf16.msra.mxu0 %v9569_v18  ;;  %v9617_v18 = vcombine.low %v4112_v58, %v4116_v2  ;;  %v4160_v58 = vld [vmem:[#allocation8 + $0x510] sm:$0xff] }
 0x42a   :  { %7446 = vmatmul.mubr.bf16.vlgmr.msra.gmra.mrb[12].mxu1 %v11090_v52  ;;  %7474 = vmatprep.subr.bf16.mxu0 %v9578_v47  ;;  %v9626_v47 = vcombine.high %v4120_v7, %v4124_v16  ;;  %v4164_v2 = vld [vmem:[#allocation8 + $0x530] sm:$0xff] }
 0x42b   :  { %7629 = vmatpush1.bf16.msra.mxu1 %v9507_v37  ;;  %7660 = vmatprep.mubr.bf16.mxu1 %v11021_v17  ;;  %v4033_v17 = vld [vmem:[#allocation8 + $0x118] sm:$0xff]  ;;  %v9555_v37 = vcombine.low %v4049_v8, %v4053_v9 }
 0x42c   :  { %7630 = vmatprep.subr.bf16.mxu1 %v9516_v23  ;;  %v9540_v59 = vcombine.high %v4033_v17, %v4037_v41  ;;  %v9539_v1 = vcombine.low %v4033_v17, %v4037_v41  ;;  %v9564_v23 = vcombine.high %v4057_v19, %v4061_v45  ;;  %v4081_v17 = vld [vmem:[#allocation8 + $0x298] sm:$0xff] }
 0x42d   :  { %7475 = vmatpush1.bf16.msra.mxu0 %v9577_v24  ;;  %v9625_v24 = vcombine.low %v4120_v7, %v4124_v16  ;;  %v4085_v41 = vld [vmem:[#allocation8 + $0x2b8] sm:$0xff]  ;;  %v4168_v7 = vld [vmem:[#allocation8 + $0x550] sm:$0xff] }
 0x42e   :  { %7476 = vmatprep.subr.bf16.mxu0 %v9586_v27  ;;  %v9634_v27 = vcombine.high %v4128_v20, %v4132_v22  ;;  %v4097_v8 = vld [vmem:[#allocation8 + $0x318] sm:$0xff]  ;;  %v4172_v16 = vld [vmem:[#allocation8 + $0x570] sm:$0xff] }
 0x42f   :  { %7631 = vmatpush1.bf16.msra.mxu1 %v9515_v28  ;;  %v9563_v28 = vcombine.low %v4057_v19, %v4061_v45  ;;  %v4101_v9 = vld [vmem:[#allocation8 + $0x338] sm:$0xff] }
 0x430   :  { %7632 = vmatprep.subr.bf16.mxu1 %v9524_v48  ;;  %v9572_v48 = vcombine.high %v4065_v34, %v4069_v25  ;;  %v4105_v19 = vld [vmem:[#allocation8 + $0x358] sm:$0xff] }
 0x431   :  { %7477 = vmatpush1.bf16.msra.mxu0 %v9585_v31  ;;  %v9633_v31 = vcombine.low %v4128_v20, %v4132_v22  ;;  %v4109_v45 = vld [vmem:[#allocation8 + $0x378] sm:$0xff]  ;;  %v4176_v20 = vld [vmem:[#allocation8 + $0x590] sm:$0xff] }
 0x432   :  { %7478 = vmatprep.subr.bf16.mxu0 %v9594_v35  ;;  %v9642_v35 = vcombine.high %v4136_v29, %v4140_v30  ;;  %v4180_v22 = vld [vmem:[#allocation8 + $0x5b0] sm:$0xff] }
 0x433   :  { %7633 = vmatpush1.bf16.msra.mxu1 %v9523_v36  ;;  %v9571_v36 = vcombine.low %v4065_v34, %v4069_v25  ;;  %v4113_v34 = vld [vmem:[#allocation8 + $0x398] sm:$0xff] }
 0x434   :  { %7634 = vmatprep.subr.bf16.mxu1 %v9532_v40  ;;  %v9580_v40 = vcombine.high %v4073_v32, %v4077_v33  ;;  %v4117_v25 = vld [vmem:[#allocation8 + $0x3b8] sm:$0xff] }
 0x435   :  { %7479 = vmatpush1.bf16.msra.mxu0 %v9593_v46  ;;  %v9641_v46 = vcombine.low %v4136_v29, %v4140_v30  ;;  %v4184_v29 = vld [vmem:[#allocation8 + $0x5d0] sm:$0xff] }
 0x436   :  { %7480 = vmatprep.subr.bf16.mxu0 %v9602_v42  ;;  %v9650_v42 = vcombine.high %v4144_v38, %v4148_v39  ;;  %v4188_v30 = vld [vmem:[#allocation8 + $0x5f0] sm:$0xff] }
 0x437   :  { %7635 = vmatpush1.bf16.msra.mxu1 %v9531_v0  ;;  %v9579_v0 = vcombine.low %v4073_v32, %v4077_v33  ;;  %v4121_v32 = vld [vmem:[#allocation8 + $0x3d8] sm:$0xff] }
 0x438   :  { %7636 = vmatprep.subr.bf16.mxu1 %v9540_v59  ;;  %v9588_v59 = vcombine.high %v4081_v17, %v4085_v41  ;;  %v4125_v33 = vld [vmem:[#allocation8 + $0x3f8] sm:$0xff] }
 0x439   :  { %7481 = vmatpush1.bf16.msra.mxu0 %v9601_v60  ;;  %v9649_v60 = vcombine.low %v4144_v38, %v4148_v39  ;;  %v4192_v38 = vld [vmem:[#allocation8 + $0x610] sm:$0xff] }
 0x43a   :  { %7482 = vmatprep.subr.bf16.mxu0 %v9610_v63  ;;  %v9658_v63 = vcombine.high %v4152_v43, %v4156_v51  ;;  %v4196_v39 = vld [vmem:[#allocation8 + $0x630] sm:$0xff] }
 0x43b   :  { %7637 = vmatpush1.bf16.msra.mxu1 %v9539_v1  ;;  %v9587_v1 = vcombine.low %v4081_v17, %v4085_v41  ;;  %v4129_v17 = vld [vmem:[#allocation8 + $0x418] sm:$0xff] }
 0x43c   :  { %7638 = vmatprep.subr.bf16.mxu1 %v9548_v4  ;;  %v9596_v4 = vcombine.high %v4089_v61, %v4093_v62  ;;  %v4133_v41 = vld [vmem:[#allocation8 + $0x438] sm:$0xff] }
 0x43d   :  { %7483 = vmatpush1.bf16.msra.mxu0 %v9609_v5  ;;  %v9657_v5 = vcombine.low %v4152_v43, %v4156_v51  ;;  %v4200_v43 = vld [vmem:[#allocation8 + $0x650] sm:$0xff] }
 0x43e   :  { %7484 = vmatprep.subr.bf16.mxu0 %v9618_v11  ;;  %v9666_v11 = vcombine.high %v4160_v58, %v4164_v2  ;;  %v4204_v51 = vld [vmem:[#allocation8 + $0x670] sm:$0xff] }
 0x43f   :  { %7639 = vmatpush1.bf16.msra.mxu1 %v9547_v12  ;;  %v9595_v12 = vcombine.low %v4089_v61, %v4093_v62  ;;  %v4137_v61 = vld [vmem:[#allocation8 + $0x458] sm:$0xff] }
 0x440   :  { %7640 = vmatprep.subr.bf16.mxu1 %v9556_v21  ;;  %v9604_v21 = vcombine.high %v4097_v8, %v4101_v9  ;;  %v4141_v62 = vld [vmem:[#allocation8 + $0x478] sm:$0xff] }
 0x441   :  { %7485 = vmatpush1.bf16.msra.mxu0 %v9617_v18  ;;  %v9665_v18 = vcombine.low %v4160_v58, %v4164_v2  ;;  %v4208_v58 = vld [vmem:[#allocation8 + $0x690] sm:$0xff] }
 0x442   :  { %7486 = vmatprep.subr.bf16.mxu0 %v9626_v47  ;;  %v9674_v47 = vcombine.high %v4168_v7, %v4172_v16  ;;  %v4212_v2 = vld [vmem:[#allocation8 + $0x6b0] sm:$0xff] }
 0x443   :  { %7641 = vmatpush1.bf16.msra.mxu1 %v9555_v37  ;;  %v9603_v37 = vcombine.low %v4097_v8, %v4101_v9  ;;  %v4145_v8 = vld [vmem:[#allocation8 + $0x498] sm:$0xff] }
 0x444   :  { %7642 = vmatprep.subr.bf16.mxu1 %v9564_v23  ;;  %v9612_v23 = vcombine.high %v4105_v19, %v4109_v45  ;;  %v4149_v9 = vld [vmem:[#allocation8 + $0x4b8] sm:$0xff] }
 0x445   :  { %7487 = vmatpush1.bf16.msra.mxu0 %v9625_v24  ;;  %v9673_v24 = vcombine.low %v4168_v7, %v4172_v16  ;;  %v4216_v7 = vld [vmem:[#allocation8 + $0x6d0] sm:$0xff] }
 0x446   :  { %7499 = vmatprep.subr.bf16.mxu0 %v9634_v27  ;;  %v9682_v27 = vcombine.high %v4176_v20, %v4180_v22  ;;  %v4220_v16 = vld [vmem:[#allocation8 + $0x6f0] sm:$0xff] }
 0x447   :  { %7643 = vmatpush1.bf16.msra.mxu1 %v9563_v28  ;;  %v9611_v28 = vcombine.low %v4105_v19, %v4109_v45  ;;  %v4153_v19 = vld [vmem:[#allocation8 + $0x4d8] sm:$0xff] }
 0x448   :  { %7489 = vmatmul.mubr.bf16.vlgmr.msra.gmra.mrb[12].mxu0 %v11019_v13  ;;  %7644 = vmatprep.subr.bf16.mxu1 %v9572_v48  ;;  %v9620_v48 = vcombine.high %v4113_v34, %v4117_v25  ;;  %v4157_v45 = vld [vmem:[#allocation8 + $0x4f8] sm:$0xff] }
 0x449   :  { %7500 = vmatpush1.bf16.msra.mxu0 %v9633_v31  ;;  %7531 = vmatprep.mubr.bf16.mxu0 %v11058_v50  ;;  %v9681_v31 = vcombine.low %v4176_v20, %v4180_v22  ;;  %v4224_v20 = vld [vmem:[#allocation8 + $0x710] sm:$0xff]  ;;  %v9660_v22 = vcombine.high %v4153_v19, %v4157_v45 }
 0x44a   :  { %7501 = vmatprep.subr.bf16.mxu0 %v9642_v35  ;;  %v9690_v35 = vcombine.high %v4184_v29, %v4188_v30 }
 0x44b   :  { %7645 = vmatpush1.bf16.msra.mxu1 %v9571_v36  ;;  %v9619_v36 = vcombine.low %v4113_v34, %v4117_v25  ;;  %v9659_v25 = vcombine.low %v4153_v19, %v4157_v45 }
 0x44c   :  { %7646 = vmatprep.subr.bf16.mxu1 %v9580_v40  ;;  %v9628_v40 = vcombine.high %v4121_v32, %v4125_v33 }
 0x44d   :  { %7502 = vmatpush1.bf16.msra.mxu0 %v9641_v46  ;;  %v9689_v46 = vcombine.low %v4184_v29, %v4188_v30 }
 0x44e   :  { %7503 = vmatprep.subr.bf16.mxu0 %v9650_v42  ;;  %v9698_v42 = vcombine.high %v4192_v38, %v4196_v39 }
 0x44f   :  { %7647 = vmatpush1.bf16.msra.mxu1 %v9579_v0  ;;  %v9627_v0 = vcombine.low %v4121_v32, %v4125_v33 }
 0x450   :  { %7648 = vmatprep.subr.bf16.mxu1 %v9588_v59  ;;  %v9636_v59 = vcombine.high %v4129_v17, %v4133_v41 }
 0x451   :  { %7504 = vmatpush1.bf16.msra.mxu0 %v9649_v60  ;;  %v9697_v60 = vcombine.low %v4192_v38, %v4196_v39 }
 0x452   :  { %7505 = vmatprep.subr.bf16.mxu0 %v9658_v63  ;;  %v9706_v63 = vcombine.high %v4200_v43, %v4204_v51 }
 0x453   :  { %7649 = vmatpush1.bf16.msra.mxu1 %v9587_v1  ;;  %v9635_v1 = vcombine.low %v4129_v17, %v4133_v41 }
 0x454   :  { %7650 = vmatprep.subr.bf16.mxu1 %v9596_v4  ;;  %v9644_v4 = vcombine.high %v4137_v61, %v4141_v62 }
 0x455   :  { %7506 = vmatpush1.bf16.msra.mxu0 %v9657_v5  ;;  %v9705_v5 = vcombine.low %v4200_v43, %v4204_v51 }
 0x456   :  { %7507 = vmatprep.subr.bf16.mxu0 %v9666_v11  ;;  %v9714_v11 = vcombine.high %v4208_v58, %v4212_v2 }
 0x457   :  { %7651 = vmatpush1.bf16.msra.mxu1 %v9595_v12  ;;  %v9643_v12 = vcombine.low %v4137_v61, %v4141_v62 }
 0x458   :  { %7652 = vmatprep.subr.bf16.mxu1 %v9604_v21  ;;  %v9652_v21 = vcombine.high %v4145_v8, %v4149_v9 }
 0x459   :  { %7508 = vmatpush1.bf16.msra.mxu0 %v9665_v18  ;;  %v9713_v18 = vcombine.low %v4208_v58, %v4212_v2 }
 0x45a   :  { %7509 = vmatprep.subr.bf16.mxu0 %v9674_v47  ;;  %v9722_v47 = vcombine.high %v4216_v7, %v4220_v16 }
 0x45b   :  { %7653 = vmatpush1.bf16.msra.mxu1 %v9603_v37  ;;  %v9651_v37 = vcombine.low %v4145_v8, %v4149_v9 }
 0x45c   :  { %7654 = vmatprep.subr.bf16.mxu1 %v9612_v23  ;;  %v9721_v23 = vcombine.low %v4216_v7, %v4220_v16 }
 0x45d   :  { %7510 = vmatpush1.bf16.msra.mxu0 %v9673_v24  ;;  %v4165_v24 = vld [vmem:[#allocation8 + $0x538] sm:$0xff] }
 0x45e   :  { %7511 = vmatprep.subr.bf16.mxu0 %v9682_v27  ;;  %v4232_v27 = vld [vmem:[#allocation8 + $0x750] sm:$0xff] }
 0x45f   :  { %7655 = vmatpush1.bf16.msra.mxu1 %v9611_v28  ;;  %v4236_v28 = vld [vmem:[#allocation8 + $0x770] sm:$0xff] }
 0x460   :  { %7656 = vmatprep.subr.bf16.mxu1 %v9620_v48  ;;  %v4169_v48 = vld [vmem:[#allocation8 + $0x558] sm:$0xff]  ;;  %v9738_v32 = vcombine.high %v4232_v27, %v4236_v28  ;;  %v9737_v39 = vcombine.low %v4232_v27, %v4236_v28 }
 0x461   :  { %7512 = vmatpush1.bf16.msra.mxu0 %v9681_v31  ;;  %v4173_v31 = vld [vmem:[#allocation8 + $0x578] sm:$0xff] }
 0x462   :  { %7513 = vmatprep.subr.bf16.mxu0 %v9690_v35  ;;  %v4240_v35 = vld [vmem:[#allocation8 + $0x790] sm:$0xff]  ;;  %v9676_v38 = vcombine.high %v4169_v48, %v4173_v31  ;;  %v9675_v41 = vcombine.low %v4169_v48, %v4173_v31 }
 0x463   :  { %7657 = vmatpush1.bf16.msra.mxu1 %v9619_v36  ;;  %v4244_v36 = vld [vmem:[#allocation8 + $0x7b0] sm:$0xff] }
 0x464   :  { %7658 = vmatprep.subr.bf16.mxu1 %v9628_v40  ;;  %v4177_v40 = vld [vmem:[#allocation8 + $0x598] sm:$0xff]  ;;  %v9746_v17 = vcombine.high %v4240_v35, %v4244_v36  ;;  %v9745_v51 = vcombine.low %v4240_v35, %v4244_v36 }
 0x465   :  { %7514 = vmatpush1.bf16.msra.mxu0 %v9689_v46  ;;  %v4181_v46 = vld [vmem:[#allocation8 + $0x5b8] sm:$0xff] }
 0x466   :  { %7515 = vmatprep.subr.bf16.mxu0 %v9698_v42  ;;  %v4248_v42 = vld [vmem:[#allocation8 + $0x7d0] sm:$0xff]  ;;  %v9684_v43 = vcombine.high %v4177_v40, %v4181_v46  ;;  %v9683_v62 = vcombine.low %v4177_v40, %v4181_v46 }
 0x467   :  { %7659 = vmatpush1.bf16.msra.mxu1 %v9627_v0  ;;  %v4252_v0 = vld [vmem:[#allocation8 + $0x7f0] sm:$0xff] }
 0x468   :  { %7671 = vmatprep.subr.bf16.mxu1 %v9636_v59  ;;  %v4185_v59 = vld [vmem:[#allocation8 + $0x5d8] sm:$0xff]  ;;  %v9754_v61 = vcombine.high %v4248_v42, %v4252_v0  ;;  %v9753_v2 = vcombine.low %v4248_v42, %v4252_v0 }
 0x469   :  { %7516 = vmatpush1.bf16.msra.mxu0 %v9697_v60  ;;  %v4189_v60 = vld [vmem:[#allocation8 + $0x5f8] sm:$0xff] }
 0x46a   :  { %7661 = vmatmul.mubr.bf16.vlgmr.msra.gmra.mrb[16].mxu1 %v11019_v13  ;;  %7517 = vmatprep.subr.bf16.mxu0 %v9706_v63  ;;  %v4228_v13 = vld [vmem:[#allocation8 + $0x730] sm:$0xff]  ;;  %v9692_v58 = vcombine.high %v4185_v59, %v4189_v60  ;;  %v9691_v9 = vcombine.low %v4185_v59, %v4189_v60 }
 0x46b   :  { %7672 = vmatpush1.bf16.msra.mxu1 %v9635_v1  ;;  %7703 = vmatprep.mubr.bf16.mxu1 %v11058_v50  ;;  %v4161_v50 = vld [vmem:[#allocation8 + $0x518] sm:$0xff]  ;;  %v9730_v34 = vcombine.high %v4224_v20, %v4228_v13  ;;  %v9729_v30 = vcombine.low %v4224_v20, %v4228_v13  ;;  %v4256_v63 = vld [vmem:[#allocation8 + $0x810] sm:$0xff] }
 0x46c   :  { %7673 = vmatprep.subr.bf16.mxu1 %v9644_v4  ;;  %v9668_v29 = vcombine.high %v4161_v50, %v4165_v24  ;;  %v9667_v33 = vcombine.low %v4161_v50, %v4165_v24  ;;  %v4260_v1 = vld [vmem:[#allocation8 + $0x830] sm:$0xff]  ;;  %v4193_v4 = vld [vmem:[#allocation8 + $0x618] sm:$0xff] }
 0x46d   :  { %7518 = vmatpush1.bf16.msra.mxu0 %v9705_v5  ;;  %v4197_v5 = vld [vmem:[#allocation8 + $0x638] sm:$0xff]  ;;  %v9762_v8 = vcombine.high %v4256_v63, %v4260_v1  ;;  %v9761_v16 = vcombine.low %v4256_v63, %v4260_v1 }
 0x46e   :  { %7519 = vmatprep.subr.bf16.mxu0 %v9714_v11  ;;  %v4264_v11 = vld [vmem:[#allocation8 + $0x850] sm:$0xff]  ;;  %v9700_v7 = vcombine.high %v4193_v4, %v4197_v5  ;;  %v9699_v45 = vcombine.low %v4193_v4, %v4197_v5 }
 0x46f   :  { %7674 = vmatpush1.bf16.msra.mxu1 %v9643_v12  ;;  %v4268_v12 = vld [vmem:[#allocation8 + $0x870] sm:$0xff] }
 0x470   :  { %7675 = vmatprep.subr.bf16.mxu1 %v9652_v21  ;;  %v4201_v21 = vld [vmem:[#allocation8 + $0x658] sm:$0xff]  ;;  %v9770_v19 = vcombine.high %v4264_v11, %v4268_v12  ;;  %v9769_v13 = vcombine.low %v4264_v11, %v4268_v12 }
 0x471   :  { %7520 = vmatpush1.bf16.msra.mxu0 %v9713_v18  ;;  %v4205_v18 = vld [vmem:[#allocation8 + $0x678] sm:$0xff] }
 0x472   :  { %7521 = vmatprep.subr.bf16.mxu0 %v9722_v47  ;;  %v4272_v47 = vld [vmem:[#allocation8 + $0x890] sm:$0xff]  ;;  %v9708_v20 = vcombine.high %v4201_v21, %v4205_v18  ;;  %v9707_v24 = vcombine.low %v4201_v21, %v4205_v18 }
 0x473   :  { %7676 = vmatpush1.bf16.msra.mxu1 %v9651_v37  ;;  %v4276_v37 = vld [vmem:[#allocation8 + $0x8b0] sm:$0xff] }
 0x474   :  { %7677 = vmatprep.subr.bf16.mxu1 %v9660_v22  ;;  %v4209_v22 = vld [vmem:[#allocation8 + $0x698] sm:$0xff]  ;;  %v9778_v50 = vcombine.high %v4272_v47, %v4276_v37  ;;  %v9777_v28 = vcombine.low %v4272_v47, %v4276_v37 }
 0x475   :  { %7522 = vmatpush1.bf16.msra.mxu0 %v9721_v23  ;;  %v4213_v23 = vld [vmem:[#allocation8 + $0x6b8] sm:$0xff] }
 0x476   :  { %7523 = vmatprep.subr.bf16.mxu0 %v9730_v34  ;;  %v4280_v34 = vld [vmem:[#allocation8 + $0x8d0] sm:$0xff]  ;;  %v9716_v27 = vcombine.high %v4209_v22, %v4213_v23  ;;  %v9715_v31 = vcombine.low %v4209_v22, %v4213_v23 }
 0x477   :  { %7678 = vmatpush1.bf16.msra.mxu1 %v9659_v25  ;;  %v4284_v25 = vld [vmem:[#allocation8 + $0x8f0] sm:$0xff] }
 0x478   :  { %7679 = vmatprep.subr.bf16.mxu1 %v9668_v29  ;;  %v4217_v29 = vld [vmem:[#allocation8 + $0x6d8] sm:$0xff]  ;;  %v9786_v48 = vcombine.high %v4280_v34, %v4284_v25  ;;  %v9785_v36 = vcombine.low %v4280_v34, %v4284_v25 }
 0x479   :  { %7524 = vmatpush1.bf16.msra.mxu0 %v9729_v30  ;;  %v4221_v30 = vld [vmem:[#allocation8 + $0x6f8] sm:$0xff] }
 0x47a   :  { %7525 = vmatprep.subr.bf16.mxu0 %v9738_v32  ;;  %v4288_v32 = vld [vmem:[#allocation8 + $0x910] sm:$0xff]  ;;  %v9724_v35 = vcombine.high %v4217_v29, %v4221_v30  ;;  %v9723_v46 = vcombine.low %v4217_v29, %v4221_v30 }
 0x47b   :  { %7680 = vmatpush1.bf16.msra.mxu1 %v9667_v33  ;;  %v4292_v33 = vld [vmem:[#allocation8 + $0x930] sm:$0xff] }
 0x47c   :  { %7681 = vmatprep.subr.bf16.mxu1 %v9676_v38  ;;  %v4225_v38 = vld [vmem:[#allocation8 + $0x718] sm:$0xff]  ;;  %v9794_v40 = vcombine.high %v4288_v32, %v4292_v33  ;;  %v9793_v0 = vcombine.low %v4288_v32, %v4292_v33 }
 0x47d   :  { %7526 = vmatpush1.bf16.msra.mxu0 %v9737_v39  ;;  %v4229_v39 = vld [vmem:[#allocation8 + $0x738] sm:$0xff] }
 0x47e   :  { %7527 = vmatprep.subr.bf16.mxu0 %v9746_v17  ;;  %v4296_v17 = vld [vmem:[#allocation8 + $0x950] sm:$0xff]  ;;  %v9732_v42 = vcombine.high %v4225_v38, %v4229_v39  ;;  %v9731_v60 = vcombine.low %v4225_v38, %v4229_v39 }
 0x47f   :  { %7682 = vmatpush1.bf16.msra.mxu1 %v9675_v41  ;;  %v4300_v41 = vld [vmem:[#allocation8 + $0x970] sm:$0xff] }
 0x480   :  { %7683 = vmatprep.subr.bf16.mxu1 %v9684_v43  ;;  %v4233_v43 = vld [vmem:[#allocation8 + $0x758] sm:$0xff]  ;;  %v9802_v59 = vcombine.high %v4296_v17, %v4300_v41  ;;  %v9801_v1 = vcombine.low %v4296_v17, %v4300_v41 }
 0x481   :  { %7528 = vmatpush1.bf16.msra.mxu0 %v9745_v51  ;;  %v4237_v51 = vld [vmem:[#allocation8 + $0x778] sm:$0xff] }
 0x482   :  { %7529 = vmatprep.subr.bf16.mxu0 %v9754_v61  ;;  %v4304_v61 = vld [vmem:[#allocation8 + $0x990] sm:$0xff]  ;;  %v9740_v63 = vcombine.high %v4233_v43, %v4237_v51  ;;  %v9739_v5 = vcombine.low %v4233_v43, %v4237_v51 }
 0x483   :  { %7684 = vmatpush1.bf16.msra.mxu1 %v9683_v62  ;;  %v4308_v62 = vld [vmem:[#allocation8 + $0x9b0] sm:$0xff] }
 0x484   :  { %7685 = vmatprep.subr.bf16.mxu1 %v9692_v58  ;;  %v4241_v58 = vld [vmem:[#allocation8 + $0x798] sm:$0xff]  ;;  %v9810_v4 = vcombine.high %v4304_v61, %v4308_v62  ;;  %v9809_v12 = vcombine.low %v4304_v61, %v4308_v62 }
 0x485   :  { %7530 = vmatpush1.bf16.msra.mxu0 %v9753_v2  ;;  %v4245_v2 = vld [vmem:[#allocation8 + $0x7b8] sm:$0xff] }
 0x486   :  { %7542 = vmatprep.subr.bf16.mxu0 %v9762_v8  ;;  %v4312_v8 = vld [vmem:[#allocation8 + $0x9d0] sm:$0xff]  ;;  %v9748_v11 = vcombine.high %v4241_v58, %v4245_v2  ;;  %v9747_v18 = vcombine.low %v4241_v58, %v4245_v2  ;;  %v4293_v62 = vld [vmem:[#allocation8 + $0x938] sm:$0xff] }
 0x487   :  { %7686 = vmatpush1.bf16.msra.mxu1 %v9691_v9  ;;  %v4316_v9 = vld [vmem:[#allocation8 + $0x9f0] sm:$0xff] }
 0x488   :  { %7532 = vmatmul.mubr.bf16.vlgmr.msra.gmra.mrb[12].mxu0 %v11054_v44  ;;  %7687 = vmatprep.subr.bf16.mxu1 %v9700_v7  ;;  %v4249_v7 = vld [vmem:[#allocation8 + $0x7d8] sm:$0xff]  ;;  %v9818_v21 = vcombine.high %v4312_v8, %v4316_v9  ;;  %v9817_v37 = vcombine.low %v4312_v8, %v4316_v9  ;;  %v4360_v58 = vld [vmem:[#allocation8 + $0xb50] sm:$0xff] }
 0x489   :  { %7543 = vmatpush1.bf16.msra.mxu0 %v9761_v16  ;;  %7574 = vmatprep.mubr.bf16.mxu0 %v11060_v26  ;;  %v4253_v16 = vld [vmem:[#allocation8 + $0x7f8] sm:$0xff]  ;;  %v4364_v2 = vld [vmem:[#allocation8 + $0xb70] sm:$0xff] }
 0x48a   :  { %7544 = vmatprep.subr.bf16.mxu0 %v9770_v19  ;;  %v4320_v19 = vld [vmem:[#allocation8 + $0xa10] sm:$0xff]  ;;  %v9756_v47 = vcombine.high %v4249_v7, %v4253_v16  ;;  %v9755_v23 = vcombine.low %v4249_v7, %v4253_v16  ;;  %v4297_v8 = vld [vmem:[#allocation8 + $0x958] sm:$0xff] }
 0x48b   :  { %7688 = vmatpush1.bf16.msra.mxu1 %v9699_v45  ;;  %v4324_v45 = vld [vmem:[#allocation8 + $0xa30] sm:$0xff]  ;;  %v4301_v9 = vld [vmem:[#allocation8 + $0x978] sm:$0xff] }
 0x48c   :  { %7689 = vmatprep.subr.bf16.mxu1 %v9708_v20  ;;  %v4257_v20 = vld [vmem:[#allocation8 + $0x818] sm:$0xff]  ;;  %v9826_v22 = vcombine.high %v4320_v19, %v4324_v45  ;;  %v9825_v25 = vcombine.low %v4320_v19, %v4324_v45  ;;  %v4368_v7 = vld [vmem:[#allocation8 + $0xb90] sm:$0xff] }
 0x48d   :  { %7545 = vmatpush1.bf16.msra.mxu0 %v9769_v13  ;;  %v4261_v13 = vld [vmem:[#allocation8 + $0x838] sm:$0xff]  ;;  %v4372_v16 = vld [vmem:[#allocation8 + $0xbb0] sm:$0xff] }
 0x48e   :  { %7546 = vmatprep.subr.bf16.mxu0 %v9778_v50  ;;  %v4328_v50 = vld [vmem:[#allocation8 + $0xa50] sm:$0xff]  ;;  %v9764_v34 = vcombine.high %v4257_v20, %v4261_v13  ;;  %v9763_v30 = vcombine.low %v4257_v20, %v4261_v13  ;;  %v4305_v19 = vld [vmem:[#allocation8 + $0x998] sm:$0xff] }
 0x48f   :  { %7690 = vmatpush1.bf16.msra.mxu1 %v9707_v24  ;;  %v4332_v24 = vld [vmem:[#allocation8 + $0xa70] sm:$0xff]  ;;  %v4309_v45 = vld [vmem:[#allocation8 + $0x9b8] sm:$0xff] }
 0x490   :  { %7691 = vmatprep.subr.bf16.mxu1 %v9716_v27  ;;  %v4265_v27 = vld [vmem:[#allocation8 + $0x858] sm:$0xff]  ;;  %v9834_v29 = vcombine.high %v4328_v50, %v4332_v24  ;;  %v9833_v33 = vcombine.low %v4328_v50, %v4332_v24  ;;  %v4376_v20 = vld [vmem:[#allocation8 + $0xbd0] sm:$0xff] }
 0x491   :  { %7547 = vmatpush1.bf16.msra.mxu0 %v9777_v28  ;;  %v4269_v28 = vld [vmem:[#allocation8 + $0x878] sm:$0xff]  ;;  %v4380_v13 = vld [vmem:[#allocation8 + $0xbf0] sm:$0xff] }
 0x492   :  { %7548 = vmatprep.subr.bf16.mxu0 %v9786_v48  ;;  %v4336_v48 = vld [vmem:[#allocation8 + $0xa90] sm:$0xff]  ;;  %v9772_v32 = vcombine.high %v4265_v27, %v4269_v28  ;;  %v9771_v39 = vcombine.low %v4265_v27, %v4269_v28  ;;  %v4313_v50 = vld [vmem:[#allocation8 + $0x9d8] sm:$0xff] }
 0x493   :  { %7692 = vmatpush1.bf16.msra.mxu1 %v9715_v31  ;;  %v4340_v31 = vld [vmem:[#allocation8 + $0xab0] sm:$0xff]  ;;  %v4317_v24 = vld [vmem:[#allocation8 + $0x9f8] sm:$0xff] }
 0x494   :  { %7693 = vmatprep.subr.bf16.mxu1 %v9724_v35  ;;  %v4273_v35 = vld [vmem:[#allocation8 + $0x898] sm:$0xff]  ;;  %v9842_v38 = vcombine.high %v4336_v48, %v4340_v31  ;;  %v9841_v41 = vcombine.low %v4336_v48, %v4340_v31  ;;  %v4384_v27 = vld [vmem:[#allocation8 + $0xc10] sm:$0xff] }
 0x495   :  { %7549 = vmatpush1.bf16.msra.mxu0 %v9785_v36  ;;  %v4277_v36 = vld [vmem:[#allocation8 + $0x8b8] sm:$0xff]  ;;  %v4388_v28 = vld [vmem:[#allocation8 + $0xc30] sm:$0xff] }
 0x496   :  { %7550 = vmatprep.subr.bf16.mxu0 %v9794_v40  ;;  %v4344_v40 = vld [vmem:[#allocation8 + $0xad0] sm:$0xff]  ;;  %v9780_v17 = vcombine.high %v4273_v35, %v4277_v36  ;;  %v9779_v51 = vcombine.low %v4273_v35, %v4277_v36  ;;  %v4321_v48 = vld [vmem:[#allocation8 + $0xa18] sm:$0xff] }
 0x497   :  { %7694 = vmatpush1.bf16.msra.mxu1 %v9723_v46  ;;  %v4348_v46 = vld [vmem:[#allocation8 + $0xaf0] sm:$0xff]  ;;  %v4325_v31 = vld [vmem:[#allocation8 + $0xa38] sm:$0xff] }
 0x498   :  { %7695 = vmatprep.subr.bf16.mxu1 %v9732_v42  ;;  %v4281_v42 = vld [vmem:[#allocation8 + $0x8d8] sm:$0xff]  ;;  %v9850_v43 = vcombine.high %v4344_v40, %v4348_v46  ;;  %v9849_v61 = vcombine.low %v4344_v40, %v4348_v46  ;;  %v4392_v35 = vld [vmem:[#allocation8 + $0xc50] sm:$0xff] }
 0x499   :  { %7551 = vmatpush1.bf16.msra.mxu0 %v9793_v0  ;;  %v4285_v0 = vld [vmem:[#allocation8 + $0x8f8] sm:$0xff]  ;;  %v4396_v36 = vld [vmem:[#allocation8 + $0xc70] sm:$0xff] }
 0x49a   :  { %7552 = vmatprep.subr.bf16.mxu0 %v9802_v59  ;;  %v4352_v59 = vld [vmem:[#allocation8 + $0xb10] sm:$0xff]  ;;  %v4329_v40 = vld [vmem:[#allocation8 + $0xa58] sm:$0xff] }
 0x49b   :  { %7696 = vmatpush1.bf16.msra.mxu1 %v9731_v60  ;;  %v9788_v60 = vcombine.high %v4281_v42, %v4285_v0  ;;  %v4333_v46 = vld [vmem:[#allocation8 + $0xa78] sm:$0xff] }
 0x49c   :  { %7697 = vmatprep.subr.bf16.mxu1 %v9740_v63 }
 0x49d   :  { %7553 = vmatpush1.bf16.msra.mxu0 %v9801_v1  ;;  %v9787_v1 = vcombine.low %v4281_v42, %v4285_v0  ;;  %v4400_v42 = vld [vmem:[#allocation8 + $0xc90] sm:$0xff] }
 0x49e   :  { %7554 = vmatprep.subr.bf16.mxu0 %v9810_v4  ;;  %v4404_v0 = vld [vmem:[#allocation8 + $0xcb0] sm:$0xff] }
 0x49f   :  { %7698 = vmatpush1.bf16.msra.mxu1 %v9739_v5 }
 0x4a0   :  { %7699 = vmatprep.subr.bf16.mxu1 %v9748_v11  ;;  %v9866_v11 = vcombine.high %v4360_v58, %v4364_v2 }
 0x4a1   :  { %7555 = vmatpush1.bf16.msra.mxu0 %v9809_v12 }
 0x4a2   :  { %7556 = vmatprep.subr.bf16.mxu0 %v9818_v21  ;;  %v9804_v21 = vcombine.high %v4297_v8, %v4301_v9 }
 0x4a3   :  { %7700 = vmatpush1.bf16.msra.mxu1 %v9747_v18  ;;  %v9865_v18 = vcombine.low %v4360_v58, %v4364_v2  ;;  %v4345_v58 = vld [vmem:[#allocation8 + $0xad8] sm:$0xff] }
 0x4a4   :  { %7701 = vmatprep.subr.bf16.mxu1 %v9756_v47  ;;  %v9874_v47 = vcombine.high %v4368_v7, %v4372_v16  ;;  %v4349_v2 = vld [vmem:[#allocation8 + $0xaf8] sm:$0xff] }
 0x4a5   :  { %7557 = vmatpush1.bf16.msra.mxu0 %v9817_v37  ;;  %v9803_v37 = vcombine.low %v4297_v8, %v4301_v9  ;;  %v4416_v8 = vld [vmem:[#allocation8 + $0xd10] sm:$0xff] }
 0x4a6   :  { %7558 = vmatprep.subr.bf16.mxu0 %v9826_v22  ;;  %v9812_v22 = vcombine.high %v4305_v19, %v4309_v45  ;;  %v4420_v9 = vld [vmem:[#allocation8 + $0xd30] sm:$0xff] }
 0x4a7   :  { %7702 = vmatpush1.bf16.msra.mxu1 %v9755_v23  ;;  %v9873_v23 = vcombine.low %v4368_v7, %v4372_v16  ;;  %v4353_v7 = vld [vmem:[#allocation8 + $0xb18] sm:$0xff] }
 0x4a8   :  { %7714 = vmatprep.subr.bf16.mxu1 %v9764_v34  ;;  %v9882_v34 = vcombine.high %v4376_v20, %v4380_v13  ;;  %v4357_v16 = vld [vmem:[#allocation8 + $0xb38] sm:$0xff] }
 0x4a9   :  { %7559 = vmatpush1.bf16.msra.mxu0 %v9825_v25  ;;  %v9811_v25 = vcombine.low %v4305_v19, %v4309_v45  ;;  %v4424_v19 = vld [vmem:[#allocation8 + $0xd50] sm:$0xff] }
 0x4aa   :  { %7704 = vmatmul.mubr.bf16.vlgmr.msra.gmra.mrb[16].mxu1 %v11054_v44  ;;  %7560 = vmatprep.subr.bf16.mxu0 %v9834_v29  ;;  %v4356_v44 = vld [vmem:[#allocation8 + $0xb30] sm:$0xff]  ;;  %v9820_v29 = vcombine.high %v4313_v50, %v4317_v24 }
 0x4ab   :  { %7715 = vmatpush1.bf16.msra.mxu1 %v9763_v30  ;;  %7746 = vmatprep.mubr.bf16.mxu1 %v11060_v26  ;;  %v4289_v26 = vld [vmem:[#allocation8 + $0x918] sm:$0xff]  ;;  %v9858_v63 = vcombine.high %v4352_v59, %v4356_v44  ;;  %v9857_v5 = vcombine.low %v4352_v59, %v4356_v44  ;;  %v9881_v30 = vcombine.low %v4376_v20, %v4380_v13  ;;  %v4428_v45 = vld [vmem:[#allocation8 + $0xd70] sm:$0xff]  ;;  %v11113_v20 = vld [vmem:[#allocation10] sm:$0xff] }
 0x4ac   :  { %7716 = vmatprep.subr.bf16.mxu1 %v9772_v32  ;;  %v9796_v4 = vcombine.high %v4289_v26, %v4293_v62  ;;  %v9795_v12 = vcombine.low %v4289_v26, %v4293_v62  ;;  %v9890_v32 = vcombine.high %v4384_v27, %v4388_v28  ;;  %v4337_v59 = vld [vmem:[#allocation8 + $0xa98] sm:$0xff]  ;;  %v4408_v26 = vld [vmem:[#allocation8 + $0xcd0] sm:$0xff] }
 0x4ad   :  { %7561 = vmatpush1.bf16.msra.mxu0 %v9833_v33  ;;  %v9819_v33 = vcombine.low %v4313_v50, %v4317_v24  ;;  %v4341_v44 = vld [vmem:[#allocation8 + $0xab8] sm:$0xff]  ;;  %v4412_v62 = vld [vmem:[#allocation8 + $0xcf0] sm:$0xff]  ;;  %v9859_v50 = vcombine.low %v4353_v7, %v4357_v16 }
 0x4ae   :  { %7562 = vmatprep.subr.bf16.mxu0 %v9842_v38  ;;  %v9828_v38 = vcombine.high %v4321_v48, %v4325_v31  ;;  %v4361_v13 = vld [vmem:[#allocation8 + $0xb58] sm:$0xff]  ;;  %v4432_v24 = vld [vmem:[#allocation8 + $0xd90] sm:$0xff] }
 0x4af   :  { %7717 = vmatpush1.bf16.msra.mxu1 %v9771_v39  ;;  %v9889_v39 = vcombine.low %v4384_v27, %v4388_v28  ;;  %v9929_v28 = vcombine.low %v4424_v19, %v4428_v45 }
 0x4b0   :  { %7718 = vmatprep.subr.bf16.mxu1 %v9780_v17  ;;  %v9898_v17 = vcombine.high %v4392_v35, %v4396_v36 }
 0x4b1   :  { %7563 = vmatpush1.bf16.msra.mxu0 %v9841_v41  ;;  %v9827_v41 = vcombine.low %v4321_v48, %v4325_v31  ;;  %v4373_v48 = vld [vmem:[#allocation8 + $0xbb8] sm:$0xff] }
 0x4b2   :  { %7564 = vmatprep.subr.bf16.mxu0 %v9850_v43  ;;  %v9836_v43 = vcombine.high %v4329_v40, %v4333_v46 }
 0x4b3   :  { %7719 = vmatpush1.bf16.msra.mxu1 %v9779_v51  ;;  %v9897_v51 = vcombine.low %v4392_v35, %v4396_v36  ;;  %v4440_v35 = vld [vmem:[#allocation8 + $0xdd0] sm:$0xff] }
 0x4b4   :  { %7720 = vmatprep.subr.bf16.mxu1 %v9788_v60  ;;  %v9906_v60 = vcombine.high %v4400_v42, %v4404_v0  ;;  %v4444_v36 = vld [vmem:[#allocation8 + $0xdf0] sm:$0xff] }
 0x4b5   :  { %7565 = vmatpush1.bf16.msra.mxu0 %v9849_v61  ;;  %v9835_v61 = vcombine.low %v4329_v40, %v4333_v46 }
 0x4b6   :  { %7566 = vmatprep.subr.bf16.mxu0 %v9858_v63  ;;  %v9844_v63 = vcombine.high %v4337_v59, %v4341_v44 }
 0x4b7   :  { %7721 = vmatpush1.bf16.msra.mxu1 %v9787_v1  ;;  %v9905_v1 = vcombine.low %v4400_v42, %v4404_v0  ;;  %v4377_v42 = vld [vmem:[#allocation8 + $0xbd8] sm:$0xff] }
 0x4b8   :  { %7722 = vmatprep.subr.bf16.mxu1 %v9796_v4  ;;  %v9914_v4 = vcombine.high %v4408_v26, %v4412_v62  ;;  %v4381_v0 = vld [vmem:[#allocation8 + $0xbf8] sm:$0xff] }
 0x4b9   :  { %7567 = vmatpush1.bf16.msra.mxu0 %v9857_v5  ;;  %v9843_v5 = vcombine.low %v4337_v59, %v4341_v44  ;;  %v9946_v59 = vcombine.high %v4440_v35, %v4444_v36 }
 0x4ba   :  { %7568 = vmatprep.subr.bf16.mxu0 %v9866_v11  ;;  %v9852_v11 = vcombine.high %v4345_v58, %v4349_v2 }
 0x4bb   :  { %7723 = vmatpush1.bf16.msra.mxu1 %v9795_v12  ;;  %v9913_v12 = vcombine.low %v4408_v26, %v4412_v62  ;;  %v4452_v26 = vld [vmem:[#allocation8 + $0xe30] sm:$0xff] }
 0x4bc   :  { %7724 = vmatprep.subr.bf16.mxu1 %v9804_v21  ;;  %v9922_v21 = vcombine.high %v4416_v8, %v4420_v9 }
 0x4bd   :  { %7569 = vmatpush1.bf16.msra.mxu0 %v9865_v18  ;;  %v9851_v18 = vcombine.low %v4345_v58, %v4349_v2 }
 0x4be   :  { %7570 = vmatprep.subr.bf16.mxu0 %v9874_v47  ;;  %v9860_v47 = vcombine.high %v4353_v7, %v4357_v16  ;;  %v9883_v7 = vcombine.low %v4377_v42, %v4381_v0  ;;  %v4456_v16 = vld [vmem:[#allocation8 + $0xe50] sm:$0xff] }
 0x4bf   :  { %7725 = vmatpush1.bf16.msra.mxu1 %v9803_v37  ;;  %v9921_v37 = vcombine.low %v4416_v8, %v4420_v9  ;;  %v4389_v8 = vld [vmem:[#allocation8 + $0xc38] sm:$0xff] }
 0x4c0   :  { %7726 = vmatprep.subr.bf16.mxu1 %v9812_v22  ;;  %v4365_v22 = vld [vmem:[#allocation8 + $0xb78] sm:$0xff] }
 0x4c1   :  { %7571 = vmatpush1.bf16.msra.mxu0 %v9873_v23  ;;  %v9930_v23 = vcombine.high %v4424_v19, %v4428_v45  ;;  %v9868_v27 = vcombine.high %v4361_v13, %v4365_v22  ;;  %v4393_v45 = vld [vmem:[#allocation8 + $0xc58] sm:$0xff] }
 0x4c2   :  { %7572 = vmatprep.subr.bf16.mxu0 %v9882_v34  ;;  %v4436_v34 = vld [vmem:[#allocation8 + $0xdb0] sm:$0xff] }
 0x4c3   :  { %7727 = vmatpush1.bf16.msra.mxu1 %v9811_v25  ;;  %v4515_v25 = vrot.slane %v11113_v20, %v11012_v10  ;;  %v9938_v31 = vcombine.high %v4432_v24, %v4436_v34 }
 0x4c4   :  { %7728 = vmatprep.subr.bf16.mxu1 %v9820_v29  ;;  %v4519_v29 = vrot.slane %v11113_v20, %v11015_v15 }
 0x4c5   :  { %7573 = vmatpush1.bf16.msra.mxu0 %v9881_v30  ;;  %v4369_v30 = vld [vmem:[#allocation8 + $0xb98] sm:$0xff] }
 0x4c6   :  { %7585 = vmatprep.subr.bf16.mxu0 %v9890_v32  ;;  %v9876_v40 = vcombine.high %v4369_v30, %v4373_v48 }
 0x4c7   :  { %7729 = vmatpush1.bf16.msra.mxu1 %v9819_v33  ;;  %v9867_v33 = vcombine.low %v4361_v13, %v4365_v22  ;;  %v4464_v22 = vld [vmem:[#allocation8 + $0xe90] sm:$0xff] }
 0x4c8   :  { %7575 = vmatmul.mubr.bf16.vlgmr.msra.gmra.mrb[12].mxu0 %v11056_v49  ;;  %7730 = vmatprep.subr.bf16.mxu1 %v9828_v38 }
 0x4c9   :  { %7586 = vmatpush1.bf16.msra.mxu0 %v9889_v39  ;;  %7617 = vmatprep.mubr.bf16.mxu0 %v11092_v57 }
 0x4ca   :  { %7587 = vmatprep.subr.bf16.mxu0 %v9898_v17 }
 0x4cb   :  { %7731 = vmatpush1.bf16.msra.mxu1 %v9827_v41  ;;  %v9937_v41 = vcombine.low %v4432_v24, %v4436_v34  ;;  %v4401_v34 = vld [vmem:[#allocation8 + $0xc98] sm:$0xff] }
 0x4cc   :  { %7732 = vmatprep.subr.bf16.mxu1 %v9836_v43 }
 0x4cd   :  { %7588 = vmatpush1.bf16.msra.mxu0 %v9897_v51 }
 0x4ce   :  { %7589 = vmatprep.subr.bf16.mxu0 %v9906_v60  ;;  %v9875_v60 = vcombine.low %v4369_v30, %v4373_v48  ;;  %v4476_v30 = vld [vmem:[#allocation8 + $0xef0] sm:$0xff] }
 0x4cf   :  { %7733 = vmatpush1.bf16.msra.mxu1 %v9835_v61  ;;  %v4448_v61 = vld [vmem:[#allocation8 + $0xe10] sm:$0xff] }
 0x4d0   :  { %7734 = vmatprep.subr.bf16.mxu1 %v9844_v63  ;;  %v9953_v19 = vcombine.low %v4448_v61, %v4452_v26 }
 0x4d1   :  { %7590 = vmatpush1.bf16.msra.mxu0 %v9905_v1  ;;  %v9884_v1 = vcombine.high %v4377_v42, %v4381_v0  ;;  %v4488_v42 = vld [vmem:[#allocation8 + $0xf50] sm:$0xff] }
 0x4d2   :  { %7591 = vmatprep.subr.bf16.mxu0 %v9914_v4  ;;  %v9945_v4 = vcombine.low %v4440_v35, %v4444_v36  ;;  %v4492_v0 = vld [vmem:[#allocation8 + $0xf70] sm:$0xff] }
 0x4d3   :  { %7735 = vmatpush1.bf16.msra.mxu1 %v9843_v5  ;;  %v4385_v5 = vld [vmem:[#allocation8 + $0xc18] sm:$0xff] }
 0x4d4   :  { %7736 = vmatprep.subr.bf16.mxu1 %v9852_v11  ;;  %v9954_v11 = vcombine.high %v4448_v61, %v4452_v26  ;;  %v9891_v13 = vcombine.low %v4385_v5, %v4389_v8  ;;  %v4496_v26 = vld [vmem:[#allocation8 + $0xf90] sm:$0xff] }
 0x4d5   :  { %7592 = vmatpush1.bf16.msra.mxu0 %v9913_v12 }
 0x4d6   :  { %7593 = vmatprep.subr.bf16.mxu0 %v9922_v21  ;;  %v4460_v21 = vld [vmem:[#allocation8 + $0xe70] sm:$0xff] }
 0x4d7   :  { %7737 = vmatpush1.bf16.msra.mxu1 %v9851_v18  ;;  %v9892_v18 = vcombine.high %v4385_v5, %v4389_v8  ;;  %v9961_v24 = vcombine.low %v4456_v16, %v4460_v21  ;;  %v4527_v8 = vrot.slane %v11113_v20, %v700_v55 }
 0x4d8   :  { %7738 = vmatprep.subr.bf16.mxu1 %v9860_v47  ;;  %v4397_v47 = vld [vmem:[#allocation8 + $0xc78] sm:$0xff] }
 0x4d9   :  { %7594 = vmatpush1.bf16.msra.mxu0 %v9921_v37  ;;  %v9962_v37 = vcombine.high %v4456_v16, %v4460_v21  ;;  %v4508_v16 = vld [vmem:[#allocation8 + $0xff0] sm:$0xff] }
 0x4da   :  { %7595 = vmatprep.subr.bf16.mxu0 %v9930_v23  ;;  %v4468_v23 = vld [vmem:[#allocation8 + $0xeb0] sm:$0xff] }
 0x4db   :  { %v7275_v32 = vpop.f32.mrb[8].mxu0  ;;  %7739 = vmatpush1.bf16.msra.mxu1 %v9859_v50  ;;  %v9900_v50 = vcombine.high %v4393_v45, %v4397_v47 }
 0x4dc   :  { %v10209_v38 = vadd.f32 %v7275_v32, %v4515_v25  ;;  %v7277_v39 = vpop.f32.mrb[9].mxu0  ;;  %7740 = vmatprep.subr.bf16.mxu1 %v9868_v27  ;;  %v9970_v27 = vcombine.high %v4464_v22, %v4468_v23  ;;  %v4409_v32 = vld [vmem:[#allocation8 + $0xcd8] sm:$0xff] }
 0x4dd   :  { %v10210_v46 = vadd.f32 %v7277_v39, %v4519_v29  ;;  %7596 = vmatpush1.bf16.msra.mxu0 %v9929_v28  ;;  %v7279_v17 = vpop.f32.mrb[10].mxu0  ;;  %v9899_v28 = vcombine.low %v4393_v45, %v4397_v47  ;;  %v4441_v45 = vld [vmem:[#allocation8 + $0xdd8] sm:$0xff] }
 0x4de   :  { %v10211_v43 = vadd.f32 %v7279_v17, %v4515_v25  ;;  %v7281_v51 = vpop.f32.mrb[11].mxu0  ;;  %7597 = vmatprep.subr.bf16.mxu0 %v9938_v31  ;;  %v7800_v62 = vmax.f32 %v10209_v38, 0.0  ;;  %v4405_v25 = vld [vmem:[#allocation8 + $0xcb8] sm:$0xff]  ;;  %v9969_v31 = vcombine.low %v4464_v22, %v4468_v23  ;;  %v4480_v38 = vld [vmem:[#allocation8 + $0xf10] sm:$0xff] }
 0x4df   :  { %v10212_v44 = vadd.f32 %v7281_v51, %v4519_v29  ;;  %7741 = vmatpush1.bf16.msra.mxu1 %v9867_v33  ;;  %v7801_v58 = vmax.f32 %v10210_v46, 0.0  ;;  %v4472_v29 = vld [vmem:[#allocation8 + $0xed0] sm:$0xff]  ;;  %v9908_v48 = vcombine.high %v4401_v34, %v4405_v25  ;;  %v4413_v33 = vld [vmem:[#allocation8 + $0xcf8] sm:$0xff]  ;;  %v9907_v36 = vcombine.low %v4401_v34, %v4405_v25 }
 0x4e0   :  { %v7808_v63 = vmax.f32 %v10211_v43, 0.0  ;;  %7742 = vmatprep.subr.bf16.mxu1 %v9876_v40  ;;  %v9978_v35 = vcombine.high %v4472_v29, %v4476_v30  ;;  %v9916_v39 = vcombine.high %v4409_v32, %v4413_v33  ;;  %v9977_v40 = vcombine.low %v4472_v29, %v4476_v30  ;;  %v4421_v46 = vld [vmem:[#allocation8 + $0xd38] sm:$0xff] }
 0x4e1   :  { %v7809_v2 = vmax.f32 %v10212_v44, 0.0  ;;  %7598 = vmatpush1.bf16.msra.mxu0 %v9937_v41  ;;  %v9915_v41 = vcombine.low %v4409_v32, %v4413_v33  ;;  %v4429_v44 = vld [vmem:[#allocation8 + $0xd78] sm:$0xff] }
 0x4e2   :  { %v11119_v9 = vpack.c.bf16 %v7808_v63, %v7800_v62  ;;  %7599 = vmatprep.subr.bf16.mxu0 %v9946_v59  ;;  %v4425_v59 = vld [vmem:[#allocation8 + $0xd58] sm:$0xff]  ;;  %v4500_v62 = vld [vmem:[#allocation8 + $0xfb0] sm:$0xff] }
 0x4e3   :  { %v11121_v12 = vpack.c.bf16 %v7809_v2, %v7801_v58  ;;  %7743 = vmatpush1.bf16.msra.mxu1 %v9875_v60  ;;  %v9994_v60 = vcombine.high %v4488_v42, %v4492_v0  ;;  %v9932_v63 = vcombine.high %v4425_v59, %v4429_v44  ;;  %v4433_v58 = vld [vmem:[#allocation8 + $0xd98] sm:$0xff]  ;;  %v10002_v5 = vcombine.high %v4496_v26, %v4500_v62 }
 0x4e4   :  { %7744 = vmatprep.subr.bf16.mxu1 %v9884_v1  ;;  %v9993_v1 = vcombine.low %v4488_v42, %v4492_v0  ;;  %v4437_v2 = vld [vmem:[#allocation8 + $0xdb8] sm:$0xff] }
 0x4e5   :  { %7600 = vmatpush1.bf16.msra.mxu0 %v9945_v4  ;;  %v4523_v4 = vrot.slane %v11113_v20, %v696_v53  ;;  %v9940_v21 = vcombine.high %v4433_v58, %v4437_v2  ;;  %v4445_v47 = vld [vmem:[#allocation8 + $0xdf8] sm:$0xff] }
 0x4e6   :  { %7601 = vmatprep.subr.bf16.mxu0 %v9954_v11  ;;  %v9931_v11 = vcombine.low %v4425_v59, %v4429_v44  ;;  %v9948_v34 = vcombine.high %v4441_v45, %v4445_v47  ;;  %v4453_v29 = vld [vmem:[#allocation8 + $0xe38] sm:$0xff] }
 0x4e7   :  { %7745 = vmatpush1.bf16.msra.mxu1 %v9883_v7  ;;  %v4504_v7 = vld [vmem:[#allocation8 + $0xfd0] sm:$0xff]  ;;  %v10353_v42 = vld [vmem:[#allocation11 + $0x10] ss:$8 sps:$4 sm:$0xff]  }
 0x4e8   :  { %7757 = vmatprep.subr.bf16.mxu1 %v9892_v18  ;;  %v10010_v53 = vcombine.high %v4504_v7, %v4508_v16  ;;  %v4465_v0 = vld [vmem:[#allocation8 + $0xe98] sm:$0xff] }
 0x4e9   :  { %7602 = vmatpush1.bf16.msra.mxu0 %v9953_v19  ;;  %v10001_v19 = vcombine.low %v4496_v26, %v4500_v62  ;;  %v4477_v26 = vld [vmem:[#allocation8 + $0xef8] sm:$0xff] }
 0x4ea   :  { %7747 = vmatmul.mubr.bf16.vlgmr.msra.gmra.mrb[16].mxu1 %v11056_v49  ;;  %7603 = vmatprep.subr.bf16.mxu0 %v9962_v37  ;;  %v4484_v49 = vld [vmem:[#allocation8 + $0xf30] sm:$0xff]  ;;  %v10361_v62 = vld [vmem:[#allocation11 + $0x34] ss:$8 sps:$4 sm:$0xff]  }
 0x4eb   :  { %7758 = vmatpush1.bf16.msra.mxu1 %v9891_v13  ;;  %7789 = vmatprep.mubr.bf16.mxu1 %v11092_v57  ;;  %v4417_v57 = vld [vmem:[#allocation8 + $0xd18] sm:$0xff]  ;;  %v9986_v17 = vcombine.high %v4480_v38, %v4484_v49  ;;  %v9985_v51 = vcombine.low %v4480_v38, %v4484_v49 }
 0x4ec   :  { %7759 = vmatprep.subr.bf16.mxu1 %v9900_v50  ;;  %v9924_v43 = vcombine.high %v4417_v57, %v4421_v46  ;;  %v9923_v61 = vcombine.low %v4417_v57, %v4421_v46  ;;  %v9939_v50 = vcombine.low %v4433_v58, %v4437_v2  ;;  %v4461_v57 = vld [vmem:[#allocation8 + $0xe78] sm:$0xff] }
 0x4ed   :  { %7604 = vmatpush1.bf16.msra.mxu0 %v9961_v24  ;;  %v10355_v46 = vld [vmem:[#allocation11 + $0x14] ss:$8 sps:$4 sm:$0xff]  }
 0x4ee   :  { %7605 = vmatprep.subr.bf16.mxu0 %v9970_v27  ;;  %v10009_v27 = vcombine.low %v4504_v7, %v4508_v16  ;;  %v4481_v58 = vld [vmem:[#allocation8 + $0xf18] sm:$0xff] }
 0x4ef   :  { %7760 = vmatpush1.bf16.msra.mxu1 %v9899_v28  ;;  %v4449_v28 = vld [vmem:[#allocation8 + $0xe18] sm:$0xff] }
 0x4f0   :  { %7761 = vmatprep.subr.bf16.mxu1 %v9908_v48  ;;  %v9956_v38 = vcombine.high %v4449_v28, %v4453_v29  ;;  %v4485_v2 = vld [vmem:[#allocation8 + $0xf38] sm:$0xff] }
 0x4f1   :  { %7606 = vmatpush1.bf16.msra.mxu0 %v9969_v31  ;;  %v10352_v31 = vld [vmem:[#allocation11 + $0x4] ss:$8 sps:$4 sm:$0xff]   ;;  %v4489_v7 = vld [vmem:[#allocation8 + $0xf58] sm:$0xff] }
 0x4f2   :  { %7607 = vmatprep.subr.bf16.mxu0 %v9978_v35  ;;  %v9947_v35 = vcombine.low %v4441_v45, %v4445_v47  ;;  %v4493_v16 = vld [vmem:[#allocation8 + $0xf78] sm:$0xff] }
 0x4f3   :  { %7762 = vmatpush1.bf16.msra.mxu1 %v9907_v36  ;;  %v10365_v45 = vld [vmem:[#allocation11 + $0x50] ss:$8 sps:$4 sm:$0xff]  }
 0x4f4   :  { %7763 = vmatprep.subr.bf16.mxu1 %v9916_v39  ;;  %v10350_v39 = vld [vmem:[#allocation11] ss:$8 sps:$4 sm:$0xff]   ;;  %v4497_v47 = vld [vmem:[#allocation8 + $0xf98] sm:$0xff] }
 0x4f5   :  { %7608 = vmatpush1.bf16.msra.mxu0 %v9977_v40  ;;  %v4457_v40 = vld [vmem:[#allocation8 + $0xe58] sm:$0xff] }
 0x4f6   :  { %7609 = vmatprep.subr.bf16.mxu0 %v9986_v17  ;;  %v9955_v17 = vcombine.low %v4449_v28, %v4453_v29  ;;  %v9963_v59 = vcombine.low %v4457_v40, %v4461_v57  ;;  %v10376_v28 = vld [vmem:[#allocation11 + $0x84] ss:$8 sps:$4 sm:$0xff]  }
 0x4f7   :  { %7764 = vmatpush1.bf16.msra.mxu1 %v9915_v41  ;;  %v9964_v41 = vcombine.high %v4457_v40, %v4461_v57  ;;  %v10386_v40 = vld [vmem:[#allocation11 + $0xc0] ss:$8 sps:$4 sm:$0xff]   ;;  %v10391_v57 = vld [vmem:[#allocation11 + $0xd4] ss:$8 sps:$4 sm:$0xff]  }
 0x4f8   :  { %7765 = vmatprep.subr.bf16.mxu1 %v9924_v43  ;;  %v4469_v43 = vld [vmem:[#allocation8 + $0xeb8] sm:$0xff] }
 0x4f9   :  { %7610 = vmatpush1.bf16.msra.mxu0 %v9985_v51  ;;  %v10358_v51 = vld [vmem:[#allocation11 + $0x24] ss:$8 sps:$4 sm:$0xff]   ;;  %v9972_v44 = vcombine.high %v4465_v0, %v4469_v43 }
 0x4fa   :  { %7611 = vmatprep.subr.bf16.mxu0 %v9994_v60  ;;  %v10356_v60 = vld [vmem:[#allocation11 + $0x20] ss:$8 sps:$4 sm:$0xff]  }
 0x4fb   :  { %7766 = vmatpush1.bf16.msra.mxu1 %v9923_v61  ;;  %v4473_v61 = vld [vmem:[#allocation8 + $0xed8] sm:$0xff] }
 0x4fc   :  { %7767 = vmatprep.subr.bf16.mxu1 %v9932_v63  ;;  %v9971_v63 = vcombine.low %v4465_v0, %v4469_v43  ;;  %v10400_v0 = vld [vmem:[#allocation11 + $0x104] ss:$8 sps:$4 sm:$0xff]   ;;  %v10398_v43 = vld [vmem:[#allocation11 + $0x100] ss:$8 sps:$4 sm:$0xff]  }
 0x4fd   :  { %7612 = vmatpush1.bf16.msra.mxu0 %v9993_v1  ;;  %v7447_v18 = vpop.f32.mrb[12].mxu1  ;;  %v9980_v1 = vcombine.high %v4473_v61, %v4477_v26 }
 0x4fe   :  { %v10213_v37 = vadd.f32 %v7447_v18, %v4523_v4  ;;  %v7449_v13 = vpop.f32.mrb[13].mxu1  ;;  %7613 = vmatprep.subr.bf16.mxu0 %v10002_v5  ;;  %v9979_v5 = vcombine.low %v4473_v61, %v4477_v26  ;;  %v9987_v18 = vcombine.low %v4481_v58, %v4485_v2  ;;  %v10409_v61 = vld [vmem:[#allocation11 + $0x134] ss:$8 sps:$4 sm:$0xff]   ;;  %v10407_v26 = vld [vmem:[#allocation11 + $0x130] ss:$8 sps:$4 sm:$0xff]  }
 0x4ff   :  { %v10214_v22 = vadd.f32 %v7449_v13, %v4527_v8  ;;  %v7451_v23 = vpop.f32.mrb[14].mxu1  ;;  %7768 = vmatpush1.bf16.msra.mxu1 %v9931_v11  ;;  %v10362_v11 = vld [vmem:[#allocation11 + $0x40] ss:$8 sps:$4 sm:$0xff]   ;;  %v10370_v13 = vld [vmem:[#allocation11 + $0x64] ss:$8 sps:$4 sm:$0xff]  }
 0x500   :  { %v10215_v24 = vadd.f32 %v7451_v23, %v4523_v4  ;;  %v7453_v55 = vpop.f32.mrb[15].mxu1  ;;  %7769 = vmatprep.subr.bf16.mxu1 %v9940_v21  ;;  %v7802_v30 = vmax.f32 %v10213_v37, 0.0  ;;  %v10364_v4 = vld [vmem:[#allocation11 + $0x44] ss:$8 sps:$4 sm:$0xff]   ;;  %v10367_v21 = vld [vmem:[#allocation11 + $0x54] ss:$8 sps:$4 sm:$0xff]  }
 0x501   :  { %v10216_v25 = vadd.f32 %v7453_v55, %v4527_v8  ;;  %7614 = vmatpush1.bf16.msra.mxu0 %v10001_v19  ;;  %v7803_v32 = vmax.f32 %v10214_v22, 0.0  ;;  %v9988_v8 = vcombine.high %v4481_v58, %v4485_v2  ;;  %v9996_v19 = vcombine.high %v4489_v7, %v4493_v16  ;;  %v4501_v37 = vld [vmem:[#allocation8 + $0xfb8] sm:$0xff]  ;;  %v10368_v23 = vld [vmem:[#allocation11 + $0x60] ss:$8 sps:$4 sm:$0xff]  }
 0x502   :  { %v7810_v48 = vmax.f32 %v10215_v24, 0.0  ;;  %7615 = vmatprep.subr.bf16.mxu0 %v10010_v53  ;;  %v9995_v53 = vcombine.low %v4489_v7, %v4493_v16  ;;  %v10004_v22 = vcombine.high %v4497_v47, %v4501_v37  ;;  %v4509_v24 = vld [vmem:[#allocation8 + $0xff8] sm:$0xff]  ;;  %v10430_v7 = vld [vmem:[#allocation11 + $0x1a4] ss:$8 sps:$4 sm:$0xff]   ;;  %v10428_v16 = vld [vmem:[#allocation11 + $0x1a0] ss:$8 sps:$4 sm:$0xff]  }
 0x503   :  { %v7811_v33 = vmax.f32 %v10216_v25, 0.0  ;;  %7770 = vmatpush1.bf16.msra.mxu1 %v9939_v50  ;;  %v4505_v50 = vld [vmem:[#allocation8 + $0xfd8] sm:$0xff] }
 0x504   :  { %v11131_v36 = vpack.c.bf16 %v7810_v48, %v7802_v30  ;;  %7771 = vmatprep.subr.bf16.mxu1 %v9948_v34  ;;  %v10373_v55 = vld [vmem:[#allocation11 + $0x74] ss:$8 sps:$4 sm:$0xff]   ;;  %v10003_v34 = vcombine.low %v4497_v47, %v4501_v37  ;;  %v10012_v25 = vcombine.high %v4505_v50, %v4509_v24  ;;  %v10011_v29 = vcombine.low %v4505_v50, %v4509_v24  ;;  %v10374_v30 = vld [vmem:[#allocation11 + $0x80] ss:$8 sps:$4 sm:$0xff]   ;;  %v10419_v2 = vld [vmem:[#allocation11 + $0x170] ss:$8 sps:$4 sm:$0xff]  }
 0x505   :  { %v11133_v49 = vpack.c.bf16 %v7811_v33, %v7803_v32  ;;  %7616 = vmatpush1.bf16.msra.mxu0 %v10009_v27  ;;  %v10371_v27 = vld [vmem:[#allocation11 + $0x70] ss:$8 sps:$4 sm:$0xff]   ;;  %v10379_v48 = vld [vmem:[#allocation11 + $0x94] ss:$8 sps:$4 sm:$0xff]   ;;  %v10382_v32 = vld [vmem:[#allocation11 + $0xa4] ss:$8 sps:$4 sm:$0xff]  }
 0x506   :  { %8604 = vmatprep.subr.bf16.mxu0 %v10352_v31  ;;  %v10377_v31 = vld [vmem:[#allocation11 + $0x90] ss:$8 sps:$4 sm:$0xff]   ;;  %v10380_v33 = vld [vmem:[#allocation11 + $0xa0] ss:$8 sps:$4 sm:$0xff]   ;;  %v10421_v58 = vld [vmem:[#allocation11 + $0x174] ss:$8 sps:$4 sm:$0xff]  }
 0x507   :  { %7772 = vmatpush1.bf16.msra.mxu1 %v9947_v35  ;;  %v10385_v35 = vld [vmem:[#allocation11 + $0xb4] ss:$8 sps:$4 sm:$0xff]   ;;  %v10437_v37 = vld [vmem:[#allocation11 + $0x1d0] ss:$8 sps:$4 sm:$0xff]   ;;  %v10448_v50 = vld [vmem:[#allocation11 + $0x204] ss:$8 sps:$4 sm:$0xff]  }
 0x508   :  { %7618 = vmatmul.mubr.bf16.vlgmr.msra.gmra.mrb[12].mxu0 %v11090_v52  ;;  %7773 = vmatprep.subr.bf16.mxu1 %v9956_v38  ;;  %v10383_v38 = vld [vmem:[#allocation11 + $0xb0] ss:$8 sps:$4 sm:$0xff]   ;;  %v10439_v47 = vld [vmem:[#allocation11 + $0x1d4] ss:$8 sps:$4 sm:$0xff]   ;;  %v10446_v24 = vld [vmem:[#allocation11 + $0x200] ss:$8 sps:$4 sm:$0xff]  }
 0x509   :  { %8605 = vmatpush1.bf16.msra.mxu0 %v10350_v39  ;;  %8636 = vmatprep.mubr.bf16.mxu0 %v11121_v12  ;;  %v10359_v12 = vld [vmem:[#allocation11 + $0x30] ss:$8 sps:$4 sm:$0xff]   ;;  %v10388_v39 = vld [vmem:[#allocation11 + $0xc4] ss:$8 sps:$4 sm:$0xff]  }
 0x50a   :  { %8606 = vmatprep.subr.bf16.mxu0 %v10355_v46  ;;  %v10389_v46 = vld [vmem:[#allocation11 + $0xd0] ss:$8 sps:$4 sm:$0xff]  }
 0x50b   :  { %7774 = vmatpush1.bf16.msra.mxu1 %v9955_v17  ;;  %v10394_v17 = vld [vmem:[#allocation11 + $0xe4] ss:$8 sps:$4 sm:$0xff]  }
 0x50c   :  { %7775 = vmatprep.subr.bf16.mxu1 %v9964_v41  ;;  %v10397_v41 = vld [vmem:[#allocation11 + $0xf4] ss:$8 sps:$4 sm:$0xff]  }
 0x50d   :  { %8607 = vmatpush1.bf16.msra.mxu0 %v10353_v42  ;;  %v10395_v42 = vld [vmem:[#allocation11 + $0xf0] ss:$8 sps:$4 sm:$0xff]  }
 0x50e   :  { %8608 = vmatprep.subr.bf16.mxu0 %v10358_v51  ;;  %v10403_v51 = vld [vmem:[#allocation11 + $0x114] ss:$8 sps:$4 sm:$0xff]  }
 0x50f   :  { %7776 = vmatpush1.bf16.msra.mxu1 %v9963_v59  ;;  %v10401_v59 = vld [vmem:[#allocation11 + $0x110] ss:$8 sps:$4 sm:$0xff]  }
 0x510   :  { %7777 = vmatprep.subr.bf16.mxu1 %v9972_v44  ;;  %v10406_v44 = vld [vmem:[#allocation11 + $0x124] ss:$8 sps:$4 sm:$0xff]  }
 0x511   :  { %8609 = vmatpush1.bf16.msra.mxu0 %v10356_v60  ;;  %v10404_v60 = vld [vmem:[#allocation11 + $0x120] ss:$8 sps:$4 sm:$0xff]  }
 0x512   :  { %8610 = vmatprep.subr.bf16.mxu0 %v10361_v62  ;;  %v10412_v62 = vld [vmem:[#allocation11 + $0x144] ss:$8 sps:$4 sm:$0xff]  }
 0x513   :  { %7778 = vmatpush1.bf16.msra.mxu1 %v9971_v63  ;;  %v10410_v63 = vld [vmem:[#allocation11 + $0x140] ss:$8 sps:$4 sm:$0xff]  }
 0x514   :  { %7779 = vmatprep.subr.bf16.mxu1 %v9980_v1  ;;  %v10415_v1 = vld [vmem:[#allocation11 + $0x154] ss:$8 sps:$4 sm:$0xff]  }
 0x515   :  { %8611 = vmatpush1.bf16.msra.mxu0 %v10359_v12  ;;  %v10418_v12 = vld [vmem:[#allocation11 + $0x164] ss:$8 sps:$4 sm:$0xff]  }
 0x516   :  { %8612 = vmatprep.subr.bf16.mxu0 %v10364_v4  ;;  %v10424_v4 = vld [vmem:[#allocation11 + $0x184] ss:$8 sps:$4 sm:$0xff]  }
 0x517   :  { %7780 = vmatpush1.bf16.msra.mxu1 %v9979_v5  ;;  %v10422_v5 = vld [vmem:[#allocation11 + $0x180] ss:$8 sps:$4 sm:$0xff]  }
 0x518   :  { %7781 = vmatprep.subr.bf16.mxu1 %v9988_v8  ;;  %v10427_v8 = vld [vmem:[#allocation11 + $0x194] ss:$8 sps:$4 sm:$0xff]  }
 0x519   :  { %8613 = vmatpush1.bf16.msra.mxu0 %v10362_v11  ;;  %v10425_v11 = vld [vmem:[#allocation11 + $0x190] ss:$8 sps:$4 sm:$0xff]  }
 0x51a   :  { %8614 = vmatprep.subr.bf16.mxu0 %v10367_v21  ;;  %v10433_v21 = vld [vmem:[#allocation11 + $0x1b4] ss:$8 sps:$4 sm:$0xff]  }
 0x51b   :  { %7782 = vmatpush1.bf16.msra.mxu1 %v9987_v18  ;;  %v10431_v18 = vld [vmem:[#allocation11 + $0x1b0] ss:$8 sps:$4 sm:$0xff]  }
 0x51c   :  { %7783 = vmatprep.subr.bf16.mxu1 %v9996_v19  ;;  %v10436_v19 = vld [vmem:[#allocation11 + $0x1c4] ss:$8 sps:$4 sm:$0xff]  }
 0x51d   :  { %8615 = vmatpush1.bf16.msra.mxu0 %v10365_v45  ;;  %v10434_v45 = vld [vmem:[#allocation11 + $0x1c0] ss:$8 sps:$4 sm:$0xff]  }
 0x51e   :  { %8616 = vmatprep.subr.bf16.mxu0 %v10370_v13  ;;  %v10442_v13 = vld [vmem:[#allocation11 + $0x1e4] ss:$8 sps:$4 sm:$0xff]  }
 0x51f   :  { %7784 = vmatpush1.bf16.msra.mxu1 %v9995_v53  ;;  %v10440_v53 = vld [vmem:[#allocation11 + $0x1e0] ss:$8 sps:$4 sm:$0xff]  }
 0x520   :  { %7785 = vmatprep.subr.bf16.mxu1 %v10004_v22  ;;  %v10445_v22 = vld [vmem:[#allocation11 + $0x1f4] ss:$8 sps:$4 sm:$0xff]  }
 0x521   :  { %8617 = vmatpush1.bf16.msra.mxu0 %v10368_v23  ;;  %v10443_v23 = vld [vmem:[#allocation11 + $0x1f0] ss:$8 sps:$4 sm:$0xff]  }
 0x522   :  { %8618 = vmatprep.subr.bf16.mxu0 %v10373_v55  ;;  %v10451_v55 = vld [vmem:[#allocation11 + $0x214] ss:$8 sps:$4 sm:$0xff]  }
 0x523   :  { %7786 = vmatpush1.bf16.msra.mxu1 %v10003_v34  ;;  %v10449_v34 = vld [vmem:[#allocation11 + $0x210] ss:$8 sps:$4 sm:$0xff]  }
 0x524   :  { %7787 = vmatprep.subr.bf16.mxu1 %v10012_v25  ;;  %v10454_v25 = vld [vmem:[#allocation11 + $0x224] ss:$8 sps:$4 sm:$0xff]  }
 0x525   :  { %8619 = vmatpush1.bf16.msra.mxu0 %v10371_v27  ;;  %v10452_v27 = vld [vmem:[#allocation11 + $0x220] ss:$8 sps:$4 sm:$0xff]  }
 0x526   :  { %8620 = vmatprep.subr.bf16.mxu0 %v10376_v28  ;;  %v10457_v28 = vld [vmem:[#allocation11 + $0x234] ss:$8 sps:$4 sm:$0xff]  }
 0x527   :  { %7788 = vmatpush1.bf16.msra.mxu1 %v10011_v29  ;;  %v10455_v29 = vld [vmem:[#allocation11 + $0x230] ss:$8 sps:$4 sm:$0xff]  }
 0x529   :  { %8621 = vmatpush1.bf16.msra.mxu0 %v10374_v30  ;;  %v10460_v30 = vld [vmem:[#allocation11 + $0x244] ss:$8 sps:$4 sm:$0xff]  }
 0x52a   :  { %7790 = vmatmul.mubr.bf16.vlgmr.msra.gmra.mrb[16].mxu1 %v11090_v52  ;;  %8622 = vmatprep.subr.bf16.mxu0 %v10379_v48  ;;  %v10392_v52 = vld [vmem:[#allocation11 + $0xe0] ss:$8 sps:$4 sm:$0xff]  }
 0x52b   :  { %v10458_v48 = vld [vmem:[#allocation11 + $0x240] ss:$8 sps:$4 sm:$0xff]  }
 0x52d   :  { %8623 = vmatpush1.bf16.msra.mxu0 %v10377_v31  ;;  %v10463_v31 = vld [vmem:[#allocation11 + $0x254] ss:$8 sps:$4 sm:$0xff]  }
 0x52e   :  { %8624 = vmatprep.subr.bf16.mxu0 %v10382_v32  ;;  %v10461_v32 = vld [vmem:[#allocation11 + $0x250] ss:$8 sps:$4 sm:$0xff]  }
 0x531   :  { %8625 = vmatpush1.bf16.msra.mxu0 %v10380_v33  ;;  %v10464_v33 = vld [vmem:[#allocation11 + $0x260] ss:$8 sps:$4 sm:$0xff]  }
 0x532   :  { %8626 = vmatprep.subr.bf16.mxu0 %v10385_v35  ;;  %v10469_v35 = vld [vmem:[#allocation11 + $0x274] ss:$8 sps:$4 sm:$0xff]  }
 0x535   :  { %8627 = vmatpush1.bf16.msra.mxu0 %v10383_v38  ;;  %v10467_v38 = vld [vmem:[#allocation11 + $0x270] ss:$8 sps:$4 sm:$0xff]  }
 0x536   :  { %8628 = vmatprep.subr.bf16.mxu0 %v10388_v39  ;;  %v10472_v39 = vld [vmem:[#allocation11 + $0x284] ss:$8 sps:$4 sm:$0xff]  }
 0x539   :  { %8629 = vmatpush1.bf16.msra.mxu0 %v10386_v40  ;;  %v10470_v40 = vld [vmem:[#allocation11 + $0x280] ss:$8 sps:$4 sm:$0xff]  }
 0x53a   :  { %8630 = vmatprep.subr.bf16.mxu0 %v10391_v57  ;;  %v10475_v57 = vld [vmem:[#allocation11 + $0x294] ss:$8 sps:$4 sm:$0xff]  }
 0x53d   :  { %8631 = vmatpush1.bf16.msra.mxu0 %v10389_v46  ;;  %v10542_v46 = vld [vmem:[#allocation14 + $0x40] sm:$0xff]  }
 0x53e   :  { %8632 = vmatprep.subr.bf16.mxu0 %v10394_v17  ;;  %v10543_v17 = vld [vmem:[#allocation14] sm:$0xff]   ;;  %10167 = vmatprep.subr.bf16.mxu1 %v10542_v46 }
 0x53f   :  { %10168 = vmatpush3.bf16.msra.mxu1 %v10543_v17 }
 0x541   :  { %8633 = vmatpush1.bf16.msra.mxu0 %v10392_v52  ;;  %v10544_v52 = vld [vmem:[#allocation14 + $0x48] sm:$0xff]  }
 0x542   :  { %8634 = vmatprep.subr.bf16.mxu0 %v10397_v41  ;;  %v10473_v41 = vld [vmem:[#allocation11 + $0x290] ss:$8 sps:$4 sm:$0xff]   ;;  %10169 = vmatprep.subr.bf16.mxu1 %v10544_v52 }
 0x545   :  { %8635 = vmatpush1.bf16.msra.mxu0 %v10395_v42  ;;  %v10545_v42 = vld [vmem:[#allocation14 + $0x8] sm:$0xff]  }
 0x546   :  { %8647 = vmatprep.subr.bf16.mxu0 %v10400_v0  ;;  %v10478_v0 = vld [vmem:[#allocation11 + $0x2a4] ss:$8 sps:$4 sm:$0xff]   ;;  %10170 = vmatpush3.bf16.msra.mxu1 %v10545_v42  ;;  %v10515_v42 = vld [vmem:[#allocation11 + $0x370] ss:$8 sps:$4 sm:$0xff]  }
 0x548   :  { %8637 = vmatmul.mubr.bf16.vlgmr.msra.gmra.mrb[16].mxu0 %v11119_v9  ;;  %v10413_v9 = vld [vmem:[#allocation11 + $0x150] ss:$8 sps:$4 sm:$0xff]  }
 0x549   :  { %8648 = vmatpush1.bf16.msra.mxu0 %v10398_v43  ;;  %8679 = vmatprep.mubr.bf16.mxu0 %v11133_v49  ;;  %v10416_v49 = vld [vmem:[#allocation11 + $0x160] ss:$8 sps:$4 sm:$0xff]   ;;  %v10546_v43 = vld [vmem:[#allocation14 + $0x50] sm:$0xff]  }
 0x54a   :  { %8649 = vmatprep.subr.bf16.mxu0 %v10403_v51  ;;  %v10476_v51 = vld [vmem:[#allocation11 + $0x2a0] ss:$8 sps:$4 sm:$0xff]   ;;  %10171 = vmatprep.subr.bf16.mxu1 %v10546_v43 }
 0x54d   :  { %8650 = vmatpush1.bf16.msra.mxu0 %v10401_v59  ;;  %v10547_v59 = vld [vmem:[#allocation14 + $0x10] sm:$0xff]  }
 0x54e   :  { %8651 = vmatprep.subr.bf16.mxu0 %v10406_v44  ;;  %v10481_v44 = vld [vmem:[#allocation11 + $0x2b4] ss:$8 sps:$4 sm:$0xff]   ;;  %10172 = vmatpush3.bf16.msra.mxu1 %v10547_v59 }
 0x551   :  { %8652 = vmatpush1.bf16.msra.mxu0 %v10404_v60  ;;  %v10548_v60 = vld [vmem:[#allocation14 + $0x58] sm:$0xff]  }
 0x552   :  { %8653 = vmatprep.subr.bf16.mxu0 %v10409_v61  ;;  %v10479_v61 = vld [vmem:[#allocation11 + $0x2b0] ss:$8 sps:$4 sm:$0xff]   ;;  %10173 = vmatprep.subr.bf16.mxu1 %v10548_v60 }
 0x555   :  { %8654 = vmatpush1.bf16.msra.mxu0 %v10407_v26  ;;  %v10549_v26 = vld [vmem:[#allocation14 + $0x18] sm:$0xff]  }
 0x556   :  { %8655 = vmatprep.subr.bf16.mxu0 %v10412_v62  ;;  %v10484_v62 = vld [vmem:[#allocation11 + $0x2c4] ss:$8 sps:$4 sm:$0xff]   ;;  %10174 = vmatpush3.bf16.msra.mxu1 %v10549_v26 }
 0x559   :  { %8656 = vmatpush1.bf16.msra.mxu0 %v10410_v63  ;;  %v10550_v63 = vld [vmem:[#allocation14 + $0x60] sm:$0xff]  }
 0x55a   :  { %8657 = vmatprep.subr.bf16.mxu0 %v10415_v1  ;;  %v10482_v1 = vld [vmem:[#allocation11 + $0x2c0] ss:$8 sps:$4 sm:$0xff]   ;;  %10175 = vmatprep.subr.bf16.mxu1 %v10550_v63  ;;  %v10526_v63 = vld [vmem:[#allocation11 + $0x3a4] ss:$8 sps:$4 sm:$0xff]  }
 0x55d   :  { %8658 = vmatpush1.bf16.msra.mxu0 %v10413_v9  ;;  %v10551_v9 = vld [vmem:[#allocation14 + $0x20] sm:$0xff]  }
 0x55e   :  { %8659 = vmatprep.subr.bf16.mxu0 %v10418_v12  ;;  %v10487_v12 = vld [vmem:[#allocation11 + $0x2d4] ss:$8 sps:$4 sm:$0xff]   ;;  %10176 = vmatpush3.bf16.msra.mxu1 %v10551_v9 }
 0x55f   :  { %v10529_v9 = vld [vmem:[#allocation11 + $0x3b4] ss:$8 sps:$4 sm:$0xff]  }
 0x561   :  { %8660 = vmatpush1.bf16.msra.mxu0 %v10416_v49  ;;  %v10552_v49 = vld [vmem:[#allocation14 + $0x68] sm:$0xff]  }
 0x562   :  { %8661 = vmatprep.subr.bf16.mxu0 %v10421_v58  ;;  %v10485_v58 = vld [vmem:[#allocation11 + $0x2d0] ss:$8 sps:$4 sm:$0xff]   ;;  %10177 = vmatprep.subr.bf16.mxu1 %v10552_v49  ;;  %v10532_v49 = vld [vmem:[#allocation11 + $0x3c4] ss:$8 sps:$4 sm:$0xff]  }
 0x565   :  { %8662 = vmatpush1.bf16.msra.mxu0 %v10419_v2  ;;  %v10490_v2 = vld [vmem:[#allocation11 + $0x2e4] ss:$8 sps:$4 sm:$0xff]  }
 0x566   :  { %8663 = vmatprep.subr.bf16.mxu0 %v10424_v4  ;;  %v10488_v4 = vld [vmem:[#allocation11 + $0x2e0] ss:$8 sps:$4 sm:$0xff]  }
 0x569   :  { %8664 = vmatpush1.bf16.msra.mxu0 %v10422_v5  ;;  %v10493_v5 = vld [vmem:[#allocation11 + $0x2f4] ss:$8 sps:$4 sm:$0xff]  }
 0x56a   :  { %8665 = vmatprep.subr.bf16.mxu0 %v10427_v8  ;;  %v10491_v8 = vld [vmem:[#allocation11 + $0x2f0] ss:$8 sps:$4 sm:$0xff]  }
 0x56d   :  { %8666 = vmatpush1.bf16.msra.mxu0 %v10425_v11  ;;  %v10496_v11 = vld [vmem:[#allocation11 + $0x304] ss:$8 sps:$4 sm:$0xff]  }
 0x56e   :  { %8667 = vmatprep.subr.bf16.mxu0 %v10430_v7  ;;  %v4531_v7 = vrot.slane %v11113_v20, %v704_v54  ;;  %v10499_v54 = vld [vmem:[#allocation11 + $0x314] ss:$8 sps:$4 sm:$0xff]  }
 0x571   :  { %8668 = vmatpush1.bf16.msra.mxu0 %v10428_v16  ;;  %v4535_v16 = vrot.slane %v11113_v20, %v708_v56  ;;  %v10497_v56 = vld [vmem:[#allocation11 + $0x310] ss:$8 sps:$4 sm:$0xff]  }
 0x572   :  { %8669 = vmatprep.subr.bf16.mxu0 %v10433_v21 }
 0x575   :  { %8670 = vmatpush1.bf16.msra.mxu0 %v10431_v18 }
 0x576   :  { %8671 = vmatprep.subr.bf16.mxu0 %v10436_v19 }
 0x579   :  { %8672 = vmatpush1.bf16.msra.mxu0 %v10434_v45 }
 0x57a   :  { %8673 = vmatprep.subr.bf16.mxu0 %v10439_v47 }
 0x57d   :  { %8674 = vmatpush1.bf16.msra.mxu0 %v10437_v37 }
 0x57e   :  { %8675 = vmatprep.subr.bf16.mxu0 %v10442_v13 }
 0x581   :  { %8676 = vmatpush1.bf16.msra.mxu0 %v10440_v53 }
 0x582   :  { %8677 = vmatprep.subr.bf16.mxu0 %v10445_v22 }
 0x585   :  { %8678 = vmatpush1.bf16.msra.mxu0 %v10443_v23 }
 0x586   :  { %8690 = vmatprep.subr.bf16.mxu0 %v10448_v50 }
 0x588   :  { %8680 = vmatmul.mubr.bf16.vlgmr.msra.gmra.mrb[16].mxu0 %v11131_v36  ;;  %v10466_v36 = vld [vmem:[#allocation11 + $0x264] ss:$8 sps:$4 sm:$0xff]  }
 0x589   :  { %8691 = vmatpush1.bf16.msra.mxu0 %v10446_v24 }
 0x58a   :  { %8692 = vmatprep.subr.bf16.mxu0 %v10451_v55 }
 0x58d   :  { %8693 = vmatpush1.bf16.msra.mxu0 %v10449_v34 }
 0x58e   :  { %8694 = vmatprep.subr.bf16.mxu0 %v10454_v25  ;;  %v10494_v25 = vld [vmem:[#allocation11 + $0x300] ss:$8 sps:$4 sm:$0xff]  }
 0x591   :  { %8695 = vmatpush1.bf16.msra.mxu0 %v10452_v27  ;;  %v10502_v27 = vld [vmem:[#allocation11 + $0x324] ss:$8 sps:$4 sm:$0xff]  }
 0x592   :  { %8696 = vmatprep.subr.bf16.mxu0 %v10457_v28  ;;  %v10500_v28 = vld [vmem:[#allocation11 + $0x320] ss:$8 sps:$4 sm:$0xff]  }
 0x595   :  { %8697 = vmatpush1.bf16.msra.mxu0 %v10455_v29  ;;  %v10505_v29 = vld [vmem:[#allocation11 + $0x334] ss:$8 sps:$4 sm:$0xff]  }
 0x596   :  { %8698 = vmatprep.subr.bf16.mxu0 %v10460_v30  ;;  %v10503_v30 = vld [vmem:[#allocation11 + $0x330] ss:$8 sps:$4 sm:$0xff]  }
 0x599   :  { %8699 = vmatpush1.bf16.msra.mxu0 %v10458_v48  ;;  %v10508_v48 = vld [vmem:[#allocation11 + $0x344] ss:$8 sps:$4 sm:$0xff]  }
 0x59a   :  { %8700 = vmatprep.subr.bf16.mxu0 %v10463_v31  ;;  %v10506_v31 = vld [vmem:[#allocation11 + $0x340] ss:$8 sps:$4 sm:$0xff]  }
 0x59d   :  { %8701 = vmatpush1.bf16.msra.mxu0 %v10461_v32  ;;  %v10511_v32 = vld [vmem:[#allocation11 + $0x354] ss:$8 sps:$4 sm:$0xff]  }
 0x59e   :  { %8702 = vmatprep.subr.bf16.mxu0 %v10466_v36  ;;  %v10509_v36 = vld [vmem:[#allocation11 + $0x350] ss:$8 sps:$4 sm:$0xff]  }
 0x5a1   :  { %8703 = vmatpush1.bf16.msra.mxu0 %v10464_v33  ;;  %v10514_v33 = vld [vmem:[#allocation11 + $0x364] ss:$8 sps:$4 sm:$0xff]  }
 0x5a2   :  { %8704 = vmatprep.subr.bf16.mxu0 %v10469_v35  ;;  %v4539_v35 = vrot.slane %v11113_v20, %v712_v6 }
 0x5a5   :  { %8705 = vmatpush1.bf16.msra.mxu0 %v10467_v38  ;;  %v10512_v38 = vld [vmem:[#allocation11 + $0x360] ss:$8 sps:$4 sm:$0xff]  }
 0x5a6   :  { %8706 = vmatprep.subr.bf16.mxu0 %v10472_v39  ;;  %v4543_v39 = vrot.slane %v11113_v20, %v716_v14  ;;  %v10518_v14 = vld [vmem:[#allocation11 + $0x380] ss:$8 sps:$4 sm:$0xff]  }
 0x5a9   :  { %8707 = vmatpush1.bf16.msra.mxu0 %v10470_v40  ;;  %v10517_v40 = vld [vmem:[#allocation11 + $0x374] ss:$8 sps:$4 sm:$0xff]  }
 0x5aa   :  { %8708 = vmatprep.subr.bf16.mxu0 %v10475_v57 }
 0x5ad   :  { %8709 = vmatpush1.bf16.msra.mxu0 %v10473_v41 }
 0x5ae   :  { %8710 = vmatprep.subr.bf16.mxu0 %v10478_v0 }
 0x5b1   :  { %8711 = vmatpush1.bf16.msra.mxu0 %v10476_v51  ;;  %v10520_v51 = vld [vmem:[#allocation11 + $0x384] ss:$8 sps:$4 sm:$0xff]  }
 0x5b2   :  { %8712 = vmatprep.subr.bf16.mxu0 %v10481_v44 }
 0x5b5   :  { %8713 = vmatpush1.bf16.msra.mxu0 %v10479_v61  ;;  %v10523_v61 = vld [vmem:[#allocation11 + $0x394] ss:$8 sps:$4 sm:$0xff]  }
 0x5b6   :  { %8714 = vmatprep.subr.bf16.mxu0 %v10484_v62  ;;  %v10521_v62 = vld [vmem:[#allocation11 + $0x390] ss:$8 sps:$4 sm:$0xff]  }
 0x5b9   :  { %8715 = vmatpush1.bf16.msra.mxu0 %v10482_v1  ;;  %v10524_v1 = vld [vmem:[#allocation11 + $0x3a0] ss:$8 sps:$4 sm:$0xff]  }
 0x5ba   :  { %8716 = vmatprep.subr.bf16.mxu0 %v10487_v12  ;;  %v10527_v12 = vld [vmem:[#allocation11 + $0x3b0] ss:$8 sps:$4 sm:$0xff]  }
 0x5bd   :  { %8717 = vmatpush1.bf16.msra.mxu0 %v10485_v58  ;;  %v10530_v58 = vld [vmem:[#allocation11 + $0x3c0] ss:$8 sps:$4 sm:$0xff]  }
 0x5be   :  { %8718 = vmatprep.subr.bf16.mxu0 %v10490_v2  ;;  %v10535_v2 = vld [vmem:[#allocation11 + $0x3d4] ss:$8 sps:$4 sm:$0xff]  }
 0x5c1   :  { %8719 = vmatpush1.bf16.msra.mxu0 %v10488_v4  ;;  %v10533_v4 = vld [vmem:[#allocation11 + $0x3d0] ss:$8 sps:$4 sm:$0xff]  }
 0x5c2   :  { %8720 = vmatprep.subr.bf16.mxu0 %v10493_v5  ;;  %v10538_v5 = vld [vmem:[#allocation11 + $0x3e4] ss:$8 sps:$4 sm:$0xff]  }
 0x5c5   :  { %8721 = vmatpush1.bf16.msra.mxu0 %v10491_v8  ;;  %v10536_v8 = vld [vmem:[#allocation11 + $0x3e0] ss:$8 sps:$4 sm:$0xff]  }
 0x5c6   :  { %8733 = vmatprep.subr.bf16.mxu0 %v10496_v11  ;;  %v10541_v11 = vld [vmem:[#allocation11 + $0x3f4] ss:$8 sps:$4 sm:$0xff]  }
 0x5db   :  { %v7619_v21 = vpop.f32.mrb[12].mxu0 }
 0x5dc   :  { %v10217_v18 = vadd.f32 %v7619_v21, %v4531_v7  ;;  %v7621_v19 = vpop.f32.mrb[13].mxu0  ;;  %v10554_v21 = vld [vmem:[#allocation14 + $0x70] sm:$0xff]  }
 0x5dd   :  { %v10218_v45 = vadd.f32 %v7621_v19, %v4535_v16  ;;  %v7623_v47 = vpop.f32.mrb[14].mxu0  ;;  %v10556_v19 = vld [vmem:[#allocation14 + $0x78] sm:$0xff]  }
 0x5de   :  { %v10219_v37 = vadd.f32 %v7623_v47, %v4531_v7  ;;  %v7625_v13 = vpop.f32.mrb[15].mxu0  ;;  %v7804_v22 = vmax.f32 %v10217_v18, 0.0  ;;  %v10539_v7 = vld [vmem:[#allocation11 + $0x3f0] ss:$8 sps:$4 sm:$0xff]   ;;  %v7952_v47 = vld [vmem:[#allocation13] sm:$0x3] }
 0x5df   :  { %v10220_v53 = vadd.f32 %v7625_v13, %v4535_v16  ;;  %v7805_v50 = vmax.f32 %v10218_v45, 0.0  ;;  %v10553_v16 = vld [vmem:[#allocation14 + $0x28] sm:$0xff]   ;;  %v10555_v18 = vld [vmem:[#allocation14 + $0x30] sm:$0xff]   ;;  %v10557_v45 = vld [vmem:[#allocation14 + $0x38] sm:$0xff]   ;;  %v7961_v13 = vrot.slane %v7952_v47, %v11015_v15 }
 0x5e0   :  { %v7812_v23 = vmax.f32 %v10219_v37, 0.0  ;;  %10178 = vmatpush3.bf16.msra.mxu1 %v10553_v16  ;;  %v7957_v37 = vrot.slane %v7952_v47, %v11012_v10 }
 0x5e1   :  { %v7813_v24 = vmax.f32 %v10220_v53, 0.0  ;;  %10179 = vmatprep.subr.bf16.mxu1 %v10554_v21 }
 0x5e2   :  { %v7820_v55 = vpack.c.bf16 %v7812_v23, %v7804_v22 }
 0x5e3   :  { %v7821_v34 = vpack.c.bf16 %v7813_v24, %v7805_v50 }
 0x5e4   :  { %10180 = vmatpush3.bf16.msra.mxu1 %v10555_v18 }
 0x5e5   :  { %8722 = vmatprep.mubr.bf16.mxu0 %v7821_v34  ;;  %10181 = vmatprep.subr.bf16.mxu1 %v10556_v19 }
 0x5e6   :  { %8723 = vmatmul.mubr.bf16.vlgmr.msra.gmra.mrb[16].mxu0 %v7820_v55 }
 0x5e7   :  { %8734 = vmatpush1.bf16.msra.mxu0 %v10494_v25 }
 0x5e8   :  { %8735 = vmatprep.subr.bf16.mxu0 %v10499_v54  ;;  %10182 = vmatpush3.bf16.msra.mxu1 %v10557_v45 }
 0x5eb   :  { %8736 = vmatpush1.bf16.msra.mxu0 %v10497_v56 }
 0x5ec   :  { %8737 = vmatprep.subr.bf16.mxu0 %v10502_v27 }
 0x5ef   :  { %8738 = vmatpush1.bf16.msra.mxu0 %v10500_v28 }
 0x5f0   :  { %8739 = vmatprep.subr.bf16.mxu0 %v10505_v29 }
 0x5f3   :  { %8740 = vmatpush1.bf16.msra.mxu0 %v10503_v30 }
 0x5f4   :  { %8741 = vmatprep.subr.bf16.mxu0 %v10508_v48 }
 0x5f7   :  { %8742 = vmatpush1.bf16.msra.mxu0 %v10506_v31 }
 0x5f8   :  { %8743 = vmatprep.subr.bf16.mxu0 %v10511_v32  ;;  %v10141_v32 = vld [vmem:[#allocation16] ss:$0 sm:$0xff] }
 0x5fb   :  { %8744 = vmatpush1.bf16.msra.mxu0 %v10509_v36 }
 0x5fc   :  { %8745 = vmatprep.subr.bf16.mxu0 %v10514_v33 }
 0x5fd   :  { %v7791_v57 = vpop.f32.mrb[16].mxu1 }
 0x5fe   :  { %v10221_v46 = vadd.f32 %v7791_v57, %v4539_v35  ;;  %v7793_v17 = vpop.f32.mrb[17].mxu1 }
 0x5ff   :  { %8746 = vmatpush1.bf16.msra.mxu0 %v10512_v38  ;;  %v10222_v52 = vadd.f32 %v7793_v17, %v4543_v39  ;;  %v7795_v41 = vpop.f32.mrb[18].mxu1 }
 0x600   :  { %v10223_v0 = vadd.f32 %v7795_v41, %v4539_v35  ;;  %v7797_v43 = vpop.f32.mrb[19].mxu1  ;;  %8747 = vmatprep.subr.bf16.mxu0 %v10517_v40  ;;  %v7806_v59 = vmax.f32 %v10221_v46, 0.0 }
 0x601   :  { %v10224_v6 = vadd.f32 %v7797_v43, %v4543_v39  ;;  %v7807_v60 = vmax.f32 %v10222_v52, 0.0 }
 0x602   :  { %v7814_v44 = vmax.f32 %v10223_v0, 0.0 }
 0x603   :  { %v7815_v3 = vmax.f32 %v10224_v6, 0.0  ;;  %8748 = vmatpush1.bf16.msra.mxu0 %v10515_v42 }
 0x604   :  { %v7822_v20 = vpack.c.bf16 %v7814_v44, %v7806_v59  ;;  %8749 = vmatprep.subr.bf16.mxu0 %v10520_v51 }
 0x605   :  { %v7823_v26 = vpack.c.bf16 %v7815_v3, %v7807_v60 }
 0x607   :  { %8750 = vmatpush1.bf16.msra.mxu0 %v10518_v14  ;;  %8765 = vmatprep.mubr.bf16.mxu0 %v7823_v26 }
 0x608   :  { %8751 = vmatprep.subr.bf16.mxu0 %v10523_v61 }
 0x60b   :  { %8752 = vmatpush1.bf16.msra.mxu0 %v10521_v62 }
 0x60c   :  { %8753 = vmatprep.subr.bf16.mxu0 %v10526_v63 }
 0x60f   :  { %8754 = vmatpush1.bf16.msra.mxu0 %v10524_v1 }
 0x610   :  { %8755 = vmatprep.subr.bf16.mxu0 %v10529_v9 }
 0x613   :  { %8756 = vmatpush1.bf16.msra.mxu0 %v10527_v12 }
 0x614   :  { %8757 = vmatprep.subr.bf16.mxu0 %v10532_v49 }
 0x617   :  { %8758 = vmatpush1.bf16.msra.mxu0 %v10530_v58 }
 0x618   :  { %8759 = vmatprep.subr.bf16.mxu0 %v10535_v2 }
 0x61b   :  { %8760 = vmatpush1.bf16.msra.mxu0 %v10533_v4 }
 0x61c   :  { %8761 = vmatprep.subr.bf16.mxu0 %v10538_v5 }
 0x61f   :  { %8762 = vmatpush1.bf16.msra.mxu0 %v10536_v8 }
 0x620   :  { %8763 = vmatprep.subr.bf16.mxu0 %v10541_v11 }
 0x623   :  { %8764 = vmatpush1.bf16.msra.mxu0 %v10539_v7 }
 0x626   :  { %8766 = vmatmul.mubr.bf16.vlgmr.msra.gmra.mrb[16].mxu0 %v7822_v20 }
 0x6f9   :  { %v8767_v53 = vpop.f32.mrb[16].mxu0 }
 0x6fa   :  { %v10225_v22 = vadd.f32 %v8767_v53, %v7957_v37  ;;  %v8769_v23 = vpop.f32.mrb[17].mxu0 }
 0x6fb   :  { %v10226_v50 = vadd.f32 %v8769_v23, %v7961_v13  ;;  %v8771_v24 = vpop.f32.mrb[18].mxu0 }
 0x6fc   :  { %v10227_v55 = vadd.f32 %v8771_v24, %v7957_v37  ;;  %v8773_v34 = vpop.f32.mrb[19].mxu0  ;;  %v8776_v54 = vmax.f32 %v10225_v22, 0.0 }
 0x6fd   :  { %v10228_v25 = vadd.f32 %v8773_v34, %v7961_v13  ;;  %v8777_v27 = vmax.f32 %v10226_v50, 0.0 }
 0x6fe   :  { %v8778_v56 = vmax.f32 %v10227_v55, 0.0 }
 0x6ff   :  { %v8779_v28 = vmax.f32 %v10228_v25, 0.0 }
 0x700   :  { %v8780_v29 = vpack.c.bf16 %v8778_v56, %v8776_v54 }
 0x701   :  { %v8781_v30 = vpack.c.bf16 %v8779_v28, %v8777_v27 }
 0x703   :  { %8949 = vmatprep.mubr.bf16.mxu1 %v8781_v30 }
 0x704   :  { %8950 = vmatmul.mubr.bf16.vlgmr.msra.gmra.mrb[20].mxu1 %v8780_v29 }
 0x7d7   :  { %v10183_v48 = vpop.f32.mrb[20].mxu1 }
 0x7d8   :  { %v10184_v10 = vpop.f32.mrb[21].mxu1 }
 0x7d9   :  { %v10185_v31 = vadd.f32 %v10184_v10, %v10183_v48  ;;  %v10186_v15 = vpop.f32.mrb[22].mxu1 }
 0x7da   :  { %v10187_v36 = vpop.f32.mrb[23].mxu1 }
 0x7db   :  { %v10188_v33 = vadd.f32 %v10187_v36, %v10186_v15  ;;  %v8952_v35 = vadd.f32 %v10185_v31, %v10141_v32 }
 0x7dd   :  { %v8955_v38 = vadd.f32 %v10188_v33, %v10141_v32 }
 0x7df   :  { %v10165_v39 = vpack.c.bf16 %v8955_v38, %v8952_v35 }
 0x7e1   :  { %10166 = vst [vmem:[#allocation17] sm:$0xff] %v10165_v39  }
 0x7e2   :  { %10769 = shalt.err (!%p10766_p6)
}
 0x7e3   :  { %s10770_s11 = scalar_lea.hbm %s11179_s9, 128 }
 0x7e4   :  { %p10771_p7 = scmp.ne.s32.totalorder %s11179_s9, %s10770_s11  ;;  %p10774_p8 = scmp.lt.u32.totalorder %s10770_s11, %s11179_s9 }
 0x7e6   :  { %p10776_p9 = pnand %p10774_p8, %p10771_p7 }
 0x7e8   :  { %10779 = shalt.err (!%p10776_p9)
}
 0x7e9   :  { %8979 = dma.vmem_to_hbm [thread:$0]  %s8974_s2, 128, %s11179_s9, [#allocation4], %s10801_s26, %s10801_s26, %s10802_s16  }
 0x7ea   :  { %10790 = dma.done.wait [#allocation4], 128  }
 0x7eb   :  { %10791 = vsyncadd [#allocation4], 4294967168 }
 0x7ec   :  { %8983 = vsyncpa [#allocation3], 1 }
 0x7ed   :  { %8984 = vsyncpa [#allocation6], 1 }
 0x7ee   :  { %8985 = vsyncpa [#allocation9], 1 }
 0x7ef   :  { %8986 = vsyncpa [#allocation12], 1 }
 0x7f0   :  { %8987 = vsyncpa [#allocation15], 1 }
 0x7f1   :  { %8988 = vsyncpa [#allocation4], 1 }

</bundles_post_ra>
